<compile_context>
chip_gen: v6e
topology: v6e:2x2x1
jax: 0.10.0
libtpu: 0.0.40
codegen_flags: <defaults>
</compile_context>

<pallas_src>
import jax
import jax.numpy as jnp
from jax.experimental import pallas as pl
from jax.experimental.pallas import tpu as pltpu

# ----------------------------- synthetic config -----------------------------
EMBED_DIM     = 16
ATTR_FNUM     = 2
ITEM_FNUM     = 1 + ATTR_FNUM            # 3
HIST_FNUM     = 2 + ATTR_FNUM            # 4
AUGMENT_NUM   = 0
FIELD_NUM     = ITEM_FNUM + AUGMENT_NUM + HIST_FNUM   # 7
NUM_HEADS     = 2
ATTN_SIZE     = 16
ATTN_OUT_DIM  = NUM_HEADS * ATTN_SIZE    # 32
NUM_LAYERS    = 2
FINAL_DIM     = FIELD_NUM * ATTN_OUT_DIM # 224
USE_SCALE     = True                     # args.attn_scale
USE_RESIDUAL  = True                     # args.res_conn
MAX_HIST_LEN  = 8
ITEM_NUM      = 50
ATTR_NUM      = 30
RATING_NUM    = 5

BATCH         = 16


# ------------------------------- Pallas kernel ------------------------------
def _attn_layer(q, k, v, res):
    """One MultiHeadSelfAttention layer given pre-projected Q/K/V and residual.

    q, k, v, res: (TB, F, ATTN_OUT_DIM) float32.
    """
    inv_sqrt_a = 1.0 / (float(ATTN_SIZE) ** 0.5)
    head_outs = []
    for h in range(NUM_HEADS):
        lo, hi = h * ATTN_SIZE, (h + 1) * ATTN_SIZE
        qh, kh, vh = q[..., lo:hi], k[..., lo:hi], v[..., lo:hi]
        s = jnp.einsum('bfa,bga->bfg', qh, kh, preferred_element_type=jnp.float32)
        if USE_SCALE:
            s = s * inv_sqrt_a
        m = jnp.max(s, axis=-1, keepdims=True)
        e = jnp.exp(s - m)
        denom = jnp.sum(e, axis=-1, keepdims=True)
        p = e * pl.reciprocal(denom, approx=True)     # EUP reciprocal, ~free
        head_outs.append(
            jnp.einsum('bfg,bga->bfa', p, vh, preferred_element_type=jnp.float32))
    out = jnp.concatenate(head_outs, axis=-1)          # (TB, F, H*A)
    if USE_RESIDUAL:
        out = out + res
    return jnp.maximum(out, 0.0)                       # ReLU


def autoint_kernel(x_ref, w0_ref, w1_ref, wout_ref, bout_ref, out_ref):
    TBF = x_ref.shape[0]
    TB = TBF // FIELD_NUM
    X2 = x_ref[...].astype(jnp.float32)                # (TB*F, D)

    # ---- layer 0: one fused matmul  X2 @ [Wq0|Wk0|Wv0|Wres0]  (N = 128) ----
    qkvr = jnp.dot(X2, w0_ref[...], preferred_element_type=jnp.float32)
    qkvr = qkvr.reshape(TB, FIELD_NUM, 4 * ATTN_OUT_DIM)
    h1 = _attn_layer(qkvr[..., 0 * ATTN_OUT_DIM:1 * ATTN_OUT_DIM],
                     qkvr[..., 1 * ATTN_OUT_DIM:2 * ATTN_OUT_DIM],
                     qkvr[..., 2 * ATTN_OUT_DIM:3 * ATTN_OUT_DIM],
                     qkvr[..., 3 * ATTN_OUT_DIM:4 * ATTN_OUT_DIM])

    # ---- layer 1: one fused matmul  h1 @ [Wq1|Wk1|Wv1]; identity residual ----
    qkv = jnp.dot(h1.reshape(TB * FIELD_NUM, ATTN_OUT_DIM), w1_ref[...],
                  preferred_element_type=jnp.float32)  # (TB*F, 96)
    qkv = qkv.reshape(TB, FIELD_NUM, 3 * ATTN_OUT_DIM)
    h2 = _attn_layer(qkv[..., 0 * ATTN_OUT_DIM:1 * ATTN_OUT_DIM],
                     qkv[..., 1 * ATTN_OUT_DIM:2 * ATTN_OUT_DIM],
                     qkv[..., 2 * ATTN_OUT_DIM:3 * ATTN_OUT_DIM],
                     h1)

    # ---- final linear (out_dim = 1): VPU multiply + reduce, not an MXU pass ----
    flat = h2.reshape(TB, FINAL_DIM)                   # torch.flatten(start_dim=1)
    logits = jnp.sum(flat * wout_ref[...], axis=-1, keepdims=True) + bout_ref[...]
    row_l = logits.reshape(1, TB)                      # batch on the lane axis
    out_ref[...] = jnp.concatenate([row_l, jax.nn.sigmoid(row_l)], axis=0)


def autoint_pallas(fields, params, batch_tile=None):
    """fields: (B, FIELD_NUM, EMBED_DIM) -> (logits (B,1), probs (B,1))."""
    B, F, D = fields.shape
    assert F == FIELD_NUM and D == EMBED_DIM
    if batch_tile is None:
        batch_tile = B if B <= 1024 else 1024
    assert B % batch_tile == 0
    if batch_tile != B:
        # lane-dense output tiles + 8-aligned sublane input tiles
        assert batch_tile % 128 == 0
    grid = (B // batch_tile,)

    # wrapper-side layout plumbing / weight packing (cheap XLA ops)
    fields2d = fields.reshape(B * FIELD_NUM, EMBED_DIM)
    w0 = jnp.concatenate([params['wq0'], params['wk0'],
                          params['wv0'], params['wres0']], axis=1)   # (16, 128)
    w1 = jnp.concatenate([params['wq1'], params['wk1'],
                          params['wv1']], axis=1)                    # (32, 96)
    wout = params['wout'].reshape(1, FINAL_DIM)                      # (1, 224)
    bout = params['bout'].reshape(1, 1)

    in_specs = [
        pl.BlockSpec((batch_tile * FIELD_NUM, EMBED_DIM), lambda i: (i, 0)),
        pl.BlockSpec(w0.shape, lambda i: (0, 0)),
        pl.BlockSpec(w1.shape, lambda i: (0, 0)),
        pl.BlockSpec(wout.shape, lambda i: (0, 0)),
        pl.BlockSpec(bout.shape, lambda i: (0, 0)),
    ]
    out_specs = pl.BlockSpec((2, batch_tile), lambda i: (0, i))

    out = pl.pallas_call(
        autoint_kernel,
        out_shape=jax.ShapeDtypeStruct((2, B), jnp.float32),
        grid=grid,
        in_specs=in_specs,
        out_specs=out_specs,
        compiler_params=pltpu.CompilerParams(dimension_semantics=("parallel",)),
    )(fields2d, w0, w1, wout, bout)

    logits = out[0].reshape(B, 1)
    probs = out[1].reshape(B, 1)
    return logits, probs


# ------------------------------- plain-JAX glue ------------------------------
def get_filed_input(params, inp):
    """BaseModel.process_input + get_filed_input (CTR task, no augmentation)."""
    item_tbl, attr_tbl, rating_tbl = (params['item_embedding'],
                                      params['attr_embedding'],
                                      params['rating_embedding'])
    B = inp['iid'].shape[0]
    hist_item_emb = jnp.take(item_tbl, inp['hist_iid_seq'], axis=0)          # (B,L,D)
    hist_attr_emb = jnp.take(attr_tbl, inp['hist_aid_seq'], axis=0
                             ).reshape(B, MAX_HIST_LEN, EMBED_DIM * ATTR_FNUM)
    hist_rate_emb = jnp.take(rating_tbl, inp['hist_rate_seq'], axis=0)       # (B,L,D)
    hist_emb = jnp.concatenate([hist_item_emb, hist_attr_emb, hist_rate_emb], axis=-1)

    iid_emb = jnp.take(item_tbl, inp['iid'], axis=0)                         # (B,D)
    attr_emb = jnp.take(attr_tbl, inp['aid'], axis=0).reshape(B, EMBED_DIM * ATTR_FNUM)
    item_emb = jnp.concatenate([iid_emb, attr_emb], axis=-1)                 # (B, itm_emb_dim)

    user_behavior = jnp.mean(hist_emb, axis=1)                               # (B, hist_emb_dim)
    fields = jnp.concatenate([item_emb, user_behavior], axis=1
                             ).reshape(B, FIELD_NUM, EMBED_DIM)
    return fields, inp['lb']


def bce_with_logits(logits, labels):
    z = logits.reshape(-1)
    y = labels.reshape(-1).astype(jnp.float32)
    return jnp.mean(jnp.maximum(z, 0.0) - z * y + jnp.log1p(jnp.exp(-jnp.abs(z))))


def autoint_forward(params, inp):
    fields, labels = get_filed_input(params, inp)
    logits, probs = autoint_pallas(fields, params)
    loss = bce_with_logits(logits, labels)
    return {'logits': probs, 'labels': labels, 'loss': loss}


# pure-JAX reference of the kernel body (for a correctness check; unfused weights)
def _mhsa_ref(X, Wq, Wk, Wv, Wres):
    Q = X @ Wq
    K = X @ Wk
    V = X @ Wv
    outs = []
    for h in range(NUM_HEADS):
        lo, hi = h * ATTN_SIZE, (h + 1) * ATTN_SIZE
        s = jnp.einsum('bfa,bga->bfg', Q[..., lo:hi], K[..., lo:hi])
        if USE_SCALE:
            s = s / jnp.sqrt(jnp.float32(ATTN_SIZE))
        p = jax.nn.softmax(s, axis=-1)
        outs.append(jnp.einsum('bfg,bga->bfa', p, V[..., lo:hi]))
    out = jnp.concatenate(outs, axis=-1)
    res = X if Wres is None else X @ Wres
    return jnp.maximum(out + res, 0.0)


def autoint_ref(params, fields):
    h1 = _mhsa_ref(fields, params['wq0'], params['wk0'], params['wv0'], params['wres0'])
    h2 = _mhsa_ref(h1, params['wq1'], params['wk1'], params['wv1'], None)
    flat = h2.reshape(h2.shape[0], -1)
    return flat @ params['wout'] + params['bout']


# ----------------------------------- main ------------------------------------
def init_params(key):
    ks = jax.random.split(key, 12)
    n = lambda k, shape: 0.1 * jax.random.normal(k, shape, dtype=jnp.float32)
    return {
        'item_embedding':   n(ks[0], (ITEM_NUM + 1, EMBED_DIM)),
        'attr_embedding':   n(ks[1], (ATTR_NUM + 1, EMBED_DIM)),
        'rating_embedding': n(ks[2], (RATING_NUM + 1, EMBED_DIM)),
        'wq0':   n(ks[3], (EMBED_DIM, ATTN_OUT_DIM)),
        'wk0':   n(ks[4], (EMBED_DIM, ATTN_OUT_DIM)),
        'wv0':   n(ks[5], (EMBED_DIM, ATTN_OUT_DIM)),
        'wres0': n(ks[6], (EMBED_DIM, ATTN_OUT_DIM)),
        'wq1':   n(ks[7], (ATTN_OUT_DIM, ATTN_OUT_DIM)),
        'wk1':   n(ks[8], (ATTN_OUT_DIM, ATTN_OUT_DIM)),
        'wv1':   n(ks[9], (ATTN_OUT_DIM, ATTN_OUT_DIM)),
        'wout':  n(ks[10], (FINAL_DIM, 1)),
        'bout':  jnp.zeros((1, 1), jnp.float32),
    }


def make_inputs(key):
    ks = jax.random.split(key, 6)
    return {
        'hist_iid_seq':  jax.random.randint(ks[0], (BATCH, MAX_HIST_LEN), 0, ITEM_NUM + 1),
        'hist_aid_seq':  jax.random.randint(ks[1], (BATCH, MAX_HIST_LEN, ATTR_FNUM), 0, ATTR_NUM + 1),
        'hist_rate_seq': jax.random.randint(ks[2], (BATCH, MAX_HIST_LEN), 0, RATING_NUM + 1),
        'iid':           jax.random.randint(ks[3], (BATCH,), 0, ITEM_NUM + 1),
        'aid':           jax.random.randint(ks[4], (BATCH, ATTR_FNUM), 0, ATTR_NUM + 1),
        'lb':            jax.random.bernoulli(ks[5], 0.5, (BATCH,)).astype(jnp.int32),
    }


if __name__ == "__main__":
    key = jax.random.PRNGKey(0)
    pkey, ikey = jax.random.split(key)
    params = init_params(pkey)
    inp = make_inputs(ikey)

    outputs = autoint_forward(params, inp)
    jax.block_until_ready(outputs)

    # correctness check against a pure-JAX reference of the kernel math
    # (approx reciprocal in the in-kernel softmax -> slightly loosened tolerance)
    fields, labels = get_filed_input(params, inp)
    logits_kernel, probs_kernel = autoint_pallas(fields, params)
    logits_ref = autoint_ref(params, fields)
    assert jnp.allclose(logits_kernel, logits_ref, rtol=2e-2, atol=2e-3), "mismatch vs reference"
    assert jnp.allclose(probs_kernel, jax.nn.sigmoid(logits_ref), rtol=2e-2, atol=2e-3)

    print("KERNEL_OK")
</pallas_src>

<mosaic_0001>
module attributes {stable_mosaic.version = 11 : i64} {
  func.func @autoint_kernel(%arg0: i32, %arg1: memref<112x16xf32, #tpu.memory_space<vmem>>, %arg2: memref<16x128xf32, #tpu.memory_space<vmem>>, %arg3: memref<32x96xf32, #tpu.memory_space<vmem>>, %arg4: memref<1x224xf32, #tpu.memory_space<vmem>>, %arg5: memref<1x1xf32, #tpu.memory_space<vmem>>, %arg6: memref<2x16xf32, #tpu.memory_space<vmem>>) attributes {dimension_semantics = [#tpu.dimension_semantics<parallel>], iteration_bounds = array<i64: 1>, scalar_prefetch = 0 : i64, scratch_operands = 0 : i64, tpu.core_type = #tpu.core_type<tc>, window_params = [{transform_indices = @transform_0, window_bounds = array<i64: 112, 16>}, {pipeline_mode = #tpu.pipeline_mode<synchronous>, transform_indices = @transform_1, window_bounds = array<i64: 16, 128>}, {pipeline_mode = #tpu.pipeline_mode<synchronous>, transform_indices = @transform_2, window_bounds = array<i64: 32, 96>}, {pipeline_mode = #tpu.pipeline_mode<synchronous>, transform_indices = @transform_3, window_bounds = array<i64: 1, 224>}, {pipeline_mode = #tpu.pipeline_mode<synchronous>, transform_indices = @transform_4, window_bounds = array<i64: 1, 1>}, {transform_indices = @transform_5, window_bounds = array<i64: 2, 16>}]} {
    %c0 = arith.constant 0 : index
    %c0_0 = arith.constant 0 : index
    %0 = vector.load %arg1[%c0, %c0_0] : memref<112x16xf32, #tpu.memory_space<vmem>>, vector<112x16xf32>
    %c0_1 = arith.constant 0 : index
    %c0_2 = arith.constant 0 : index
    %1 = vector.load %arg2[%c0_1, %c0_2] : memref<16x128xf32, #tpu.memory_space<vmem>>, vector<16x128xf32>
    %cst = arith.constant dense<0.000000e+00> : vector<112x128xf32>
    %2 = tpu.matmul %0, %1, %cst {dimension_numbers = #tpu.dot_dimension_numbers<[1], [0], [0], [1], [0, 0, 1, 1], [], []>} : vector<112x16xf32>, vector<16x128xf32>, vector<112x128xf32> -> vector<112x128xf32>
    %3 = vector.shape_cast %2 : vector<112x128xf32> to vector<16x7x128xf32>
    %4 = vector.extract_strided_slice %3 {offsets = [0, 0, 0], sizes = [16, 7, 32], strides = [1, 1, 1]} : vector<16x7x128xf32> to vector<16x7x32xf32>
    %5 = vector.extract_strided_slice %3 {offsets = [0, 0, 32], sizes = [16, 7, 32], strides = [1, 1, 1]} : vector<16x7x128xf32> to vector<16x7x32xf32>
    %6 = vector.extract_strided_slice %3 {offsets = [0, 0, 64], sizes = [16, 7, 32], strides = [1, 1, 1]} : vector<16x7x128xf32> to vector<16x7x32xf32>
    %7 = vector.extract_strided_slice %3 {offsets = [0, 0, 96], sizes = [16, 7, 32], strides = [1, 1, 1]} : vector<16x7x128xf32> to vector<16x7x32xf32>
    %8 = vector.extract_strided_slice %4 {offsets = [0, 0, 0], sizes = [16, 7, 16], strides = [1, 1, 1]} : vector<16x7x32xf32> to vector<16x7x16xf32>
    %9 = vector.extract_strided_slice %5 {offsets = [0, 0, 0], sizes = [16, 7, 16], strides = [1, 1, 1]} : vector<16x7x32xf32> to vector<16x7x16xf32>
    %10 = vector.extract_strided_slice %6 {offsets = [0, 0, 0], sizes = [16, 7, 16], strides = [1, 1, 1]} : vector<16x7x32xf32> to vector<16x7x16xf32>
    "tpu.trace_start"() <{level = 10 : i32, message = "bfa,bga->bfg"}> : () -> ()
    %cst_3 = arith.constant dense<0.000000e+00> : vector<16x7x7xf32>
    %11 = tpu.matmul %8, %9, %cst_3 {dimension_numbers = #tpu.dot_dimension_numbers<[2], [2], [1], [1], [0, 0, 0, 1, 1, 1], [0], [0]>} : vector<16x7x16xf32>, vector<16x7x16xf32>, vector<16x7x7xf32> -> vector<16x7x7xf32>
    "tpu.trace_stop"() : () -> ()
    %cst_4 = arith.constant 2.500000e-01 : f32
    %12 = vector.broadcast %cst_4 : f32 to vector<16x7x7xf32>
    %13 = arith.mulf %11, %12 : vector<16x7x7xf32>
    %cst_5 = arith.constant dense<0xFF800000> : vector<16x7xf32>
    %14 = vector.multi_reduction <maximumf>, %13, %cst_5 [2] : vector<16x7x7xf32> to vector<16x7xf32>
    %15 = vector.shape_cast %14 : vector<16x7xf32> to vector<16x7x1xf32>
    %16 = vector.broadcast %15 : vector<16x7x1xf32> to vector<16x7x7xf32>
    %17 = arith.subf %13, %16 : vector<16x7x7xf32>
    %18 = math.exp %17 : vector<16x7x7xf32>
    %cst_6 = arith.constant dense<0.000000e+00> : vector<16x7xf32>
    %19 = vector.multi_reduction <add>, %18, %cst_6 [2] : vector<16x7x7xf32> to vector<16x7xf32>
    %20 = vector.shape_cast %19 : vector<16x7xf32> to vector<16x7x1xf32>
    %21 = tpu.reciprocal %20 {approx = true} : vector<16x7x1xf32> -> vector<16x7x1xf32>
    %22 = vector.broadcast %21 : vector<16x7x1xf32> to vector<16x7x7xf32>
    %23 = arith.mulf %18, %22 : vector<16x7x7xf32>
    "tpu.trace_start"() <{level = 10 : i32, message = "bfg,bga->bfa"}> : () -> ()
    %cst_7 = arith.constant dense<0.000000e+00> : vector<16x7x16xf32>
    %24 = tpu.matmul %23, %10, %cst_7 {dimension_numbers = #tpu.dot_dimension_numbers<[2], [1], [1], [2], [0, 0, 0, 1, 1, 2], [0], [0]>} : vector<16x7x7xf32>, vector<16x7x16xf32>, vector<16x7x16xf32> -> vector<16x7x16xf32>
    "tpu.trace_stop"() : () -> ()
    %25 = vector.extract_strided_slice %4 {offsets = [0, 0, 16], sizes = [16, 7, 16], strides = [1, 1, 1]} : vector<16x7x32xf32> to vector<16x7x16xf32>
    %26 = vector.extract_strided_slice %5 {offsets = [0, 0, 16], sizes = [16, 7, 16], strides = [1, 1, 1]} : vector<16x7x32xf32> to vector<16x7x16xf32>
    %27 = vector.extract_strided_slice %6 {offsets = [0, 0, 16], sizes = [16, 7, 16], strides = [1, 1, 1]} : vector<16x7x32xf32> to vector<16x7x16xf32>
    "tpu.trace_start"() <{level = 10 : i32, message = "bfa,bga->bfg"}> : () -> ()
    %cst_8 = arith.constant dense<0.000000e+00> : vector<16x7x7xf32>
    %28 = tpu.matmul %25, %26, %cst_8 {dimension_numbers = #tpu.dot_dimension_numbers<[2], [2], [1], [1], [0, 0, 0, 1, 1, 1], [0], [0]>} : vector<16x7x16xf32>, vector<16x7x16xf32>, vector<16x7x7xf32> -> vector<16x7x7xf32>
    "tpu.trace_stop"() : () -> ()
    %cst_9 = arith.constant 2.500000e-01 : f32
    %29 = vector.broadcast %cst_9 : f32 to vector<16x7x7xf32>
    %30 = arith.mulf %28, %29 : vector<16x7x7xf32>
    %cst_10 = arith.constant dense<0xFF800000> : vector<16x7xf32>
    %31 = vector.multi_reduction <maximumf>, %30, %cst_10 [2] : vector<16x7x7xf32> to vector<16x7xf32>
    %32 = vector.shape_cast %31 : vector<16x7xf32> to vector<16x7x1xf32>
    %33 = vector.broadcast %32 : vector<16x7x1xf32> to vector<16x7x7xf32>
    %34 = arith.subf %30, %33 : vector<16x7x7xf32>
    %35 = math.exp %34 : vector<16x7x7xf32>
    %cst_11 = arith.constant dense<0.000000e+00> : vector<16x7xf32>
    %36 = vector.multi_reduction <add>, %35, %cst_11 [2] : vector<16x7x7xf32> to vector<16x7xf32>
    %37 = vector.shape_cast %36 : vector<16x7xf32> to vector<16x7x1xf32>
    %38 = tpu.reciprocal %37 {approx = true} : vector<16x7x1xf32> -> vector<16x7x1xf32>
    %39 = vector.broadcast %38 : vector<16x7x1xf32> to vector<16x7x7xf32>
    %40 = arith.mulf %35, %39 : vector<16x7x7xf32>
    "tpu.trace_start"() <{level = 10 : i32, message = "bfg,bga->bfa"}> : () -> ()
    %cst_12 = arith.constant dense<0.000000e+00> : vector<16x7x16xf32>
    %41 = tpu.matmul %40, %27, %cst_12 {dimension_numbers = #tpu.dot_dimension_numbers<[2], [1], [1], [2], [0, 0, 0, 1, 1, 2], [0], [0]>} : vector<16x7x7xf32>, vector<16x7x16xf32>, vector<16x7x16xf32> -> vector<16x7x16xf32>
    "tpu.trace_stop"() : () -> ()
    %42 = tpu.concatenate %24, %41 in 2 : vector<16x7x16xf32>, vector<16x7x16xf32> -> vector<16x7x32xf32>
    %43 = arith.addf %42, %7 : vector<16x7x32xf32>
    %cst_13 = arith.constant 0.000000e+00 : f32
    %44 = vector.broadcast %cst_13 : f32 to vector<16x7x32xf32>
    %45 = arith.maximumf %43, %44 : vector<16x7x32xf32>
    %46 = vector.shape_cast %45 : vector<16x7x32xf32> to vector<112x32xf32>
    %c0_14 = arith.constant 0 : index
    %c0_15 = arith.constant 0 : index
    %47 = vector.load %arg3[%c0_14, %c0_15] : memref<32x96xf32, #tpu.memory_space<vmem>>, vector<32x96xf32>
    %cst_16 = arith.constant dense<0.000000e+00> : vector<112x96xf32>
    %48 = tpu.matmul %46, %47, %cst_16 {dimension_numbers = #tpu.dot_dimension_numbers<[1], [0], [0], [1], [0, 0, 1, 1], [], []>} : vector<112x32xf32>, vector<32x96xf32>, vector<112x96xf32> -> vector<112x96xf32>
    %49 = vector.shape_cast %48 : vector<112x96xf32> to vector<16x7x96xf32>
    %50 = vector.extract_strided_slice %49 {offsets = [0, 0, 0], sizes = [16, 7, 32], strides = [1, 1, 1]} : vector<16x7x96xf32> to vector<16x7x32xf32>
    %51 = vector.extract_strided_slice %49 {offsets = [0, 0, 32], sizes = [16, 7, 32], strides = [1, 1, 1]} : vector<16x7x96xf32> to vector<16x7x32xf32>
    %52 = vector.extract_strided_slice %49 {offsets = [0, 0, 64], sizes = [16, 7, 32], strides = [1, 1, 1]} : vector<16x7x96xf32> to vector<16x7x32xf32>
    %53 = vector.extract_strided_slice %50 {offsets = [0, 0, 0], sizes = [16, 7, 16], strides = [1, 1, 1]} : vector<16x7x32xf32> to vector<16x7x16xf32>
    %54 = vector.extract_strided_slice %51 {offsets = [0, 0, 0], sizes = [16, 7, 16], strides = [1, 1, 1]} : vector<16x7x32xf32> to vector<16x7x16xf32>
    %55 = vector.extract_strided_slice %52 {offsets = [0, 0, 0], sizes = [16, 7, 16], strides = [1, 1, 1]} : vector<16x7x32xf32> to vector<16x7x16xf32>
    "tpu.trace_start"() <{level = 10 : i32, message = "bfa,bga->bfg"}> : () -> ()
    %cst_17 = arith.constant dense<0.000000e+00> : vector<16x7x7xf32>
    %56 = tpu.matmul %53, %54, %cst_17 {dimension_numbers = #tpu.dot_dimension_numbers<[2], [2], [1], [1], [0, 0, 0, 1, 1, 1], [0], [0]>} : vector<16x7x16xf32>, vector<16x7x16xf32>, vector<16x7x7xf32> -> vector<16x7x7xf32>
    "tpu.trace_stop"() : () -> ()
    %cst_18 = arith.constant 2.500000e-01 : f32
    %57 = vector.broadcast %cst_18 : f32 to vector<16x7x7xf32>
    %58 = arith.mulf %56, %57 : vector<16x7x7xf32>
    %cst_19 = arith.constant dense<0xFF800000> : vector<16x7xf32>
    %59 = vector.multi_reduction <maximumf>, %58, %cst_19 [2] : vector<16x7x7xf32> to vector<16x7xf32>
    %60 = vector.shape_cast %59 : vector<16x7xf32> to vector<16x7x1xf32>
    %61 = vector.broadcast %60 : vector<16x7x1xf32> to vector<16x7x7xf32>
    %62 = arith.subf %58, %61 : vector<16x7x7xf32>
    %63 = math.exp %62 : vector<16x7x7xf32>
    %cst_20 = arith.constant dense<0.000000e+00> : vector<16x7xf32>
    %64 = vector.multi_reduction <add>, %63, %cst_20 [2] : vector<16x7x7xf32> to vector<16x7xf32>
    %65 = vector.shape_cast %64 : vector<16x7xf32> to vector<16x7x1xf32>
    %66 = tpu.reciprocal %65 {approx = true} : vector<16x7x1xf32> -> vector<16x7x1xf32>
    %67 = vector.broadcast %66 : vector<16x7x1xf32> to vector<16x7x7xf32>
    %68 = arith.mulf %63, %67 : vector<16x7x7xf32>
    "tpu.trace_start"() <{level = 10 : i32, message = "bfg,bga->bfa"}> : () -> ()
    %cst_21 = arith.constant dense<0.000000e+00> : vector<16x7x16xf32>
    %69 = tpu.matmul %68, %55, %cst_21 {dimension_numbers = #tpu.dot_dimension_numbers<[2], [1], [1], [2], [0, 0, 0, 1, 1, 2], [0], [0]>} : vector<16x7x7xf32>, vector<16x7x16xf32>, vector<16x7x16xf32> -> vector<16x7x16xf32>
    "tpu.trace_stop"() : () -> ()
    %70 = vector.extract_strided_slice %50 {offsets = [0, 0, 16], sizes = [16, 7, 16], strides = [1, 1, 1]} : vector<16x7x32xf32> to vector<16x7x16xf32>
    %71 = vector.extract_strided_slice %51 {offsets = [0, 0, 16], sizes = [16, 7, 16], strides = [1, 1, 1]} : vector<16x7x32xf32> to vector<16x7x16xf32>
    %72 = vector.extract_strided_slice %52 {offsets = [0, 0, 16], sizes = [16, 7, 16], strides = [1, 1, 1]} : vector<16x7x32xf32> to vector<16x7x16xf32>
    "tpu.trace_start"() <{level = 10 : i32, message = "bfa,bga->bfg"}> : () -> ()
    %cst_22 = arith.constant dense<0.000000e+00> : vector<16x7x7xf32>
    %73 = tpu.matmul %70, %71, %cst_22 {dimension_numbers = #tpu.dot_dimension_numbers<[2], [2], [1], [1], [0, 0, 0, 1, 1, 1], [0], [0]>} : vector<16x7x16xf32>, vector<16x7x16xf32>, vector<16x7x7xf32> -> vector<16x7x7xf32>
    "tpu.trace_stop"() : () -> ()
    %cst_23 = arith.constant 2.500000e-01 : f32
    %74 = vector.broadcast %cst_23 : f32 to vector<16x7x7xf32>
    %75 = arith.mulf %73, %74 : vector<16x7x7xf32>
    %cst_24 = arith.constant dense<0xFF800000> : vector<16x7xf32>
    %76 = vector.multi_reduction <maximumf>, %75, %cst_24 [2] : vector<16x7x7xf32> to vector<16x7xf32>
    %77 = vector.shape_cast %76 : vector<16x7xf32> to vector<16x7x1xf32>
    %78 = vector.broadcast %77 : vector<16x7x1xf32> to vector<16x7x7xf32>
    %79 = arith.subf %75, %78 : vector<16x7x7xf32>
    %80 = math.exp %79 : vector<16x7x7xf32>
    %cst_25 = arith.constant dense<0.000000e+00> : vector<16x7xf32>
    %81 = vector.multi_reduction <add>, %80, %cst_25 [2] : vector<16x7x7xf32> to vector<16x7xf32>
    %82 = vector.shape_cast %81 : vector<16x7xf32> to vector<16x7x1xf32>
    %83 = tpu.reciprocal %82 {approx = true} : vector<16x7x1xf32> -> vector<16x7x1xf32>
    %84 = vector.broadcast %83 : vector<16x7x1xf32> to vector<16x7x7xf32>
    %85 = arith.mulf %80, %84 : vector<16x7x7xf32>
    "tpu.trace_start"() <{level = 10 : i32, message = "bfg,bga->bfa"}> : () -> ()
    %cst_26 = arith.constant dense<0.000000e+00> : vector<16x7x16xf32>
    %86 = tpu.matmul %85, %72, %cst_26 {dimension_numbers = #tpu.dot_dimension_numbers<[2], [1], [1], [2], [0, 0, 0, 1, 1, 2], [0], [0]>} : vector<16x7x7xf32>, vector<16x7x16xf32>, vector<16x7x16xf32> -> vector<16x7x16xf32>
    "tpu.trace_stop"() : () -> ()
    %87 = tpu.concatenate %69, %86 in 2 : vector<16x7x16xf32>, vector<16x7x16xf32> -> vector<16x7x32xf32>
    %88 = arith.addf %87, %45 : vector<16x7x32xf32>
    %cst_27 = arith.constant 0.000000e+00 : f32
    %89 = vector.broadcast %cst_27 : f32 to vector<16x7x32xf32>
    %90 = arith.maximumf %88, %89 : vector<16x7x32xf32>
    %91 = vector.shape_cast %90 : vector<16x7x32xf32> to vector<16x224xf32>
    %c0_28 = arith.constant 0 : index
    %c0_29 = arith.constant 0 : index
    %92 = vector.load %arg4[%c0_28, %c0_29] : memref<1x224xf32, #tpu.memory_space<vmem>>, vector<1x224xf32>
    %93 = vector.broadcast %92 : vector<1x224xf32> to vector<16x224xf32>
    %94 = arith.mulf %91, %93 : vector<16x224xf32>
    %cst_30 = arith.constant dense<0.000000e+00> : vector<16xf32>
    %95 = vector.multi_reduction <add>, %94, %cst_30 [1] : vector<16x224xf32> to vector<16xf32>
    %96 = vector.shape_cast %95 : vector<16xf32> to vector<16x1xf32>
    %c0_31 = arith.constant 0 : index
    %c0_32 = arith.constant 0 : index
    %97 = vector.load %arg5[%c0_31, %c0_32] : memref<1x1xf32, #tpu.memory_space<vmem>>, vector<1x1xf32>
    %98 = vector.broadcast %97 : vector<1x1xf32> to vector<16x1xf32>
    %99 = arith.addf %96, %98 : vector<16x1xf32>
    %100 = vector.shape_cast %99 : vector<16x1xf32> to vector<1x16xf32>
    %101 = arith.negf %100 : vector<1x16xf32>
    %102 = math.exp %101 : vector<1x16xf32>
    %cst_33 = arith.constant 1.000000e+00 : f32
    %103 = vector.broadcast %cst_33 : f32 to vector<1x16xf32>
    %104 = arith.addf %103, %102 : vector<1x16xf32>
    %105 = arith.divf %103, %104 : vector<1x16xf32>
    %106 = tpu.concatenate %100, %105 in 0 : vector<1x16xf32>, vector<1x16xf32> -> vector<2x16xf32>
    %c0_34 = arith.constant 0 : index
    %c0_35 = arith.constant 0 : index
    %107 = vector.load %arg6[%c0_34, %c0_35] : memref<2x16xf32, #tpu.memory_space<vmem>>, vector<2x16xf32>
    tpu.vector_store %arg6[%c0_34, %c0_35], %106 {strides = array<i32>} : memref<2x16xf32, #tpu.memory_space<vmem>>, vector<2x16xf32>,
    return
  }
  func.func @transform_0(%arg0: i32) -> (i32, i32) {
    %c0_i32 = arith.constant 0 : i32
    %c0_i32_0 = arith.constant 0 : i32
    return %arg0, %c0_i32 : i32, i32
  }
  func.func @transform_1(%arg0: i32) -> (i32, i32) {
    %c0_i32 = arith.constant 0 : i32
    %c0_i32_0 = arith.constant 0 : i32
    %c0_i32_1 = arith.constant 0 : i32
    return %c0_i32, %c0_i32_0 : i32, i32
  }
  func.func @transform_2(%arg0: i32) -> (i32, i32) {
    %c0_i32 = arith.constant 0 : i32
    %c0_i32_0 = arith.constant 0 : i32
    %c0_i32_1 = arith.constant 0 : i32
    return %c0_i32, %c0_i32_0 : i32, i32
  }
  func.func @transform_3(%arg0: i32) -> (i32, i32) {
    %c0_i32 = arith.constant 0 : i32
    %c0_i32_0 = arith.constant 0 : i32
    %c0_i32_1 = arith.constant 0 : i32
    return %c0_i32, %c0_i32_0 : i32, i32
  }
  func.func @transform_4(%arg0: i32) -> (i32, i32) {
    %c0_i32 = arith.constant 0 : i32
    %c0_i32_0 = arith.constant 0 : i32
    %c0_i32_1 = arith.constant 0 : i32
    return %c0_i32, %c0_i32_0 : i32, i32
  }
  func.func @transform_5(%arg0: i32) -> (i32, i32) {
    %c0_i32 = arith.constant 0 : i32
    %c0_i32_0 = arith.constant 0 : i32
    return %c0_i32, %arg0 : i32, i32
  }
}

</mosaic_0001>

<bundles_post_ra>
// kernel: tpu_custom_call.1
= control target key start
LH: loop header
LB: loop body
LE: loop exit
PB: predicated region body
PF: predicated region fallthrough
CT: control target
= control target key end

     0   :  { %s20986_s0 = inlined_call_operand.vmem [shape: f32[112,16], index: 0, kind: input, shape index: {}]   ;;  %s20987_s1 = inlined_call_operand.vmem [shape: f32[16,128], index: 1, kind: input, shape index: {}]   ;;  %s20988_s2 = inlined_call_operand.vmem [shape: f32[32,96], index: 2, kind: input, shape index: {}]   ;;  %s20989_s3 = inlined_call_operand.vmem [shape: f32[1,224], index: 3, kind: input, shape index: {}]   ;;  %s20990_s4 = inlined_call_operand.<no memory space> [shape: f32[1,1], index: 4, kind: input, shape index: {}]   ;;  %s20991_s5 = inlined_call_operand.hbm [shape: f32[2,16], index: 5, kind: output, shape index: {}]  }
   0x1   :  { %v10_v0 = vstv %s20990_s4 }
   0x2   :  { %11 = vst [vmem:[#allocation2] sm:$0x1] %v10_v0 }
   0x3   :  { %v38_v1 = vld [vmem:[%s20987_s1 + $0x8] sm:$0xff]  ;;  %v37_v2 = vld [vmem:[%s20987_s1] sm:$0xff]  ;;  %vm39_vm0 = vcmask 130048   ;;  %v25_v5 = vld [vmem:[%s20986_s0 + $0x10] sm:$0xff] }
   0x4   :  { %v23_v3 = vld [vmem:[%s20986_s0] sm:$0xff]  ;;  %16724 = vmatprep.subr.mxu0 %v38_v1  ;;  %v24_v4 = vld [vmem:[%s20986_s0 + $0x8] sm:$0xff] }
   0x5   :  { %16728 = vmatprep.mubr.msk.f32.mxu0 %vm39_vm0, %v23_v3  ;;  %16725 = vmatpush3.msra.mxu0 %v38_v1 }
   0x6   :  { %16726 = vmatprep.subr.mxu0 %v37_v2 }
   0x7   :  { %16727 = vmatpush3.msra.mxu0 %v37_v2 }
   0x8   :  { %16729 = vmatmul.mubr.msk.f32.vlgmr.msra.gmra.mxu0 %vm39_vm0, %v24_v4 }
   0x9   :  { %12 = vsyncpa [#allocation4], 0  ;;  %16731 = vmatprep.mubr.msk.f32.mxu0 %vm39_vm0, %v25_v5  ;;  %v26_v6 = vld [vmem:[%s20986_s0 + $0x18] sm:$0xff]  ;;  %v27_v7 = vld [vmem:[%s20986_s0 + $0x20] sm:$0xff]  ;;  %v17720_v17 = vmov 1966171168   ;;  %v20992_v19 = vlaneseq }
   0xa   :  { %v28_v8 = vld [vmem:[%s20986_s0 + $0x28] sm:$0xff]  ;;  %v29_v9 = vld [vmem:[%s20986_s0 + $0x30] sm:$0xff]  ;;  %v30_v10 = vld [vmem:[%s20986_s0 + $0x38] sm:$0xff]  ;;  %v233_v18 = vunpack.c.l.s4 %v17720_v17  ;;  %vm17723_vm1 = vmmov 0   ;;  %s17724_s25 = smov 64   ;;  %s17725_s26 = smov 80  }
   0xb   :  { %v31_v11 = vld [vmem:[%s20986_s0 + $0x40] sm:$0xff]  ;;  %v32_v12 = vld [vmem:[%s20986_s0 + $0x48] sm:$0xff]  ;;  %v33_v13 = vld [vmem:[%s20986_s0 + $0x50] sm:$0xff]  ;;  %v17830_v21 = vshrl.u32 %v20992_v19, 7  ;;  %vm3100_vm2 = vcmask 1046528   ;;  %vm2917_vm3 = vcmask 55296  }
   0xc   :  { %16732 = vmatmul.mubr.msk.f32.gmra.mxu0 %vm39_vm0, %v26_v6  ;;  %v34_v14 = vld [vmem:[%s20986_s0 + $0x58] sm:$0xff]  ;;  %v35_v15 = vld [vmem:[%s20986_s0 + $0x60] sm:$0xff]  ;;  %v36_v16 = vld [vmem:[%s20986_s0 + $0x68] sm:$0xff]  ;;  %v234_v20 = vunpack.c.0.s8 %v233_v18  ;;  %s17721_s0 = smov 96   ;;  %s17726_s4 = smov 112   ;;  %vm3096_vm4 = vcmask 56320  }
   0xd   :  { %16734 = vmatprep.mubr.msk.f32.mxu0 %vm39_vm0, %v27_v7  ;;  %21013 = vst [vmem:[#allocation6_spill] sm:$0xff] %v17830_v21  ;;  %s17727_s27 = smov 48   ;;  %s17728_s28 = smov 32   ;;  %vm8634_vm5 = vcmask 261120   ;;  %vm16002_vm6 = vcmask 523264   ;;  %vm16005_vm7 = vcmask 785408  }
   0xe   :  { %v17833_v22 = vsub.s32 %v234_v20, %v17830_v21  ;;  %s17729_s1 = smov 16   ;;  %vm16076_vm8 = vcmask 130112   ;;  %vm16097_vm9 = vcmask 1040384   ;;  %vm16099_vm10 = vcmask 123904  }
  0x10   :  { %16735 = vmatmul.mubr.msk.f32.gmra.mxu0 %vm39_vm0, %v28_v8 }
  0x11   :  { %16737 = vmatprep.mubr.msk.f32.mxu0 %vm39_vm0, %v29_v9 }
  0x14   :  { %16738 = vmatmul.mubr.msk.f32.gmra.mxu0 %vm39_vm0, %v30_v10 }
  0x15   :  { %16740 = vmatprep.mubr.msk.f32.mxu0 %vm39_vm0, %v31_v11 }
  0x18   :  { %16741 = vmatmul.mubr.msk.f32.gmra.mxu0 %vm39_vm0, %v32_v12 }
  0x19   :  { %16743 = vmatprep.mubr.msk.f32.mxu0 %vm39_vm0, %v33_v13 }
  0x1c   :  { %16744 = vmatmul.mubr.msk.f32.gmra.mxu0 %vm39_vm0, %v34_v14 }
  0x1d   :  { %16746 = vmatprep.mubr.msk.f32.mxu0 %vm39_vm0, %v35_v15 }
  0x20   :  { %16747 = vmatmul.mubr.msk.f32.gmra.mxu0 %vm39_vm0, %v36_v16 }
  0xc8   :  { %v16730_v23 = vpop.f32.mrf.mxu0 }
  0xc9   :  { %v280_v24 = vcombine.high %v16730_v23, %v16730_v23  ;;  %v287_v25 = vrot.slane %v16730_v23, %v17833_v22 }
  0xca   :  { %v148_v26 = vpop.f32.mrf.mxu0 }
  0xcb   :  { %v294_v27 = vrot.slane %v280_v24, %v17833_v22  ;;  %v295_v28 = vcombine.high %v287_v25, %v287_v25  ;;  %v303_v29 = vrot.slane %v287_v25, %v17833_v22  ;;  %v231_v30 = vcombine.high %v148_v26, %v148_v26 }
  0xcc   :  { %v238_v31 = vrot.slane %v148_v26, %v17833_v22  ;;  %v16733_v32 = vpop.f32.mrf.mxu0 }
  0xcd   :  { %v296_v33 = vcombine.high %v294_v27, %v294_v27  ;;  %v310_v34 = vrot.slane %v294_v27, %v17833_v22  ;;  %v317_v35 = vrot.slane %v295_v28, %v17833_v22  ;;  %v325_v36 = vcombine.high %v303_v29, %v303_v29 }
  0xce   :  { %v245_v37 = vrot.slane %v231_v30, %v17833_v22  ;;  %v246_v38 = vcombine.high %v238_v31, %v238_v31  ;;  %v254_v39 = vrot.slane %v238_v31, %v17833_v22  ;;  %v378_v40 = vcombine.high %v16733_v32, %v16733_v32  ;;  %v158_v0 = vpop.f32.mrf.mxu0 }
  0xcf   :  { %v324_v41 = vrot.slane %v296_v33, %v17833_v22  ;;  %v327_v42 = vcombine.high %v317_v35, %v317_v35  ;;  %v1042_v43 = vcombine.low %v317_v35, %v325_v36  ;;  %v385_v44 = vrot.slane %v16733_v32, %v17833_v22 }
  0xd0   :  { %v247_v45 = vcombine.high %v245_v37, %v245_v37  ;;  %v261_v46 = vrot.slane %v245_v37, %v17833_v22  ;;  %v268_v47 = vrot.slane %v246_v38, %v17833_v22  ;;  %v392_v48 = vrot.slane %v378_v40, %v17833_v22  ;;  %v16736_v32 = vpop.f32.mrf.mxu0 }
  0xd1   :  { %v1043_v49 = vcombine.low %v327_v42, %v310_v34  ;;  %v1057_v50 = vrot.slane %v1042_v43, %v17833_v22  ;;  %v16134_v51 = vcombine.high %v310_v34, %v324_v41  ;;  %v1071_v57 = vrot.slane %v324_v41, %v17833_v22 }
  0xd2   :  { %v275_v52 = vrot.slane %v247_v45, %v17833_v22  ;;  %v277_v53 = vcombine.high %v261_v46, %v261_v46  ;;  %v917_v54 = vcombine.low %v254_v39, %v268_v47  ;;  %v16129_v55 = vcombine.high %v254_v39, %v268_v47 }
  0xd3   :  { %v1064_v56 = vrot.slane %v1043_v49, %v17833_v22  ;;  %v393_v58 = vcombine.high %v385_v44, %v385_v44  ;;  %v394_v59 = vcombine.high %v392_v48, %v392_v48  ;;  %v17855_v1 = vrot.slane %v16134_v51, %v17833_v22 }
  0xd4   :  { %v279_v60 = vcombine.high %v275_v52, %v275_v52  ;;  %v919_v61 = vcombine.low %v261_v46, %v275_v52  ;;  %v926_v62 = vrot.slane %v917_v54, %v17833_v22  ;;  %v933_v63 = vrot.slane %v16129_v55, %v17833_v22 }
  0xd5   :  { %v947_v2 = vrot.slane %v277_v53, %v17833_v22  ;;  %v401_v3 = vrot.slane %v385_v44, %v17833_v22  ;;  %v408_v4 = vrot.slane %v392_v48, %v17833_v22  ;;  %v415_v8 = vrot.slane %v393_v58, %v17833_v22  ;;  %v168_v53 = vpop.f32.mrf.mxu0 }
  0xd6   :  { %v940_v5 = vrot.slane %v919_v61, %v17833_v22  ;;  %v948_v6 = vcombine.low %v926_v62, %v933_v63  ;;  %v1041_v7 = vcombine.low %v279_v60, %v303_v29  ;;  %v1073_v9 = vcombine.low %v1064_v56, %v1071_v57 }
  0xd7   :  { %v422_v10 = vrot.slane %v394_v59, %v17833_v22  ;;  %v423_v11 = vcombine.high %v401_v3, %v401_v3  ;;  %v329_v12 = vcombine.high %v158_v0, %v158_v0  ;;  %v425_v16 = vcombine.high %v415_v8, %v415_v8 }
  0xd8   :  { %v949_v13 = vcombine.low %v940_v5, %v947_v2  ;;  %v956_v14 = vrot.slane %v948_v6, %v17833_v22  ;;  %v1050_v15 = vrot.slane %v1041_v7, %v17833_v22  ;;  %v336_v23 = vrot.slane %v158_v0, %v17833_v22 }
  0xd9   :  { %v1291_v17 = vcombine.low %v415_v8, %v423_v11  ;;  %v1413_v18 = vcombine.low %v408_v4, %v422_v10  ;;  %v16140_v20 = vcombine.high %v408_v4, %v422_v10  ;;  %v1319_v26 = vrot.slane %v425_v16, %v17833_v22 }
  0xda   :  { %v963_v24 = vrot.slane %v949_v13, %v17833_v22  ;;  %v1072_v25 = vcombine.low %v1050_v15, %v1057_v50  ;;  %v343_v27 = vrot.slane %v329_v12, %v17833_v22  ;;  %v344_v31 = vcombine.high %v336_v23, %v336_v23 }
  0xdb   :  { %v1312_v28 = vrot.slane %v1291_v17, %v17833_v22  ;;  %v1422_v29 = vrot.slane %v1413_v18, %v17833_v22  ;;  %v1429_v30 = vrot.slane %v16140_v20, %v17833_v22  ;;  %v1087_v33 = vrot.slane %v1073_v9, %v17833_v22  ;;  %v16739_v18 = vpop.f32.mrf.mxu0 }
  0xdc   :  { %v17873_v34 = vcombine.low %v956_v14, %v963_v24  ;;  %v1080_v35 = vrot.slane %v1072_v25, %v17833_v22  ;;  %v345_v36 = vcombine.high %v343_v27, %v343_v27  ;;  %v352_v38 = vrot.slane %v336_v23, %v17833_v22 }
  0xdd   :  { %v1321_v37 = vcombine.low %v1312_v28, %v1319_v26  ;;  %v359_v39 = vrot.slane %v343_v27, %v17833_v22  ;;  %v366_v40 = vrot.slane %v344_v31, %v17833_v22  ;;  %v1444_v41 = vcombine.low %v1422_v29, %v1429_v30 }
  0xde   :  { %v373_v42 = vrot.slane %v345_v36, %v17833_v22  ;;  %v476_v43 = vcombine.high %v16736_v32, %v16736_v32  ;;  %v483_v44 = vrot.slane %v16736_v32, %v17833_v22  ;;  %965 = vrot.lane.b32.xlu0 %v17873_v34, %s17721_s0  ;;  %v17883_v45 = vcombine.low %v1080_v35, %v1087_v33 }
  0xdf   :  { %v1335_v46 = vrot.slane %v1321_v37, %v17833_v22  ;;  %v375_v47 = vcombine.high %v359_v39, %v359_v39  ;;  %v1166_v48 = vcombine.low %v352_v38, %v366_v40  ;;  %v16135_v50 = vcombine.high %v352_v38, %v366_v40 }
  0xe0   :  { %v377_v49 = vcombine.high %v373_v42, %v373_v42  ;;  %v1195_v51 = vrot.slane %v359_v39, %v17833_v22  ;;  %v490_v52 = vrot.slane %v476_v43, %v17833_v22  ;;  %v491_v56 = vcombine.high %v483_v44, %v483_v44 }
  0xe1   :  { %v1181_v54 = vrot.slane %v1166_v48, %v17833_v22  ;;  %v1289_v55 = vcombine.low %v373_v42, %v375_v47  ;;  %v499_v57 = vrot.slane %v483_v44, %v17833_v22  ;;  %v1188_v58 = vrot.slane %v16135_v50, %v17833_v22 }
  0xe2   :  { %v1290_v59 = vcombine.low %v377_v49, %v401_v3  ;;  %v492_v60 = vcombine.high %v490_v52, %v490_v52  ;;  %v506_v61 = vrot.slane %v490_v52, %v17833_v22  ;;  %1089 = vrot.lane.b32.xlu0 %v17883_v45, %s17721_s0  ;;  %v513_v0 = vrot.slane %v491_v56, %v17833_v22  ;;  %v178_v52 = vpop.f32.mrf.mxu0 }
  0xe3   :  { %v1196_v62 = vcombine.low %v17855_v1, %v1181_v54  ;;  %v1298_v63 = vrot.slane %v1289_v55, %v17833_v22  ;;  %v427_v2 = vcombine.high %v168_v53, %v168_v53  ;;  %v1197_v4 = vcombine.low %v1188_v58, %v1195_v51 }
  0xe4   :  { %v1305_v5 = vrot.slane %v1290_v59, %v17833_v22  ;;  %v520_v6 = vrot.slane %v492_v60, %v17833_v22  ;;  %v434_v3 = vrot.slane %v168_v53, %v17833_v22  ;;  %v1452_v7 = vrot.slane %v1444_v41, %v17833_v22 }
  0xe5   :  { %v1204_v8 = vrot.slane %v1196_v62, %v17833_v22  ;;  %v16145_v9 = vcombine.high %v499_v57, %v513_v0  ;;  %v441_v10 = vrot.slane %v427_v2, %v17833_v22  ;;  %v1211_v1 = vrot.slane %v1197_v4, %v17833_v22 }
  0xe6   :  { %v1320_v11 = vcombine.low %v1298_v63, %v1305_v5  ;;  %v1662_v12 = vcombine.low %v506_v61, %v520_v6  ;;  %v16146_v13 = vcombine.high %v506_v61, %v520_v6  ;;  %v1567_v14 = vrot.slane %v513_v0, %v17833_v22 }
  0xe7   :  { %v442_v15 = vcombine.high %v434_v3, %v434_v3  ;;  %v443_v16 = vcombine.high %v441_v10, %v441_v10  ;;  %v450_v17 = vrot.slane %v434_v3, %v17833_v22  ;;  %v17906_v20 = vcombine.low %v1204_v8, %v1211_v1  ;;  %v16742_v1 = vpop.f32.mrf.mxu0 }
  0xe8   :  { %v1328_v23 = vrot.slane %v1320_v11, %v17833_v22  ;;  %v1670_v24 = vrot.slane %v16145_v9, %v17833_v22  ;;  %v1677_v25 = vrot.slane %v1662_v12, %v17833_v22  ;;  %v457_v26 = vrot.slane %v441_v10, %v17833_v22 }
  0xe9   :  { %v464_v27 = vrot.slane %v442_v15, %v17833_v22  ;;  %v471_v28 = vrot.slane %v443_v16, %v17833_v22  ;;  %v472_v29 = vcombine.high %v450_v17, %v450_v17  ;;  %v17917_v31 = vrot.slane %v16146_v13, %v17833_v22  ;;  %1213 = vrot.lane.b32.xlu1 %v17906_v20, %s17721_s0 }
  0xea   :  { %v17914_v30 = vcombine.low %v1328_v23, %v1335_v46  ;;  %v574_v32 = vcombine.high %v16739_v18, %v16739_v18  ;;  %v581_v33 = vrot.slane %v16739_v18, %v17833_v22  ;;  %v473_v35 = vcombine.high %v457_v26, %v457_v26 }
  0xeb   :  { %v474_v36 = vcombine.high %v464_v27, %v464_v27  ;;  %v475_v37 = vcombine.high %v471_v28, %v471_v28  ;;  %v1415_v38 = vcombine.low %v450_v17, %v464_v27  ;;  %v1692_v39 = vcombine.low %v1670_v24, %v1677_v25 }
  0xec   :  { %v1443_v40 = vrot.slane %v472_v29, %v17833_v22  ;;  %v588_v41 = vrot.slane %v574_v32, %v17833_v22  ;;  %v589_v42 = vcombine.high %v581_v33, %v581_v33  ;;  %v1538_v46 = vcombine.low %v471_v28, %v473_v35 }
  0xed   :  { %v1436_v43 = vrot.slane %v1415_v38, %v17833_v22  ;;  %v1537_v44 = vcombine.low %v474_v36, %v457_v26  ;;  %v1539_v47 = vcombine.low %v475_v37, %v499_v57  ;;  %v597_v49 = vrot.slane %v581_v33, %v17833_v22  ;;  %1337 = vrot.lane.b32.xlu1 %v17914_v30, %s17721_s0 }
  0xee   :  { %v590_v48 = vcombine.high %v588_v41, %v588_v41  ;;  %v604_v50 = vrot.slane %v588_v41, %v17833_v22  ;;  %v611_v51 = vrot.slane %v589_v42, %v17833_v22  ;;  %v1553_v55 = vrot.slane %v1538_v46, %v17833_v22 }
  0xef   :  { %v1445_v53 = vcombine.low %v1436_v43, %v1443_v40  ;;  %v1546_v54 = vrot.slane %v1537_v44, %v17833_v22  ;;  %v1560_v56 = vrot.slane %v1539_v47, %v17833_v22  ;;  %v525_v0 = vcombine.high %v178_v52, %v178_v52 }
  0xf0   :  { %v17934_v57 = vrot.slane %v590_v48, %v17833_v22  ;;  %v620_v58 = vcombine.high %v604_v50, %v604_v50  ;;  %v1909_v59 = vcombine.low %v597_v49, %v611_v51  ;;  %v16151_v60 = vcombine.high %v597_v49, %v611_v51 }
  0xf1   :  { %v1459_v61 = vrot.slane %v1445_v53, %v17833_v22  ;;  %v1568_v62 = vcombine.low %v1546_v54, %v1553_v55  ;;  %v1569_v63 = vcombine.low %v1560_v56, %v1567_v14  ;;  %v532_v10 = vrot.slane %v178_v52, %v17833_v22 }
  0xf2   :  { %v1911_v2 = vcombine.low %v604_v50, %v17934_v57  ;;  %v1918_v4 = vrot.slane %v1909_v59, %v17833_v22  ;;  %v1925_v5 = vrot.slane %v16151_v60, %v17833_v22  ;;  %v1939_v6 = vrot.slane %v620_v58, %v17833_v22  ;;  %v188_v50 = vpop.f32.mrf.mxu0 }
  0xf3   :  { %v17941_v3 = vcombine.low %v1452_v7, %v1459_v61  ;;  %v1576_v8 = vrot.slane %v1568_v62, %v17833_v22  ;;  %v1583_v9 = vrot.slane %v1569_v63, %v17833_v22  ;;  %v539_v13 = vrot.slane %v525_v0, %v17833_v22 }
  0xf4   :  { %v1932_v11 = vrot.slane %v1911_v2, %v17833_v22  ;;  %v1940_v12 = vcombine.low %v1918_v4, %v1925_v5  ;;  %v672_v14 = vcombine.high %v16742_v1, %v16742_v1  ;;  %v540_v16 = vcombine.high %v532_v10, %v532_v10  ;;  %v16745_v2 = vpop.f32.mrf.mxu0 }
  0xf5   :  { %v17948_v15 = vcombine.low %v1576_v8, %v1583_v9  ;;  %v548_v17 = vrot.slane %v532_v10, %v17833_v22  ;;  %v679_v7 = vrot.slane %v16742_v1, %v17833_v22  ;;  %1461 = vrot.lane.b32.xlu0 %v17941_v3, %s17721_s0  ;;  %v1700_v18 = vrot.slane %v1692_v39, %v17833_v22 }
  0xf6   :  { %v1941_v23 = vcombine.low %v1932_v11, %v1939_v6  ;;  %v541_v24 = vcombine.high %v539_v13, %v539_v13  ;;  %v555_v25 = vrot.slane %v539_v13, %v17833_v22  ;;  %v562_v26 = vrot.slane %v540_v16, %v17833_v22 }
  0xf7   :  { %v570_v27 = vcombine.high %v548_v17, %v548_v17  ;;  %v1691_v28 = vrot.slane %v548_v17, %v17833_v22  ;;  %v686_v29 = vrot.slane %v672_v14, %v17833_v22  ;;  %1585 = vrot.lane.b32.xlu1 %v17948_v15, %s17721_s0  ;;  %v1948_v32 = vrot.slane %v1940_v12, %v17833_v22 }
  0xf8   :  { %v569_v33 = vrot.slane %v541_v24, %v17833_v22  ;;  %v571_v35 = vcombine.high %v555_v25, %v555_v25  ;;  %v687_v36 = vcombine.high %v679_v7, %v679_v7  ;;  %v1955_v37 = vrot.slane %v1941_v23, %v17833_v22 }
  0xf9   :  { %v572_v38 = vcombine.high %v562_v26, %v562_v26  ;;  %v1693_v39 = vcombine.low %v17917_v31, %v1691_v28  ;;  %v1785_v40 = vcombine.low %v562_v26, %v570_v27  ;;  %v688_v43 = vcombine.high %v686_v29, %v686_v29 }
  0xfa   :  { %v573_v41 = vcombine.high %v569_v33, %v569_v33  ;;  %v1787_v42 = vcombine.low %v569_v33, %v571_v35  ;;  %v695_v44 = vrot.slane %v679_v7, %v17833_v22  ;;  %v702_v49 = vrot.slane %v686_v29, %v17833_v22 }
  0xfb   :  { %v1707_v46 = vrot.slane %v1693_v39, %v17833_v22  ;;  %v1786_v47 = vcombine.low %v572_v38, %v555_v25  ;;  %v1794_v48 = vrot.slane %v1785_v40, %v17833_v22  ;;  %v709_v31 = vrot.slane %v687_v36, %v17833_v22 }
  0xfc   :  { %v1808_v51 = vrot.slane %v1787_v42, %v17833_v22  ;;  %v1815_v52 = vrot.slane %v573_v41, %v17833_v22  ;;  %v17972_v53 = vcombine.low %v1948_v32, %v1955_v37  ;;  %v17978_v58 = vrot.slane %v688_v43, %v17833_v22 }
  0xfd   :  { %v17974_v54 = vcombine.low %v1700_v18, %v1707_v46  ;;  %v1801_v55 = vrot.slane %v1786_v47, %v17833_v22  ;;  %v718_v59 = vcombine.high %v702_v49, %v702_v49  ;;  %v16157_v60 = vcombine.high %v695_v44, %v709_v31 }
  0xfe   :  { %v1817_v56 = vcombine.low %v1808_v51, %v1815_v52  ;;  %v2187_v62 = vrot.slane %v702_v49, %v17833_v22  ;;  %v623_v63 = vcombine.high %v188_v50, %v188_v50  ;;  %v630_v0 = vrot.slane %v188_v50, %v17833_v22  ;;  %v198_v51 = vpop.f32.mrf.mxu0 }
  0xff   :  { %v1816_v61 = vcombine.low %v1794_v48, %v1801_v55  ;;  %1709 = vrot.lane.b32.xlu0 %v17974_v54, %s17721_s0  ;;  %v2180_v5 = vrot.slane %v16157_v60, %v17833_v22  ;;  %v622_v6 = vcombine.high %v17934_v57, %v17934_v57  ;;  %v770_v8 = vcombine.high %v16745_v2, %v16745_v2 }
 0x100   :  { %v1831_v4 = vrot.slane %v1817_v56, %v17833_v22  ;;  %v2158_v10 = vcombine.low %v695_v44, %v709_v31  ;;  %v637_v1 = vrot.slane %v623_v63, %v17833_v22  ;;  %v638_v11 = vcombine.high %v630_v0, %v630_v0  ;;  %v16748_v63 = vpop.f32.mrf.mxu0 }
 0x101   :  { %v1824_v9 = vrot.slane %v1816_v61, %v17833_v22  ;;  %v17991_v12 = vcombine.low %v17978_v58, %v718_v59  ;;  %v646_v13 = vrot.slane %v630_v0, %v17833_v22  ;;  %v777_v14 = vrot.slane %v16745_v2, %v17833_v22 }
 0x102   :  { %v784_v16 = vrot.slane %v770_v8, %v17833_v22  ;;  %v639_v7 = vcombine.high %v637_v1, %v637_v1  ;;  %v653_v57 = vrot.slane %v637_v1, %v17833_v22  ;;  %v660_v18 = vrot.slane %v638_v11, %v17833_v22 }
 0x103   :  { %v17996_v17 = vcombine.low %v1824_v9, %v1831_v4  ;;  %1957 = vrot.lane.b32.xlu0 %v17972_v53, %s17721_s0  ;;  %v2189_v23 = vcombine.low %v2180_v5, %v2187_v62  ;;  %v668_v24 = vcombine.high %v646_v13, %v646_v13  ;;  %v2033_v25 = vcombine.low %v622_v6, %v646_v13 }
 0x104   :  { %v785_v26 = vcombine.high %v777_v14, %v777_v14  ;;  %v667_v27 = vrot.slane %v639_v7, %v17833_v22  ;;  %v670_v28 = vcombine.high %v660_v18, %v660_v18  ;;  %v786_v29 = vcombine.high %v784_v16, %v784_v16 }
 0x105   :  { %v793_v32 = vrot.slane %v777_v14, %v17833_v22  ;;  %1833 = vrot.lane.b32.xlu1 %v17996_v17, %s17721_s0  ;;  %v2034_v33 = vcombine.low %v660_v18, %v668_v24  ;;  %v2042_v35 = vrot.slane %v2033_v25, %v17833_v22  ;;  %v800_v36 = vrot.slane %v784_v16, %v17833_v22 }
 0x106   :  { %v807_v37 = vrot.slane %v785_v26, %v17833_v22  ;;  %v2035_v38 = vcombine.low %v670_v28, %v653_v57  ;;  %v2063_v39 = vrot.slane %v667_v27, %v17833_v22  ;;  %v16156_v40 = vcombine.high %v653_v57, %v667_v27  ;;  %v208_v57 = vpop.f32.mrf.mxu0 }
 0x107   :  { %v18011_v41 = vrot.slane %v786_v29, %v17833_v22  ;;  %v2049_v42 = vrot.slane %v2034_v33, %v17833_v22  ;;  %v815_v43 = vcombine.high %v793_v32, %v793_v32  ;;  %v816_v44 = vcombine.high %v800_v36, %v800_v36 }
 0x108   :  { %v817_v46 = vcombine.high %v807_v37, %v807_v37  ;;  %v2173_v47 = vrot.slane %v2158_v10, %v17833_v22  ;;  %v2056_v48 = vrot.slane %v2035_v38, %v17833_v22  ;;  %v2166_v49 = vrot.slane %v16156_v40, %v17833_v22 }
 0x109   :  { %v2407_v50 = vcombine.low %v793_v32, %v807_v37  ;;  %v2064_v52 = vcombine.low %v2042_v35, %v2049_v42  ;;  %v2435_v31 = vrot.slane %v815_v43, %v17833_v22  ;;  %v18021_v56 = vcombine.low %v18011_v41, %v816_v44 }
 0x10a   :  { %v18018_v55 = vcombine.low %v817_v46, %v800_v36  ;;  %v2065_v59 = vcombine.low %v2056_v48, %v2063_v39  ;;  %v2188_v60 = vcombine.low %v2166_v49, %v2173_v47  ;;  %v721_v62 = vcombine.high %v198_v51, %v198_v51 }
 0x10b   :  { %v2428_v61 = vrot.slane %v2407_v50, %v17833_v22  ;;  %v2203_v0 = vrot.slane %v2189_v23, %v17833_v22  ;;  %v2290_v2 = vrot.slane %v17991_v12, %v17833_v22  ;;  %v720_v4 = vcombine.high %v17978_v58, %v17978_v58 }
 0x10c   :  { %v728_v5 = vrot.slane %v198_v51, %v17833_v22  ;;  %v2072_v6 = vrot.slane %v2064_v52, %v17833_v22  ;;  %v2079_v8 = vrot.slane %v2065_v59, %v17833_v22  ;;  %v2196_v9 = vrot.slane %v2188_v60, %v17833_v22 }
 0x10d   :  { %v735_v10 = vrot.slane %v721_v62, %v17833_v22  ;;  %v2437_v1 = vcombine.low %v2428_v61, %v2435_v31  ;;  %v868_v14 = vcombine.high %v16748_v63, %v16748_v63  ;;  %v2538_v58 = vrot.slane %v18018_v55, %v17833_v22 }
 0x10e   :  { %v736_v11 = vcombine.high %v728_v5, %v728_v5  ;;  %v744_v13 = vrot.slane %v728_v5, %v17833_v22  ;;  %v18035_v16 = vcombine.low %v2072_v6, %v2079_v8  ;;  %v2545_v12 = vrot.slane %v18021_v56, %v17833_v22 }
 0x10f   :  { %v737_v7 = vcombine.high %v735_v10, %v735_v10  ;;  %v18041_v18 = vcombine.low %v2196_v9, %v2203_v0  ;;  %v751_v23 = vrot.slane %v735_v10, %v17833_v22  ;;  %v875_v28 = vrot.slane %v16748_v63, %v17833_v22 }
 0x110   :  { %v758_v24 = vrot.slane %v736_v11, %v17833_v22  ;;  %v766_v25 = vcombine.high %v744_v13, %v744_v13  ;;  %v2282_v27 = vcombine.low %v720_v4, %v744_v13  ;;  %v882_v29 = vrot.slane %v868_v14, %v17833_v22  ;;  %2081 = vrot.lane.b32.xlu1 %v18035_v16, %s17721_s0 }
 0x111   :  { %v765_v26 = vrot.slane %v737_v7, %v17833_v22  ;;  %v2451_v32 = vrot.slane %v2437_v1, %v17833_v22  ;;  %v819_v36 = vcombine.high %v208_v57, %v208_v57  ;;  %2205 = vrot.lane.b32.xlu0 %v18041_v18, %s17721_s0  ;;  %v883_v40 = vcombine.high %v875_v28, %v875_v28 }
 0x112   :  { %v768_v33 = vcombine.high %v758_v24, %v758_v24  ;;  %v2283_v35 = vcombine.low %v758_v24, %v766_v25  ;;  %v2297_v37 = vrot.slane %v2282_v27, %v17833_v22  ;;  %v884_v44 = vcombine.high %v882_v29, %v882_v29 }
 0x113   :  { %v2405_v38 = vcombine.low %v751_v23, %v765_v26  ;;  %v16162_v39 = vcombine.high %v751_v23, %v765_v26  ;;  %v891_v46 = vrot.slane %v875_v28, %v17833_v22  ;;  %v898_v50 = vrot.slane %v882_v29, %v17833_v22 }
 0x114   :  { %v2304_v42 = vrot.slane %v2283_v35, %v17833_v22  ;;  %v2311_v43 = vrot.slane %v768_v33, %v17833_v22  ;;  %v2312_v47 = vcombine.low %v2290_v2, %v2297_v37  ;;  %v905_v52 = vrot.slane %v883_v40, %v17833_v22 }
 0x115   :  { %v2414_v48 = vrot.slane %v2405_v38, %v17833_v22  ;;  %v2421_v49 = vrot.slane %v16162_v39, %v17833_v22  ;;  %v912_v31 = vrot.slane %v884_v44, %v17833_v22  ;;  %v913_v56 = vcombine.high %v891_v46, %v891_v46 }
 0x116   :  { %v2313_v51 = vcombine.low %v2304_v42, %v2311_v43  ;;  %v2320_v59 = vrot.slane %v2312_v47, %v17833_v22  ;;  %v914_v61 = vcombine.high %v898_v50, %v898_v50  ;;  %v818_v62 = vcombine.high %v18011_v41, %v18011_v41 }
 0x117   :  { %v2436_v60 = vcombine.low %v2414_v48, %v2421_v49  ;;  %v915_v0 = vcombine.high %v905_v52, %v905_v52  ;;  %v916_v2 = vcombine.high %v912_v31, %v912_v31  ;;  %v2777_v4 = vcombine.low %v905_v52, %v913_v56 }
 0x118   :  { %v2327_v63 = vrot.slane %v2313_v51, %v17833_v22  ;;  %v2779_v6 = vcombine.low %v912_v31, %v914_v61  ;;  %v826_v8 = vrot.slane %v208_v57, %v17833_v22  ;;  %v833_v9 = vrot.slane %v819_v36, %v17833_v22 }
 0x119   :  { %v2444_v5 = vrot.slane %v2436_v60, %v17833_v22  ;;  %v2778_v1 = vcombine.low %v915_v0, %v898_v50  ;;  %v2786_v11 = vrot.slane %v2777_v4, %v17833_v22  ;;  %v2807_v13 = vrot.slane %v916_v2, %v17833_v22 }
 0x11a   :  { %v18069_v10 = vcombine.low %v2320_v59, %v2327_v63  ;;  %v2800_v14 = vrot.slane %v2779_v6, %v17833_v22  ;;  %v834_v7 = vcombine.high %v826_v8, %v826_v8  ;;  %v835_v23 = vcombine.high %v833_v9, %v833_v9 }
 0x11b   :  { %v18073_v41 = vcombine.low %v2444_v5, %v2451_v32  ;;  %v2793_v24 = vrot.slane %v2778_v1, %v17833_v22  ;;  %v842_v25 = vrot.slane %v826_v8, %v17833_v22  ;;  %v849_v57 = vrot.slane %v833_v9, %v17833_v22 }
 0x11c   :  { %2329 = vrot.lane.b32.xlu1 %v18069_v10, %s17721_s0  ;;  %v856_v26 = vrot.slane %v834_v7, %v17833_v22  ;;  %v863_v27 = vrot.slane %v835_v23, %v17833_v22  ;;  %v20993_v28 = vmov 0.0   ;;  %v2560_v29 = vcombine.low %v2538_v58, %v2545_v12 }
 0x11d   :  { %2453 = vrot.lane.b32.xlu0 %v18073_v41, %s17721_s0  ;;  %16749 = vmatprep.subr.mxu1 %v20993_v28  ;;  %v2531_v32 = vcombine.low %v818_v62, %v842_v25  ;;  %v2683_v33 = vrot.slane %v891_v46, %v17833_v22  ;;  %v2808_v38 = vcombine.low %v2786_v11, %v2793_v24 }
 0x11e   :  { %16751 = vmatprep.mubr.msk.f32.mxu1 %vm17723_vm1, %v20993_v28  ;;  %16784 = vmatprep.subr.mxu0 %v20993_v28  ;;  %v2559_v35 = vrot.slane %v856_v26, %v17833_v22  ;;  %v16167_v36 = vcombine.high %v842_v25, %v856_v26  ;;  %v2654_v37 = vcombine.low %v849_v57, %v863_v27 }
 0x11f   :  { %16786 = vmatprep.mubr.msk.f32.mxu0 %vm17723_vm1, %v20993_v28  ;;  %v2809_v39 = vcombine.low %v2800_v14, %v2807_v13  ;;  %v2552_v55 = vrot.slane %v2531_v32, %v17833_v22  ;;  %v16168_v58 = vcombine.high %v849_v57, %v863_v27  ;;  %v2568_v42 = vrot.slane %v2560_v29, %v17833_v22 }
 0x120   :  { %v2662_v12 = vrot.slane %v16167_v36, %v17833_v22  ;;  %v2669_v40 = vrot.slane %v2654_v37, %v17833_v22  ;;  %v2816_v47 = vrot.slane %v2808_v38, %v17833_v22 }
 0x121   :  { %v2561_v43 = vcombine.low %v2552_v55, %v2559_v35  ;;  %v2676_v44 = vrot.slane %v16168_v58, %v17833_v22  ;;  %v2823_v48 = vrot.slane %v2809_v39, %v17833_v22 }
 0x122   :  { %v2684_v46 = vcombine.low %v2662_v12, %v2669_v40 }
 0x123   :  { %v2575_v49 = vrot.slane %v2561_v43, %v17833_v22  ;;  %v2685_v50 = vcombine.low %v2676_v44, %v2683_v33  ;;  %v18108_v56 = vcombine.low %v2816_v47, %v2823_v48 }
 0x124   :  { %v2692_v51 = vrot.slane %v2684_v46, %v17833_v22 }
 0x125   :  { %v18105_v52 = vcombine.low %v2568_v42, %v2575_v49  ;;  %v2699_v31 = vrot.slane %v2685_v50, %v17833_v22 }
 0x127   :  { %v18110_v59 = vcombine.low %v2692_v51, %v2699_v31  ;;  %2577 = vrot.lane.b32.xlu1 %v18105_v52, %s17721_s0 }
 0x129   :  { %2701 = vrot.lane.b32.xlu0 %v18110_v59, %s17721_s0 }
 0x12b   :  { %2825 = vrot.lane.b32.xlu1 %v18108_v56, %s17721_s0 }
 0x12d   :  { %3173 = vrot.lane.b32.xlu0 %v17883_v45, %s17724_s25 }
 0x12f   :  { %3094 = vrot.lane.b32.xlu1 %v17873_v34, %s17724_s25 }
 0x131   :  { %3250 = vrot.lane.b32.xlu0 %v17906_v20, %s17724_s25 }
 0x133   :  { %3789 = vrot.lane.b32.xlu1 %v18035_v16, %s17724_s25 }
 0x135   :  { %3327 = vrot.lane.b32.xlu0 %v17914_v30, %s17724_s25 }
 0x137   :  { %4330 = vrot.lane.b32.xlu1 %v17873_v34, %s17725_s26 }
 0x139   :  { %3404 = vrot.lane.b32.xlu0 %v17941_v3, %s17724_s25 }
 0x13b   :  { %4174 = vrot.lane.b32.xlu1 %v18110_v59, %s17724_s25 }
 0x13d   :  { %3481 = vrot.lane.b32.xlu0 %v17948_v15, %s17724_s25 }
 0x141   :  { %3558 = vrot.lane.b32.xlu0 %v17974_v54, %s17724_s25 }
 0x145   :  { %3635 = vrot.lane.b32.xlu0 %v17996_v17, %s17724_s25 }
 0x149   :  { %3712 = vrot.lane.b32.xlu0 %v17972_v53, %s17724_s25 }
 0x14d   :  { %3866 = vrot.lane.b32.xlu0 %v18041_v18, %s17724_s25 }
 0x150   :  { %v966_v60 = vpop.permute.xlu0 %965 }
 0x151   :  { %16750 = vmatpush3.xpose.msk.msra.mxu1 %vm39_vm0, %v966_v60  ;;  %3943 = vrot.lane.b32.xlu0 %v18069_v10, %s17724_s25 }
 0x152   :  { %16754 = vmatprep.subr.mxu1 %v20993_v28 }
 0x154   :  { %16752 = vmatmul.mubr.msk.f32.vlgmr.msra.gmra.mxu1 %vm39_vm0, %v17873_v34  ;;  %v1090_v61 = vpop.permute.xlu0 %1089 }
 0x155   :  { %16755 = vmatpush3.xpose.msk.msra.mxu1 %vm39_vm0, %v1090_v61  ;;  %16756 = vmatprep.mubr.msk.f32.mxu1 %vm17723_vm1, %v20993_v28 }
 0x156   :  { %4020 = vrot.lane.b32.xlu0 %v18073_v41, %s17724_s25  ;;  %16759 = vmatprep.subr.mxu1 %v20993_v28 }
 0x158   :  { %16757 = vmatmul.mubr.msk.f32.vlgmr.msra.gmra.mxu1 %vm39_vm0, %v17883_v45 }
 0x159   :  { %16761 = vmatprep.mubr.msk.f32.mxu1 %vm17723_vm1, %v20993_v28 }
 0x15a   :  { %4097 = vrot.lane.b32.xlu0 %v18105_v52, %s17724_s25 }
 0x15b   :  { %v1214_v62 = vpop.permute.xlu1 %1213 }
 0x15c   :  { %16760 = vmatpush3.xpose.msk.msra.mxu1 %vm39_vm0, %v1214_v62 }
 0x15d   :  { %16764 = vmatprep.subr.mxu1 %v20993_v28 }
 0x15e   :  { %4251 = vrot.lane.b32.xlu0 %v18108_v56, %s17724_s25 }
 0x15f   :  { %v1338_v63 = vpop.permute.xlu1 %1337  ;;  %16762 = vmatmul.mubr.msk.f32.vlgmr.msra.gmra.mxu1 %vm39_vm0, %v17906_v20 }
 0x160   :  { %16765 = vmatpush3.xpose.msk.msra.mxu1 %vm39_vm0, %v1338_v63  ;;  %16766 = vmatprep.mubr.msk.f32.mxu1 %vm17723_vm1, %v20993_v28 }
 0x161   :  { %16769 = vmatprep.subr.mxu1 %v20993_v28 }
 0x162   :  { %4408 = vrot.lane.b32.xlu0 %v17883_v45, %s17725_s26 }
 0x163   :  { %16767 = vmatmul.mubr.msk.f32.vlgmr.msra.gmra.mxu1 %vm39_vm0, %v17914_v30 }
 0x164   :  { %16771 = vmatprep.mubr.msk.f32.mxu1 %vm17723_vm1, %v20993_v28 }
 0x167   :  { %v1462_v0 = vpop.permute.xlu0 %1461 }
 0x168   :  { %16770 = vmatpush3.xpose.msk.msra.mxu1 %vm39_vm0, %v1462_v0 }
 0x169   :  { %16774 = vmatprep.subr.mxu1 %v20993_v28  ;;  %v1586_v2 = vpop.permute.xlu1 %1585 }
 0x16b   :  { %16772 = vmatmul.mubr.msk.f32.vlgmr.msra.gmra.mxu1 %vm39_vm0, %v17941_v3 }
 0x16c   :  { %16775 = vmatpush3.xpose.msk.msra.mxu1 %vm39_vm0, %v1586_v2  ;;  %16776 = vmatprep.mubr.msk.f32.mxu1 %vm17723_vm1, %v20993_v28 }
 0x16d   :  { %16779 = vmatprep.subr.mxu1 %v20993_v28 }
 0x16f   :  { %16777 = vmatmul.mubr.msk.f32.vlgmr.msra.gmra.mxu1 %vm39_vm0, %v17948_v15 }
 0x170   :  { %16781 = vmatprep.mubr.msk.f32.mxu1 %vm17723_vm1, %v20993_v28 }
 0x171   :  { %v1710_v4 = vpop.permute.xlu0 %1709 }
 0x172   :  { %16780 = vmatpush3.xpose.msk.msra.mxu1 %vm39_vm0, %v1710_v4 }
 0x173   :  { %16789 = vmatprep.subr.mxu1 %v20993_v28 }
 0x175   :  { %v1958_v5 = vpop.permute.xlu0 %1957  ;;  %16782 = vmatmul.mubr.msk.f32.vlgmr.msra.gmra.mxu1 %vm39_vm0, %v17974_v54 }
 0x176   :  { %16790 = vmatpush3.xpose.msk.msra.mxu1 %vm39_vm0, %v1958_v5  ;;  %16791 = vmatprep.mubr.msk.f32.mxu1 %vm17723_vm1, %v20993_v28 }
 0x177   :  { %v1834_v6 = vpop.permute.xlu1 %1833  ;;  %16799 = vmatprep.subr.mxu1 %v20993_v28 }
 0x178   :  { %16785 = vmatpush3.xpose.msk.msra.mxu0 %vm39_vm0, %v1834_v6 }
 0x179   :  { %16794 = vmatprep.subr.mxu0 %v20993_v28  ;;  %16792 = vmatmul.mubr.msk.f32.vlgmr.msra.gmra.mxu1 %vm39_vm0, %v17972_v53 }
 0x17a   :  { %16801 = vmatprep.mubr.msk.f32.mxu1 %vm17723_vm1, %v20993_v28 }
 0x17b   :  { %16787 = vmatmul.mubr.msk.f32.vlgmr.msra.gmra.mxu0 %vm39_vm0, %v17996_v17 }
 0x17c   :  { %16796 = vmatprep.mubr.msk.f32.mxu0 %vm17723_vm1, %v20993_v28 }
 0x182   :  { %v2082_v8 = vpop.permute.xlu1 %2081 }
 0x183   :  { %16795 = vmatpush3.xpose.msk.msra.mxu0 %vm39_vm0, %v2082_v8  ;;  %v2206_v9 = vpop.permute.xlu0 %2205 }
 0x184   :  { %16804 = vmatprep.subr.mxu0 %v20993_v28  ;;  %16800 = vmatpush3.xpose.msk.msra.mxu1 %vm39_vm0, %v2206_v9 }
 0x185   :  { %16809 = vmatprep.subr.mxu1 %v20993_v28 }
 0x186   :  { %16797 = vmatmul.mubr.msk.f32.vlgmr.msra.gmra.mxu0 %vm39_vm0, %v18035_v16 }
 0x187   :  { %16806 = vmatprep.mubr.msk.f32.mxu0 %vm17723_vm1, %v20993_v28  ;;  %16802 = vmatmul.mubr.msk.f32.vlgmr.msra.gmra.mxu1 %vm39_vm0, %v18041_v18 }
 0x188   :  { %16811 = vmatprep.mubr.msk.f32.mxu1 %vm17723_vm1, %v20993_v28 }
 0x18e   :  { %v2330_v1 = vpop.permute.xlu1 %2329 }
 0x18f   :  { %16805 = vmatpush3.xpose.msk.msra.mxu0 %vm39_vm0, %v2330_v1  ;;  %v2454_v11 = vpop.permute.xlu0 %2453 }
 0x190   :  { %16814 = vmatprep.subr.mxu0 %v20993_v28  ;;  %16810 = vmatpush3.xpose.msk.msra.mxu1 %vm39_vm0, %v2454_v11 }
 0x191   :  { %16819 = vmatprep.subr.mxu1 %v20993_v28 }
 0x192   :  { %16807 = vmatmul.mubr.msk.f32.vlgmr.msra.gmra.mxu0 %vm39_vm0, %v18069_v10 }
 0x193   :  { %16816 = vmatprep.mubr.msk.f32.mxu0 %vm17723_vm1, %v20993_v28  ;;  %16812 = vmatmul.mubr.msk.f32.vlgmr.msra.gmra.mxu1 %vm39_vm0, %v18073_v41 }
 0x194   :  { %16821 = vmatprep.mubr.msk.f32.mxu1 %vm17723_vm1, %v20993_v28 }
 0x199   :  { %v2578_v13 = vpop.permute.xlu1 %2577 }
 0x19a   :  { %16815 = vmatpush3.xpose.msk.msra.mxu0 %vm39_vm0, %v2578_v13 }
 0x19b   :  { %v2702_v14 = vpop.permute.xlu0 %2701  ;;  %16824 = vmatprep.subr.mxu0 %v20993_v28 }
 0x19c   :  { %16820 = vmatpush3.xpose.msk.msra.mxu1 %vm39_vm0, %v2702_v14 }
 0x19d   :  { %16817 = vmatmul.mubr.msk.f32.vlgmr.msra.gmra.mxu0 %vm39_vm0, %v18105_v52  ;;  %v2826_v7 = vpop.permute.xlu1 %2825  ;;  %16829 = vmatprep.subr.mxu1 %v20993_v28 }
 0x19e   :  { %16825 = vmatpush3.xpose.msk.msra.mxu0 %vm39_vm0, %v2826_v7  ;;  %16826 = vmatprep.mubr.msk.f32.mxu0 %vm17723_vm1, %v20993_v28 }
 0x19f   :  { %16834 = vmatprep.subr.mxu0 %v20993_v28  ;;  %16822 = vmatmul.mubr.msk.f32.vlgmr.msra.gmra.mxu1 %vm39_vm0, %v18110_v59  ;;  %v3174_v23 = vpop.permute.xlu0 %3173 }
 0x1a0   :  { %16831 = vmatprep.mubr.msk.f32.mxu1 %vm17723_vm1, %v20993_v28 }
 0x1a1   :  { %16827 = vmatmul.mubr.msk.f32.vlgmr.msra.gmra.mxu0 %vm39_vm0, %v18108_v56  ;;  %v3095_v24 = vpop.permute.xlu1 %3094 }
 0x1a2   :  { %16835 = vmatpush3.msk.msra.mxu0 %vm3100_vm2, %v3174_v23  ;;  %16830 = vmatpush3.msk.msra.mxu1 %vm3100_vm2, %v3095_v24 }
 0x1a3   :  { %16839 = vmatprep.subr.mxu1 %v20993_v28  ;;  %16836 = vmatprep.mubr.msk.f32.mxu0 %vm17723_vm1, %v20993_v28 }
 0x1a4   :  { %16844 = vmatprep.subr.mxu0 %v20993_v28 }
 0x214   :  { %v1037_v25 = vpop.f32.mrf.mxu1 }
 0x215   :  { %v18254_v57 = vmul.f32 0.25, %v1037_v25 }
 0x216   :  { %v16753_v26 = vpop.f32.mrf.mxu1 }
 0x217   :  { %v2918_v27 = vsel %vm2917_vm3, %v18254_v57, -inf }
 0x218   :  { %v1161_v29 = vpop.f32.mrf.mxu1  ;;  %2919 = vmax.xlane.f32.xlu0 %v2918_v27 }
 0x219   :  { %v18258_v32 = vmul.f32 0.25, %v1161_v29 }
 0x21a   :  { %v16758_v33 = vpop.f32.mrf.mxu1 }
 0x21b   :  { %v2921_v35 = vsel %vm2917_vm3, %v18258_v32, -inf }
 0x21c   :  { %2922 = vmax.xlane.f32.xlu1 %v2921_v35  ;;  %v18302_v35 = vpop.permute.xlu0 %3250 }
 0x21f   :  { %v1285_v36 = vpop.f32.mrf.mxu1 }
 0x220   :  { %v18262_v37 = vmul.f32 0.25, %v1285_v36 }
 0x221   :  { %v16763_v38 = vpop.f32.mrf.mxu1 }
 0x222   :  { %v2924_v39 = vsel %vm2917_vm3, %v18262_v37, -inf }
 0x223   :  { %v1409_v55 = vpop.f32.mrf.mxu1  ;;  %2925 = vmax.xlane.f32.xlu0 %v2924_v39 }
 0x224   :  { %v18266_v58 = vmul.f32 0.25, %v1409_v55  ;;  %v18308_v55 = vpop.permute.xlu0 %3327 }
 0x225   :  { %v16768_v12 = vpop.f32.mrf.mxu1 }
 0x226   :  { %v2927_v40 = vsel %vm2917_vm3, %v18266_v58, -inf }
 0x227   :  { %2928 = vmax.xlane.f32.xlu0 %v2927_v40 }
 0x22b   :  { %v1533_v42 = vpop.f32.mrf.mxu1 }
 0x22c   :  { %v18270_v43 = vmul.f32 0.25, %v1533_v42 }
 0x22d   :  { %v16773_v44 = vpop.f32.mrf.mxu1 }
 0x22e   :  { %v2930_v46 = vsel %vm2917_vm3, %v18270_v43, -inf }
 0x22f   :  { %v1657_v47 = vpop.f32.mrf.mxu1  ;;  %2931 = vmax.xlane.f32.xlu1 %v2930_v46  ;;  %v18312_v46 = vpop.permute.xlu0 %3404 }
 0x230   :  { %v18290_v13 = vmul.f32 0.25, %v1657_v47 }
 0x231   :  { %v16778_v48 = vpop.f32.mrf.mxu1 }
 0x232   :  { %v2933_v24 = vsel %vm2917_vm3, %v18290_v13, -inf }
 0x235   :  { %v1781_v49 = vpop.f32.mrf.mxu1 }
 0x236   :  { %v18274_v50 = vmul.f32 0.25, %v1781_v49 }
 0x237   :  { %v16783_v51 = vpop.f32.mrf.mxu1 }
 0x238   :  { %v2936_v31 = vsel %vm2917_vm3, %v18274_v50, -inf }
 0x239   :  { %v2029_v60 = vpop.f32.mrf.mxu1  ;;  %2937 = vmax.xlane.f32.xlu1 %v2936_v31 }
 0x23a   :  { %v18278_v61 = vmul.f32 0.25, %v2029_v60 }
 0x23b   :  { %v1905_v62 = vpop.f32.mrf.mxu0  ;;  %v16793_v63 = vpop.f32.mrf.mxu1 }
 0x23c   :  { %v18280_v0 = vmul.f32 0.25, %v1905_v62  ;;  %v2942_v2 = vsel %vm2917_vm3, %v18278_v61, -inf }
 0x23d   :  { %v16788_v4 = vpop.f32.mrf.mxu0  ;;  %2943 = vmax.xlane.f32.xlu1 %v2942_v2  ;;  %v18324_v2 = vpop.permute.xlu0 %3481 }
 0x23e   :  { %v2939_v5 = vsel %vm2917_vm3, %v18280_v0, -inf }
 0x23f   :  { %2940 = vmax.xlane.f32.xlu0 %v2939_v5 }
 0x241   :  { %v18326_v4 = vpop.permute.xlu0 %3558 }
 0x245   :  { %v18328_v5 = vpop.permute.xlu0 %3635 }
 0x246   :  { %v2153_v6 = vpop.f32.mrf.mxu0 }
 0x247   :  { %v18286_v8 = vmul.f32 0.25, %v2153_v6  ;;  %v2277_v9 = vpop.f32.mrf.mxu1 }
 0x248   :  { %v16798_v1 = vpop.f32.mrf.mxu0  ;;  %v18288_v11 = vmul.f32 0.25, %v2277_v9 }
 0x249   :  { %v2945_v14 = vsel %vm2917_vm3, %v18286_v8, -inf  ;;  %v16803_v7 = vpop.f32.mrf.mxu1  ;;  %v18332_v6 = vpop.permute.xlu0 %3712 }
 0x24a   :  { %2946 = vmax.xlane.f32.xlu0 %v2945_v14  ;;  %v2948_v23 = vsel %vm2917_vm3, %v18288_v11, -inf }
 0x24b   :  { %2949 = vmax.xlane.f32.xlu1 %v2948_v23  ;;  %v18346_v23 = vpop.permute.xlu1 %3789 }
 0x24d   :  { %v18338_v9 = vpop.permute.xlu0 %3866 }
 0x24e   :  { %2934 = vmax.xlane.f32.xlu0 %v2933_v24 }
 0x251   :  { %v18340_v1 = vpop.permute.xlu0 %3943 }
 0x252   :  { %v2401_v25 = vpop.f32.mrf.mxu0 }
 0x253   :  { %v18298_v26 = vmul.f32 0.25, %v2401_v25  ;;  %v2525_v27 = vpop.f32.mrf.mxu1  ;;  %v18350_v25 = vpop.permute.xlu1 %4330 }
 0x254   :  { %v16808_v29 = vpop.f32.mrf.mxu0  ;;  %v18300_v33 = vmul.f32 0.25, %v2525_v27 }
 0x255   :  { %v2951_v36 = vsel %vm2917_vm3, %v18298_v26, -inf  ;;  %v16813_v38 = vpop.f32.mrf.mxu1  ;;  %v18342_v14 = vpop.permute.xlu0 %4020 }
 0x256   :  { %2952 = vmax.xlane.f32.xlu0 %v2951_v36  ;;  %v2954_v39 = vsel %vm2917_vm3, %v18300_v33, -inf }
 0x257   :  { %2955 = vmax.xlane.f32.xlu1 %v2954_v39  ;;  %v18354_v29 = vpop.permute.xlu1 %4174 }
 0x259   :  { %v18344_v7 = vpop.permute.xlu0 %4097 }
 0x25d   :  { %v2649_v12 = vpop.f32.mrf.mxu0  ;;  %v18348_v24 = vpop.permute.xlu0 %4251 }
 0x25e   :  { %v18310_v40 = vmul.f32 0.25, %v2649_v12 }
 0x25f   :  { %v16818_v42 = vpop.f32.mrf.mxu0  ;;  %v2773_v44 = vpop.f32.mrf.mxu1 }
 0x260   :  { %v2957_v47 = vsel %vm2917_vm3, %v18310_v40, -inf  ;;  %v18316_v48 = vmul.f32 0.25, %v2773_v44 }
 0x261   :  { %v2897_v49 = vpop.f32.mrf.mxu0  ;;  %2958 = vmax.xlane.f32.xlu0 %v2957_v47  ;;  %v16823_v51 = vpop.f32.mrf.mxu1 }
 0x262   :  { %v18318_v31 = vmul.f32 0.25, %v2897_v49  ;;  %v2960_v60 = vsel %vm2917_vm3, %v18316_v48, -inf  ;;  %v18352_v27 = vpop.permute.xlu0 %4408 }
 0x263   :  { %v16828_v62 = vpop.f32.mrf.mxu0  ;;  %2961 = vmax.xlane.f32.xlu1 %v2960_v60 }
 0x264   :  { %v2963_v63 = vsel %vm2917_vm3, %v18318_v31, -inf }
 0x265   :  { %2964 = vmax.xlane.f32.xlu0 %v2963_v63 }
 0x274   :  { %4328 = vrot.lane.b32.xlu1 %v17873_v34, %s17726_s4 }
 0x278   :  { %4406 = vrot.lane.b32.xlu1 %v17883_v45, %s17726_s4 }
 0x27b   :  { %4486 = vrot.lane.b32.xlu0 %v17906_v20, %s17725_s26 }
 0x2a1   :  { %v2920_v36 = vpop.xlane.xlu0 %2919 }
 0x2a2   :  { %v2966_v38 = vsub.f32 %v18254_v57, %v2920_v36 }
 0x2a4   :  { %v2982_v39 = vmul.f32 1.442695, %v2966_v38 }
 0x2a5   :  { %v2923_v12 = vpop.xlane.xlu1 %2922 }
 0x2a6   :  { %17434 = vpow2.f32 %v2982_v39  ;;  %v2967_v42 = vsub.f32 %v18258_v32, %v2923_v12 }
 0x2a8   :  { %v2984_v44 = vmul.f32 1.442695, %v2967_v42 }
 0x2aa   :  { %17436 = vpow2.f32 %v2984_v44 }
 0x2ac   :  { %v2926_v47 = vpop.xlane.xlu0 %2925 }
 0x2ad   :  { %v2968_v49 = vsub.f32 %v18262_v37, %v2926_v47 }
 0x2af   :  { %v2986_v51 = vmul.f32 1.442695, %v2968_v49 }
 0x2b0   :  { %v2929_v60 = vpop.xlane.xlu0 %2928 }
 0x2b1   :  { %17438 = vpow2.f32 %v2986_v51  ;;  %v2969_v62 = vsub.f32 %v18266_v58, %v2929_v60 }
 0x2b3   :  { %v18360_v63 = vpop.eup %17434  ;;  %v2988_v19 = vmul.f32 1.442695, %v2969_v62 }
 0x2b4   :  { %v3014_v57 = vsel %vm2917_vm3, %v18360_v63, 0.0 }
 0x2b5   :  { %3015 = vadd.xlane.f32.xlu1 %v3014_v57  ;;  %17440 = vpow2.f32 %v2988_v19 }
 0x2b7   :  { %v18364_v36 = vpop.eup %17436 }
 0x2b8   :  { %v2932_v32 = vpop.xlane.xlu1 %2931  ;;  %v3017_v38 = vsel %vm2917_vm3, %v18364_v36, 0.0 }
 0x2b9   :  { %v2970_v37 = vsub.f32 %v18270_v43, %v2932_v32  ;;  %3018 = vadd.xlane.f32.xlu0 %v3017_v38 }
 0x2bb   :  { %v2990_v39 = vmul.f32 1.442695, %v2970_v37 }
 0x2bd   :  { %17442 = vpow2.f32 %v2990_v39 }
 0x2be   :  { %v18369_v58 = vpop.eup %17438 }
 0x2bf   :  { %v3020_v12 = vsel %vm2917_vm3, %v18369_v58, 0.0 }
 0x2c0   :  { %3021 = vadd.xlane.f32.xlu1 %v3020_v12 }
 0x2c2   :  { %v2938_v42 = vpop.xlane.xlu1 %2937  ;;  %v18373_v44 = vpop.eup %17440 }
 0x2c3   :  { %v2972_v19 = vsub.f32 %v18274_v50, %v2938_v42  ;;  %v3023_v47 = vsel %vm2917_vm3, %v18373_v44, 0.0 }
 0x2c4   :  { %3024 = vadd.xlane.f32.xlu0 %v3023_v47 }
 0x2c5   :  { %v2994_v49 = vmul.f32 1.442695, %v2972_v19 }
 0x2c6   :  { %v2944_v43 = vpop.xlane.xlu1 %2943 }
 0x2c7   :  { %17444 = vpow2.f32 %v2994_v49  ;;  %v2974_v51 = vsub.f32 %v18278_v61, %v2944_v43 }
 0x2c8   :  { %v2941_v60 = vpop.xlane.xlu0 %2940 }
 0x2c9   :  { %v2973_v62 = vsub.f32 %v18280_v0, %v2941_v60  ;;  %v2998_v57 = vmul.f32 1.442695, %v2974_v51 }
 0x2ca   :  { %v18380_v32 = vpop.eup %17442 }
 0x2cb   :  { %v2996_v38 = vmul.f32 1.442695, %v2973_v62  ;;  %17446 = vpow2.f32 %v2998_v57  ;;  %v3026_v50 = vsel %vm2917_vm3, %v18380_v32, 0.0 }
 0x2cc   :  { %3027 = vadd.xlane.f32.xlu1 %v3026_v50 }
 0x2cd   :  { %17448 = vpow2.f32 %v2996_v38 }
 0x2d3   :  { %v2947_v39 = vpop.xlane.xlu0 %2946 }
 0x2d4   :  { %v18384_v37 = vpop.eup %17444  ;;  %v2975_v12 = vsub.f32 %v18286_v8, %v2947_v39 }
 0x2d5   :  { %v3032_v61 = vsel %vm2917_vm3, %v18384_v37, 0.0 }
 0x2d6   :  { %3033 = vadd.xlane.f32.xlu1 %v3032_v61  ;;  %v3000_v0 = vmul.f32 1.442695, %v2975_v12 }
 0x2d7   :  { %v2935_v19 = vpop.xlane.xlu0 %2934 }
 0x2d8   :  { %v18389_v42 = vpop.eup %17446  ;;  %17450 = vpow2.f32 %v3000_v0  ;;  %v2971_v47 = vsub.f32 %v18290_v13, %v2935_v19  ;;  %v2950_v13 = vpop.xlane.xlu1 %2949 }
 0x2d9   :  { %v3038_v49 = vsel %vm2917_vm3, %v18389_v42, 0.0  ;;  %v2976_v12 = vsub.f32 %v18288_v11, %v2950_v13 }
 0x2da   :  { %v18394_v43 = vpop.eup %17448  ;;  %3039 = vadd.xlane.f32.xlu1 %v3038_v49  ;;  %v2992_v51 = vmul.f32 1.442695, %v2971_v47 }
 0x2db   :  { %v3035_v8 = vsel %vm2917_vm3, %v18394_v43, 0.0  ;;  %v3002_v47 = vmul.f32 1.442695, %v2976_v12 }
 0x2dc   :  { %3036 = vadd.xlane.f32.xlu0 %v3035_v8  ;;  %17452 = vpow2.f32 %v2992_v51 }
 0x2df   :  { %v2953_v60 = vpop.xlane.xlu0 %2952 }
 0x2e0   :  { %v2956_v61 = vpop.xlane.xlu1 %2955  ;;  %v2977_v13 = vsub.f32 %v18298_v26, %v2953_v60 }
 0x2e1   :  { %v2978_v49 = vsub.f32 %v18300_v33, %v2956_v61 }
 0x2e2   :  { %v3004_v12 = vmul.f32 1.442695, %v2977_v13 }
 0x2e3   :  { %v3006_v8 = vmul.f32 1.442695, %v2978_v49 }
 0x2e5   :  { %v18398_v62 = vpop.eup %17450 }
 0x2e6   :  { %v3041_v57 = vsel %vm2917_vm3, %v18398_v62, 0.0 }
 0x2e7   :  { %3042 = vadd.xlane.f32.xlu0 %v3041_v57 }
 0x2e9   :  { %v18402_v38 = vpop.eup %17452 }
 0x2ea   :  { %v2959_v50 = vpop.xlane.xlu0 %2958  ;;  %v3029_v39 = vsel %vm2917_vm3, %v18402_v38, 0.0 }
 0x2eb   :  { %3030 = vadd.xlane.f32.xlu0 %v3029_v39  ;;  %v2979_v61 = vsub.f32 %v18310_v40, %v2959_v50 }
 0x2ee   :  { %v2965_v0 = vpop.xlane.xlu0 %2964 }
 0x2ef   :  { %v2981_v19 = vsub.f32 %v18318_v31, %v2965_v0  ;;  %v2962_v0 = vpop.xlane.xlu1 %2961 }
 0x2f1   :  { %v3012_v51 = vmul.f32 1.442695, %v2981_v19  ;;  %v3008_v19 = vmul.f32 1.442695, %v2979_v61 }
 0x2f3   :  { %17454 = vpow2.f32 %v3012_v51  ;;  %v18450_v51 = vpop.permute.xlu1 %4328 }
 0x2f4   :  { %17456 = vpow2.f32 %v3002_v47 }
 0x2f5   :  { %17458 = vpow2.f32 %v3006_v8 }
 0x2f6   :  { %17460 = vpow2.f32 %v3004_v12 }
 0x2f7   :  { %17462 = vpow2.f32 %v3008_v19  ;;  %v18456_v8 = vpop.permute.xlu1 %4406 }
 0x300   :  { %v18409_v57 = vpop.eup %17454 }
 0x301   :  { %v3059_v28 = vsel %vm2917_vm3, %v18409_v57, 0.0  ;;  %4484 = vrot.lane.b32.xlu0 %v17906_v20, %s17726_s4  ;;  %v18415_v11 = vpop.eup %17456 }
 0x302   :  { %3060 = vadd.xlane.f32.xlu1 %v3059_v28  ;;  %v3044_v31 = vsel %vm2917_vm3, %v18415_v11, 0.0  ;;  %v18419_v33 = vpop.eup %17458  ;;  %v2980_v28 = vsub.f32 %v18316_v48, %v2962_v0 }
 0x303   :  { %v3050_v39 = vsel %vm2917_vm3, %v18419_v33, 0.0  ;;  %v18428_v49 = vpop.eup %17460 }
 0x304   :  { %v3010_v47 = vmul.f32 1.442695, %v2980_v28  ;;  %v3047_v26 = vsel %vm2917_vm3, %v18428_v49, 0.0  ;;  %v18434_v40 = vpop.eup %17462 }
 0x305   :  { %v3053_v48 = vsel %vm2917_vm3, %v18434_v40, 0.0 }
 0x306   :  { %3045 = vadd.xlane.f32.xlu1 %v3044_v31  ;;  %17464 = vpow2.f32 %v3010_v47  ;;  %v18460_v31 = vpop.permute.xlu0 %4486 }
 0x30a   :  { %3051 = vadd.xlane.f32.xlu1 %v3050_v39 }
 0x313   :  { %v18440_v60 = vpop.eup %17464 }
 0x314   :  { %v3056_v50 = vsel %vm2917_vm3, %v18440_v60, 0.0 }
 0x31b   :  { %4564 = vrot.lane.b32.xlu1 %v17914_v30, %s17725_s26 }
 0x31f   :  { %4562 = vrot.lane.b32.xlu1 %v17914_v30, %s17726_s4 }
 0x320   :  { %3048 = vadd.xlane.f32.xlu0 %v3047_v26  ;;  %v21014_v26 = vmov 0.0  }
 0x323   :  { %4720 = vrot.lane.b32.xlu1 %v17948_v15, %s17725_s26 }
 0x324   :  { %3054 = vadd.xlane.f32.xlu0 %v3053_v48 }
 0x327   :  { %4718 = vrot.lane.b32.xlu1 %v17948_v15, %s17726_s4 }
 0x328   :  { %3057 = vadd.xlane.f32.xlu0 %v3056_v50 }
 0x32b   :  { %4876 = vrot.lane.b32.xlu1 %v17996_v17, %s17725_s26 }
 0x32f   :  { %4874 = vrot.lane.b32.xlu1 %v17996_v17, %s17726_s4 }
 0x333   :  { %4952 = vrot.lane.b32.xlu1 %v17972_v53, %s17726_s4 }
 0x337   :  { %5030 = vrot.lane.b32.xlu1 %v18035_v16, %s17726_s4 }
 0x33b   :  { %5108 = vrot.lane.b32.xlu1 %v18041_v18, %s17726_s4 }
 0x33e   :  { %v3016_v13 = vpop.xlane.xlu1 %3015  ;;  %4642 = vrot.lane.b32.xlu0 %v17941_v3, %s17725_s26 }
 0x33f   :  { %17466 = vrcp.f32 %v3016_v13  ;;  %5266 = vrot.lane.b32.xlu1 %v18073_v41, %s17725_s26 }
 0x342   :  { %v3019_v39 = vpop.xlane.xlu0 %3018  ;;  %4640 = vrot.lane.b32.xlu0 %v17941_v3, %s17726_s4 }
 0x343   :  { %17468 = vrcp.f32 %v3019_v39  ;;  %5264 = vrot.lane.b32.xlu1 %v18073_v41, %s17726_s4 }
 0x346   :  { %4798 = vrot.lane.b32.xlu0 %v17974_v54, %s17725_s26 }
 0x347   :  { %5422 = vrot.lane.b32.xlu1 %v18110_v59, %s17725_s26 }
 0x349   :  { %v3022_v12 = vpop.xlane.xlu1 %3021 }
 0x34a   :  { %4796 = vrot.lane.b32.xlu0 %v17974_v54, %s17726_s4  ;;  %17470 = vrcp.f32 %v3022_v12 }
 0x34b   :  { %5420 = vrot.lane.b32.xlu1 %v18110_v59, %s17726_s4 }
 0x34c   :  { %v17467_v61 = vpop.eup %17466 }
 0x34d   :  { %v3078_v0 = vmul.f32 %v17467_v61, %v18360_v63  ;;  %v3025_v19 = vpop.xlane.xlu0 %3024 }
 0x34e   :  { %4954 = vrot.lane.b32.xlu0 %v17972_v53, %s17725_s26  ;;  %17472 = vrcp.f32 %v3025_v19 }
 0x34f   :  { %16832 = vmatmul.mubr.msk.f32.vlgmr.msra.gmra.mxu1 %vm3096_vm4, %v3078_v0  ;;  %5768 = vrot.lane.b32.xlu1 %v17873_v34, %s17727_s27 }
 0x350   :  { %v17469_v28 = vpop.eup %17468  ;;  %16840 = vmatpush3.msk.msra.mxu1 %vm3100_vm2, %v18302_v35  ;;  %16841 = vmatprep.mubr.msk.f32.mxu1 %vm17723_vm1, %v21014_v26 }
 0x351   :  { %v3079_v47 = vmul.f32 %v17469_v28, %v18364_v36  ;;  %16849 = vmatprep.subr.mxu1 %v21014_v26 }
 0x352   :  { %5032 = vrot.lane.b32.xlu0 %v18035_v16, %s17725_s26 }
 0x353   :  { %16837 = vmatmul.mubr.msk.f32.vlgmr.msra.gmra.mxu0 %vm3096_vm4, %v3079_v47  ;;  %5999 = vrot.lane.b32.xlu1 %v17914_v30, %s17727_s27 }
 0x354   :  { %16845 = vmatpush3.msk.msra.mxu0 %vm3100_vm2, %v18308_v55  ;;  %16846 = vmatprep.mubr.msk.f32.mxu0 %vm17723_vm1, %v21014_v26 }
 0x355   :  { %v3028_v63 = vpop.xlane.xlu1 %3027  ;;  %16854 = vmatprep.subr.mxu0 %v21014_v26 }
 0x356   :  { %17474 = vrcp.f32 %v3028_v63  ;;  %5110 = vrot.lane.b32.xlu0 %v18041_v18, %s17725_s26 }
 0x357   :  { %v17471_v35 = vpop.eup %17470  ;;  %6153 = vrot.lane.b32.xlu1 %v17948_v15, %s17727_s27 }
 0x358   :  { %v3080_v36 = vmul.f32 %v17471_v35, %v18369_v58 }
 0x35a   :  { %5188 = vrot.lane.b32.xlu0 %v18069_v10, %s17725_s26  ;;  %16842 = vmatmul.mubr.msk.f32.vlgmr.msra.gmra.mxu1 %vm3096_vm4, %v3080_v36 }
 0x35b   :  { %v17473_v55 = vpop.eup %17472  ;;  %6307 = vrot.lane.b32.xlu1 %v17996_v17, %s17727_s27  ;;  %16850 = vmatpush3.msk.msra.mxu1 %vm3100_vm2, %v18312_v46 }
 0x35c   :  { %v3081_v48 = vmul.f32 %v17473_v55, %v18373_v44  ;;  %16851 = vmatprep.mubr.msk.f32.mxu1 %vm17723_vm1, %v21014_v26  ;;  %16859 = vmatprep.subr.mxu1 %v21014_v26 }
 0x35e   :  { %5186 = vrot.lane.b32.xlu0 %v18069_v10, %s17726_s4  ;;  %16847 = vmatmul.mubr.msk.f32.vlgmr.msra.gmra.mxu0 %vm3096_vm4, %v3081_v48 }
 0x35f   :  { %v3034_v58 = vpop.xlane.xlu1 %3033  ;;  %6384 = vrot.lane.b32.xlu1 %v17972_v53, %s17727_s27  ;;  %16855 = vmatpush3.msk.msra.mxu0 %vm3100_vm2, %v18324_v2 }
 0x360   :  { %17476 = vrcp.f32 %v3034_v58  ;;  %16856 = vmatprep.mubr.msk.f32.mxu0 %vm17723_vm1, %v21014_v26  ;;  %16864 = vmatprep.subr.mxu0 %v21014_v26 }
 0x362   :  { %5344 = vrot.lane.b32.xlu0 %v18105_v52, %s17725_s26 }
 0x363   :  { %v17475_v46 = vpop.eup %17474  ;;  %v3040_v44 = vpop.xlane.xlu1 %3039  ;;  %6461 = vrot.lane.b32.xlu1 %v18035_v16, %s17727_s27 }
 0x364   :  { %17478 = vrcp.f32 %v3040_v44  ;;  %v3082_v50 = vmul.f32 %v17475_v46, %v18380_v32 }
 0x365   :  { %v3037_v2 = vpop.xlane.xlu0 %3036 }
 0x366   :  { %16852 = vmatmul.mubr.msk.f32.vlgmr.msra.gmra.mxu1 %vm3096_vm4, %v3082_v50  ;;  %5342 = vrot.lane.b32.xlu0 %v18105_v52, %s17726_s4 }
 0x367   :  { %16860 = vmatpush3.msk.msra.mxu1 %vm3100_vm2, %v18326_v4  ;;  %16861 = vmatprep.mubr.msk.f32.mxu1 %vm17723_vm1, %v21014_v26 }
 0x368   :  { %16869 = vmatprep.subr.mxu1 %v21014_v26 }
 0x36a   :  { %5500 = vrot.lane.b32.xlu0 %v18108_v56, %s17725_s26 }
 0x36d   :  { %v17477_v13 = vpop.eup %17476 }
 0x36e   :  { %v3084_v32 = vmul.f32 %v17477_v13, %v18384_v37  ;;  %5498 = vrot.lane.b32.xlu0 %v18108_v56, %s17726_s4 }
 0x370   :  { %16862 = vmatmul.mubr.msk.f32.vlgmr.msra.gmra.mxu1 %vm3096_vm4, %v3084_v32  ;;  %v3043_v12 = vpop.xlane.xlu0 %3042 }
 0x371   :  { %v17479_v39 = vpop.eup %17478  ;;  %16870 = vmatpush3.msk.msra.mxu1 %vm3100_vm2, %v18332_v6  ;;  %16871 = vmatprep.mubr.msk.f32.mxu1 %vm17723_vm1, %v21014_v26 }
 0x372   :  { %16879 = vmatprep.subr.mxu1 %v21014_v26  ;;  %v3086_v4 = vmul.f32 %v17479_v39, %v18389_v42  ;;  %5845 = vrot.lane.b32.xlu0 %v17883_v45, %s17727_s27 }
 0x374   :  { %16872 = vmatmul.mubr.msk.f32.vlgmr.msra.gmra.mxu1 %vm3096_vm4, %v3086_v4  ;;  %v3031_v37 = vpop.xlane.xlu0 %3030 }
 0x375   :  { %16880 = vmatpush3.msk.msra.mxu1 %vm3100_vm2, %v18338_v9  ;;  %16881 = vmatprep.mubr.msk.f32.mxu1 %vm17723_vm1, %v21014_v26  ;;  %17480 = vrcp.f32 %v3031_v37 }
 0x376   :  { %16889 = vmatprep.subr.mxu1 %v21014_v26  ;;  %5922 = vrot.lane.b32.xlu0 %v17906_v20, %s17727_s27  ;;  %17482 = vrcp.f32 %v3037_v2 }
 0x377   :  { %17484 = vrcp.f32 %v3043_v12 }
 0x378   :  { %v4485_v36 = vpop.permute.xlu0 %4484 }
 0x37a   :  { %6076 = vrot.lane.b32.xlu0 %v17941_v3, %s17727_s27 }
 0x37e   :  { %6230 = vrot.lane.b32.xlu0 %v17974_v54, %s17727_s27 }
 0x382   :  { %v17481_v6 = vpop.eup %17480 }
 0x383   :  { %v3083_v9 = vmul.f32 %v17481_v6, %v18402_v38  ;;  %v17483_v42 = vpop.eup %17482 }
 0x384   :  { %v3085_v61 = vmul.f32 %v17483_v42, %v18394_v43  ;;  %v17485_v0 = vpop.eup %17484 }
 0x385   :  { %16857 = vmatmul.mubr.msk.f32.vlgmr.msra.gmra.mxu0 %vm3096_vm4, %v3083_v9 }
 0x386   :  { %16865 = vmatpush3.msk.msra.mxu0 %vm3100_vm2, %v18328_v5  ;;  %16866 = vmatprep.mubr.msk.f32.mxu0 %vm17723_vm1, %v21014_v26  ;;  %v3087_v5 = vmul.f32 %v17485_v0, %v18398_v62 }
 0x387   :  { %16874 = vmatprep.subr.mxu0 %v21014_v26 }
 0x389   :  { %16867 = vmatmul.mubr.msk.f32.vlgmr.msra.gmra.mxu0 %vm3096_vm4, %v3085_v61 }
 0x38a   :  { %16875 = vmatpush3.msk.msra.mxu0 %vm3100_vm2, %v18346_v23  ;;  %16876 = vmatprep.mubr.msk.f32.mxu0 %vm17723_vm1, %v21014_v26 }
 0x38b   :  { %v3061_v38 = vpop.xlane.xlu1 %3060  ;;  %16884 = vmatprep.subr.mxu0 %v21014_v26 }
 0x38d   :  { %16877 = vmatmul.mubr.msk.f32.vlgmr.msra.gmra.mxu0 %vm3096_vm4, %v3087_v5 }
 0x38e   :  { %16885 = vmatpush3.msk.msra.mxu0 %vm3100_vm2, %v18340_v1  ;;  %16886 = vmatprep.mubr.msk.f32.mxu0 %vm17723_vm1, %v21014_v26 }
 0x38f   :  { %v3046_v43 = vpop.xlane.xlu1 %3045  ;;  %16894 = vmatprep.subr.mxu0 %v21014_v26 }
 0x390   :  { %17486 = vrcp.f32 %v3046_v43 }
 0x393   :  { %v3052_v23 = vpop.xlane.xlu1 %3051 }
 0x394   :  { %17488 = vrcp.f32 %v3052_v23 }
 0x397   :  { %v4565_v19 = vpop.permute.xlu1 %4564 }
 0x39b   :  { %v18586_v28 = vpop.permute.xlu1 %4562 }
 0x39d   :  { %v17487_v47 = vpop.eup %17486 }
 0x39e   :  { %v3088_v62 = vmul.f32 %v17487_v47, %v18415_v11 }
 0x39f   :  { %v18589_v63 = vpop.permute.xlu1 %4720 }
 0x3a0   :  { %16882 = vmatmul.mubr.msk.f32.vlgmr.msra.gmra.mxu1 %vm3096_vm4, %v3088_v62 }
 0x3a1   :  { %v17489_v1 = vpop.eup %17488  ;;  %16890 = vmatpush3.msk.msra.mxu1 %vm3100_vm2, %v18342_v14  ;;  %16891 = vmatprep.mubr.msk.f32.mxu1 %vm17723_vm1, %v21014_v26 }
 0x3a2   :  { %16899 = vmatprep.subr.mxu1 %v21014_v26  ;;  %v3090_v35 = vmul.f32 %v17489_v1, %v18419_v33 }
 0x3a3   :  { %v18603_v11 = vpop.permute.xlu1 %4718 }
 0x3a4   :  { %16892 = vmatmul.mubr.msk.f32.vlgmr.msra.gmra.mxu1 %vm3096_vm4, %v3090_v35 }
 0x3a5   :  { %16900 = vmatpush3.msk.msra.mxu1 %vm3100_vm2, %v18354_v29  ;;  %16901 = vmatprep.mubr.msk.f32.mxu1 %vm17723_vm1, %v21014_v26 }
 0x3a6   :  { %16909 = vmatprep.subr.mxu1 %v21014_v26 }
 0x3a7   :  { %v4877_v55 = vpop.permute.xlu1 %4876 }
 0x3a9   :  { %v3049_v14 = vpop.xlane.xlu0 %3048 }
 0x3aa   :  { %17490 = vrcp.f32 %v3049_v14 }
 0x3ab   :  { %v18606_v58 = vpop.permute.xlu1 %4874 }
 0x3ad   :  { %v3055_v48 = vpop.xlane.xlu0 %3054 }
 0x3ae   :  { %17492 = vrcp.f32 %v3055_v48 }
 0x3af   :  { %17494 = vrcp.f32 %v3061_v38  ;;  %v18608_v29 = vpop.permute.xlu1 %4952 }
 0x3b1   :  { %v3058_v33 = vpop.xlane.xlu0 %3057 }
 0x3b2   :  { %17496 = vrcp.f32 %v3058_v33 }
 0x3b3   :  { %v5031_v4 = vpop.permute.xlu1 %5030 }
 0x3b5   :  { %v4643_v46 = vpop.permute.xlu0 %4642 }
 0x3b7   :  { %v17491_v44 = vpop.eup %17490 }
 0x3b8   :  { %v3089_v50 = vmul.f32 %v17491_v44, %v18428_v49 }
 0x3b9   :  { %v4641_v2 = vpop.permute.xlu0 %4640 }
 0x3ba   :  { %16887 = vmatmul.mubr.msk.f32.vlgmr.msra.gmra.mxu0 %vm3096_vm4, %v3089_v50 }
 0x3bb   :  { %v17493_v13 = vpop.eup %17492  ;;  %16895 = vmatpush3.msk.msra.mxu0 %vm3100_vm2, %v18344_v7  ;;  %16896 = vmatprep.mubr.msk.f32.mxu0 %vm17723_vm1, %v21014_v26 }
 0x3bc   :  { %16904 = vmatprep.subr.mxu0 %v21014_v26  ;;  %v3091_v32 = vmul.f32 %v17493_v13, %v18434_v40  ;;  %v17495_v39 = vpop.eup %17494 }
 0x3bd   :  { %v4799_v12 = vpop.permute.xlu0 %4798  ;;  %v3093_v37 = vmul.f32 %v17495_v39, %v18409_v57 }
 0x3be   :  { %16897 = vmatmul.mubr.msk.f32.vlgmr.msra.gmra.mxu0 %vm3096_vm4, %v3091_v32 }
 0x3bf   :  { %v17497_v49 = vpop.eup %17496  ;;  %16905 = vmatpush3.msk.msra.mxu0 %vm3100_vm2, %v18348_v24  ;;  %16906 = vmatprep.mubr.msk.f32.mxu0 %vm17723_vm1, %v21014_v26  ;;  %v5109_v24 = vpop.permute.xlu1 %5108 }
 0x3c0   :  { %16914 = vmatprep.subr.mxu0 %v21014_v26  ;;  %v3092_v7 = vmul.f32 %v17497_v49, %v18440_v60 }
 0x3c1   :  { %v4797_v6 = vpop.permute.xlu0 %4796 }
 0x3c2   :  { %16902 = vmatmul.mubr.msk.f32.vlgmr.msra.gmra.mxu1 %vm3096_vm4, %v3092_v7  ;;  %16907 = vmatmul.mubr.msk.f32.vlgmr.msra.gmra.mxu0 %vm3096_vm4, %v3093_v37 }
 0x3c3   :  { %16910 = vmatpush3.xpose.msk.msra.mxu1 %vm39_vm0, %v18350_v25  ;;  %16915 = vmatpush3.xpose.msk.msra.mxu0 %vm39_vm0, %v18352_v27  ;;  %v5267_v27 = vpop.permute.xlu1 %5266 }
 0x3c4   :  { %16911 = vmatprep.mubr.msk.f32.mxu1 %vm17723_vm1, %v21014_v26  ;;  %16916 = vmatprep.mubr.msk.f32.mxu0 %vm17723_vm1, %v21014_v26 }
 0x3c5   :  { %16919 = vmatprep.subr.mxu1 %v21014_v26  ;;  %16924 = vmatprep.subr.mxu0 %v21014_v26  ;;  %v4955_v57 = vpop.permute.xlu0 %4954 }
 0x3c6   :  { %16912 = vmatmul.mubr.msk.f32.vlgmr.msra.gmra.mxu1 %vm39_vm0, %v18450_v51  ;;  %16917 = vmatmul.mubr.msk.f32.vlgmr.msra.gmra.mxu0 %vm39_vm0, %v18456_v8 }
 0x3c7   :  { %16920 = vmatpush3.xpose.msk.msra.mxu1 %vm39_vm0, %v18460_v31  ;;  %16925 = vmatpush3.xpose.msk.msra.mxu0 %vm39_vm0, %v4565_v19  ;;  %v5265_v60 = vpop.permute.xlu1 %5264 }
 0x3c8   :  { %16921 = vmatprep.mubr.msk.f32.mxu1 %vm17723_vm1, %v21014_v26  ;;  %16926 = vmatprep.mubr.msk.f32.mxu0 %vm17723_vm1, %v21014_v26 }
 0x3c9   :  { %16929 = vmatprep.subr.mxu1 %v21014_v26  ;;  %16934 = vmatprep.subr.mxu0 %v21014_v26  ;;  %v5033_v25 = vpop.permute.xlu0 %5032 }
 0x3ca   :  { %16922 = vmatmul.mubr.msk.f32.vlgmr.msra.gmra.mxu1 %vm39_vm0, %v4485_v36  ;;  %16927 = vmatmul.mubr.msk.f32.vlgmr.msra.gmra.mxu0 %vm39_vm0, %v18586_v28 }
 0x3cb   :  { %16930 = vmatpush3.xpose.msk.msra.mxu1 %vm39_vm0, %v4643_v46  ;;  %16935 = vmatpush3.xpose.msk.msra.mxu0 %vm39_vm0, %v18589_v63  ;;  %v5423_v31 = vpop.permute.xlu1 %5422 }
 0x3cc   :  { %16931 = vmatprep.mubr.msk.f32.mxu1 %vm17723_vm1, %v21014_v26  ;;  %16936 = vmatprep.mubr.msk.f32.mxu0 %vm17723_vm1, %v21014_v26 }
 0x3cd   :  { %16939 = vmatprep.subr.mxu1 %v21014_v26  ;;  %16944 = vmatprep.subr.mxu0 %v21014_v26  ;;  %v5111_v40 = vpop.permute.xlu0 %5110 }
 0x3ce   :  { %16932 = vmatmul.mubr.msk.f32.vlgmr.msra.gmra.mxu1 %vm39_vm0, %v4641_v2  ;;  %16937 = vmatmul.mubr.msk.f32.vlgmr.msra.gmra.mxu0 %vm39_vm0, %v18603_v11 }
 0x3cf   :  { %16940 = vmatpush3.xpose.msk.msra.mxu1 %vm39_vm0, %v4799_v12  ;;  %16945 = vmatpush3.xpose.msk.msra.mxu0 %vm39_vm0, %v4877_v55  ;;  %v5421_v42 = vpop.permute.xlu1 %5420 }
 0x3d0   :  { %16941 = vmatprep.mubr.msk.f32.mxu1 %vm17723_vm1, %v21014_v26  ;;  %16946 = vmatprep.mubr.msk.f32.mxu0 %vm17723_vm1, %v21014_v26 }
 0x3d1   :  { %16949 = vmatprep.subr.mxu1 %v21014_v26  ;;  %16954 = vmatprep.subr.mxu0 %v21014_v26  ;;  %v5189_v51 = vpop.permute.xlu0 %5188 }
 0x3d2   :  { %16942 = vmatmul.mubr.msk.f32.vlgmr.msra.gmra.mxu1 %vm39_vm0, %v4797_v6  ;;  %16947 = vmatmul.mubr.msk.f32.vlgmr.msra.gmra.mxu0 %vm39_vm0, %v18606_v58 }
 0x3d3   :  { %16950 = vmatpush3.xpose.msk.msra.mxu1 %vm39_vm0, %v4955_v57  ;;  %16955 = vmatpush3.xpose.msk.msra.mxu0 %vm39_vm0, %v5033_v25  ;;  %v5769_v38 = vpop.permute.xlu1 %5768 }
 0x3d4   :  { %16951 = vmatprep.mubr.msk.f32.mxu1 %vm17723_vm1, %v21014_v26  ;;  %16956 = vmatprep.mubr.msk.f32.mxu0 %vm17723_vm1, %v21014_v26 }
 0x3d5   :  { %16959 = vmatprep.subr.mxu1 %v21014_v26  ;;  %16964 = vmatprep.subr.mxu0 %v21014_v26  ;;  %v5187_v8 = vpop.permute.xlu0 %5186 }
 0x3d6   :  { %16952 = vmatmul.mubr.msk.f32.vlgmr.msra.gmra.mxu1 %vm39_vm0, %v18608_v29  ;;  %16957 = vmatmul.mubr.msk.f32.vlgmr.msra.gmra.mxu0 %vm39_vm0, %v5031_v4 }
 0x3d7   :  { %16960 = vmatpush3.xpose.msk.msra.mxu1 %vm39_vm0, %v5111_v40  ;;  %16965 = vmatpush3.xpose.msk.msra.mxu0 %vm39_vm0, %v5189_v51 }
 0x3d8   :  { %16961 = vmatprep.mubr.msk.f32.mxu1 %vm17723_vm1, %v21014_v26  ;;  %16966 = vmatprep.mubr.msk.f32.mxu0 %vm17723_vm1, %v21014_v26 }
 0x3d9   :  { %16969 = vmatprep.subr.mxu1 %v21014_v26  ;;  %16974 = vmatprep.subr.mxu0 %v21014_v26  ;;  %v5345_v9 = vpop.permute.xlu0 %5344 }
 0x3da   :  { %16962 = vmatmul.mubr.msk.f32.vlgmr.msra.gmra.mxu1 %vm39_vm0, %v5109_v24  ;;  %16967 = vmatmul.mubr.msk.f32.vlgmr.msra.gmra.mxu0 %vm39_vm0, %v5187_v8 }
 0x3db   :  { %16970 = vmatpush3.xpose.msk.msra.mxu1 %vm39_vm0, %v5267_v27  ;;  %16975 = vmatpush3.xpose.msk.msra.mxu0 %vm39_vm0, %v5345_v9 }
 0x3dc   :  { %16971 = vmatprep.mubr.msk.f32.mxu1 %vm17723_vm1, %v21014_v26  ;;  %16976 = vmatprep.mubr.msk.f32.mxu0 %vm17723_vm1, %v21014_v26 }
 0x3dd   :  { %16979 = vmatprep.subr.mxu1 %v21014_v26  ;;  %v5343_v61 = vpop.permute.xlu0 %5342  ;;  %16984 = vmatprep.subr.mxu0 %v21014_v26 }
 0x3de   :  { %16972 = vmatmul.mubr.msk.f32.vlgmr.msra.gmra.mxu1 %vm39_vm0, %v5265_v60  ;;  %16977 = vmatmul.mubr.msk.f32.vlgmr.msra.gmra.mxu0 %vm39_vm0, %v5343_v61 }
 0x3df   :  { %16980 = vmatpush3.xpose.msk.msra.mxu1 %vm39_vm0, %v5423_v31  ;;  %16981 = vmatprep.mubr.msk.f32.mxu1 %vm17723_vm1, %v21014_v26 }
 0x3e0   :  { %16989 = vmatprep.subr.mxu1 %v21014_v26  ;;  %16986 = vmatprep.mubr.msk.f32.mxu0 %vm17723_vm1, %v21014_v26 }
 0x3e1   :  { %v5501_v0 = vpop.permute.xlu0 %5500 }
 0x3e2   :  { %16982 = vmatmul.mubr.msk.f32.vlgmr.msra.gmra.mxu1 %vm39_vm0, %v5421_v42  ;;  %16985 = vmatpush3.xpose.msk.msra.mxu0 %vm39_vm0, %v5501_v0 }
 0x3e3   :  { %16990 = vmatpush3.msk.msra.mxu1 %vm3100_vm2, %v5769_v38  ;;  %16994 = vmatprep.subr.mxu0 %v21014_v26 }
 0x3e4   :  { %16991 = vmatprep.mubr.msk.f32.mxu1 %vm17723_vm1, %v21014_v26  ;;  %16999 = vmatprep.subr.mxu1 %v21014_v26 }
 0x3e5   :  { %v5499_v5 = vpop.permute.xlu0 %5498 }
 0x3e6   :  { %16987 = vmatmul.mubr.msk.f32.vlgmr.msra.gmra.mxu0 %vm39_vm0, %v5499_v5 }
 0x3e7   :  { %16996 = vmatprep.mubr.msk.f32.mxu0 %vm17723_vm1, %v21014_v26 }
 0x3e9   :  { %v5846_v43 = vpop.permute.xlu0 %5845 }
 0x3ea   :  { %16995 = vmatpush3.msk.msra.mxu0 %vm3100_vm2, %v5846_v43 }
 0x3eb   :  { %17004 = vmatprep.subr.mxu0 %v21014_v26 }
 0x40f   :  { %v18726_v23 = vpop.f32.mrf.mxu1 }
 0x411   :  { %v16833_v19 = vpop.f32.mrf.mxu1 }
 0x413   :  { %v18728_v28 = vpop.f32.mrf.mxu0 }
 0x415   :  { %v16838_v47 = vpop.f32.mrf.mxu0 }
 0x41a   :  { %v18730_v62 = vpop.f32.mrf.mxu1 }
 0x41c   :  { %v16843_v63 = vpop.f32.mrf.mxu1 }
 0x41e   :  { %v18732_v1 = vpop.f32.mrf.mxu0 }
 0x420   :  { %v16848_v35 = vpop.f32.mrf.mxu0 }
 0x426   :  { %v18734_v36 = vpop.f32.mrf.mxu1 }
 0x427   :  { %21015 = vst [vmem:[#allocation7_spill] sm:$0xff] %v18734_v36 }
 0x428   :  { %v16853_v11 = vpop.f32.mrf.mxu1 }
 0x430   :  { %v18736_v14 = vpop.f32.mrf.mxu1 }
 0x432   :  { %v16863_v55 = vpop.f32.mrf.mxu1 }
 0x434   :  { %v18738_v48 = vpop.f32.mrf.mxu1 }
 0x435   :  { %21016 = vst [vmem:[#allocation8_spill] sm:$0xff] %v18738_v48 }
 0x436   :  { %v16873_v33 = vpop.f32.mrf.mxu1 }
 0x445   :  { %v18740_v58 = vpop.f32.mrf.mxu0 }
 0x446   :  { %21017 = vst [vmem:[#allocation9_spill] sm:$0xff] %v18740_v58 }
 0x447   :  { %v16858_v46 = vpop.f32.mrf.mxu0 }
 0x449   :  { %v18742_v44 = vpop.f32.mrf.mxu0 }
 0x44a   :  { %21018 = vst [vmem:[#allocation10_spill] sm:$0xff] %v18742_v44 }
 0x44b   :  { %v16868_v29 = vpop.f32.mrf.mxu0 }
 0x44d   :  { %v18744_v50 = vpop.f32.mrf.mxu0 }
 0x44e   :  { %21019 = vst [vmem:[#allocation11_spill] sm:$0xff] %v18744_v50 }
 0x44f   :  { %v16878_v2 = vpop.f32.mrf.mxu0 }
 0x460   :  { %v18746_v13 = vpop.f32.mrf.mxu1 }
 0x461   :  { %21020 = vst [vmem:[#allocation12_spill] sm:$0xff] %v18746_v13 }
 0x462   :  { %v16883_v32 = vpop.f32.mrf.mxu1 }
 0x464   :  { %v18748_v39 = vpop.f32.mrf.mxu1 }
 0x465   :  { %21021 = vst [vmem:[#allocation13_spill] sm:$0xff] %v18748_v39 }
 0x466   :  { %v16893_v12 = vpop.f32.mrf.mxu1 }
 0x47a   :  { %v18750_v4 = vpop.f32.mrf.mxu0 }
 0x47b   :  { %21022 = vst [vmem:[#allocation14_spill] sm:$0xff] %v18750_v4 }
 0x47c   :  { %v16888_v49 = vpop.f32.mrf.mxu0 }
 0x47e   :  { %v18752_v7 = vpop.f32.mrf.mxu0 }
 0x47f   :  { %21023 = vst [vmem:[#allocation15_spill] sm:$0xff] %v18752_v7 }
 0x480   :  { %v16898_v37 = vpop.f32.mrf.mxu0 }
 0x482   :  { %v18754_v6 = vpop.f32.mrf.mxu1  ;;  %v18756_v24 = vpop.f32.mrf.mxu0 }
 0x483   :  { %21024 = vst [vmem:[#allocation16_spill] sm:$0xff] %v18754_v6  ;;  %21025 = vst [vmem:[#allocation17_spill] sm:$0xff] %v18756_v24 }
 0x484   :  { %v16903_v57 = vpop.f32.mrf.mxu1  ;;  %v16908_v25 = vpop.f32.mrf.mxu0 }
 0x486   :  { %v4402_v27 = vpop.f32.mrf.mxu1  ;;  %v4480_v40 = vpop.f32.mrf.mxu0 }
 0x487   :  { %v18758_v60 = vmul.f32 0.25, %v4402_v27  ;;  %v18760_v51 = vmul.f32 0.25, %v4480_v40 }
 0x488   :  { %v16913_v8 = vpop.f32.mrf.mxu1  ;;  %v16918_v31 = vpop.f32.mrf.mxu0 }
 0x489   :  { %v5595_v9 = vsel %vm2917_vm3, %v18760_v51, -inf  ;;  %v5592_v42 = vsel %vm2917_vm3, %v18758_v60, -inf }
 0x48a   :  { %5596 = vmax.xlane.f32.xlu0 %v5595_v9  ;;  %v4636_v61 = vpop.f32.mrf.mxu0  ;;  %5593 = vmax.xlane.f32.xlu1 %v5592_v42  ;;  %v4558_v0 = vpop.f32.mrf.mxu1 }
 0x48b   :  { %v18766_v38 = vmul.f32 0.25, %v4636_v61  ;;  %v18768_v5 = vmul.f32 0.25, %v4558_v0 }
 0x48c   :  { %v16923_v43 = vpop.f32.mrf.mxu1  ;;  %v16928_v19 = vpop.f32.mrf.mxu0 }
 0x48d   :  { %v5601_v47 = vsel %vm2917_vm3, %v18766_v38, -inf  ;;  %v5598_v63 = vsel %vm2917_vm3, %v18768_v5, -inf }
 0x48e   :  { %v4792_v35 = vpop.f32.mrf.mxu0  ;;  %5602 = vmax.xlane.f32.xlu1 %v5601_v47  ;;  %5599 = vmax.xlane.f32.xlu0 %v5598_v63  ;;  %v4714_v11 = vpop.f32.mrf.mxu1 }
 0x48f   :  { %v18774_v55 = vmul.f32 0.25, %v4792_v35  ;;  %v18776_v33 = vmul.f32 0.25, %v4714_v11 }
 0x490   :  { %v16933_v46 = vpop.f32.mrf.mxu1  ;;  %v16938_v29 = vpop.f32.mrf.mxu0 }
 0x491   :  { %v5607_v2 = vsel %vm2917_vm3, %v18774_v55, -inf  ;;  %v5604_v32 = vsel %vm2917_vm3, %v18776_v33, -inf }
 0x492   :  { %v4948_v12 = vpop.f32.mrf.mxu0  ;;  %5608 = vmax.xlane.f32.xlu1 %v5607_v2  ;;  %5605 = vmax.xlane.f32.xlu0 %v5604_v32  ;;  %v4870_v49 = vpop.f32.mrf.mxu1 }
 0x493   :  { %v18782_v37 = vmul.f32 0.25, %v4948_v12  ;;  %v18784_v57 = vmul.f32 0.25, %v4870_v49 }
 0x494   :  { %v16943_v25 = vpop.f32.mrf.mxu1  ;;  %v16948_v27 = vpop.f32.mrf.mxu0 }
 0x495   :  { %v5613_v40 = vsel %vm2917_vm3, %v18782_v37, -inf  ;;  %v5610_v8 = vsel %vm2917_vm3, %v18784_v57, -inf }
 0x496   :  { %5614 = vmax.xlane.f32.xlu1 %v5613_v40  ;;  %5611 = vmax.xlane.f32.xlu0 %v5610_v8  ;;  %v5026_v31 = vpop.f32.mrf.mxu1  ;;  %v5104_v9 = vpop.f32.mrf.mxu0 }
 0x497   :  { %v18790_v42 = vmul.f32 0.25, %v5026_v31  ;;  %v18792_v61 = vmul.f32 0.25, %v5104_v9 }
 0x498   :  { %v16953_v0 = vpop.f32.mrf.mxu1  ;;  %v16958_v43 = vpop.f32.mrf.mxu0 }
 0x499   :  { %v5616_v19 = vsel %vm2917_vm3, %v18790_v42, -inf  ;;  %v5619_v47 = vsel %vm2917_vm3, %v18792_v61, -inf }
 0x49a   :  { %5617 = vmax.xlane.f32.xlu0 %v5616_v19  ;;  %5620 = vmax.xlane.f32.xlu1 %v5619_v47  ;;  %v5182_v63 = vpop.f32.mrf.mxu1  ;;  %v5260_v35 = vpop.f32.mrf.mxu0 }
 0x49b   :  { %v18798_v11 = vmul.f32 0.25, %v5182_v63  ;;  %v18800_v46 = vmul.f32 0.25, %v5260_v35 }
 0x49c   :  { %v16963_v29 = vpop.f32.mrf.mxu1  ;;  %v16968_v2 = vpop.f32.mrf.mxu0 }
 0x49d   :  { %v5622_v32 = vsel %vm2917_vm3, %v18798_v11, -inf  ;;  %v5625_v12 = vsel %vm2917_vm3, %v18800_v46, -inf }
 0x49e   :  { %5623 = vmax.xlane.f32.xlu0 %v5622_v32  ;;  %v5338_v49 = vpop.f32.mrf.mxu1  ;;  %5626 = vmax.xlane.f32.xlu1 %v5625_v12  ;;  %v5416_v25 = vpop.f32.mrf.mxu0 }
 0x49f   :  { %v18806_v27 = vmul.f32 0.25, %v5338_v49  ;;  %v18808_v40 = vmul.f32 0.25, %v5416_v25  ;;  %v18826_v12 = vpop.permute.xlu1 %5999 }
 0x4a0   :  { %v16973_v8 = vpop.f32.mrf.mxu1  ;;  %v16978_v31 = vpop.f32.mrf.mxu0 }
 0x4a1   :  { %v5628_v9 = vsel %vm2917_vm3, %v18806_v27, -inf  ;;  %v5631_v0 = vsel %vm2917_vm3, %v18808_v40, -inf  ;;  %v18832_v8 = vpop.permute.xlu0 %5922 }
 0x4a2   :  { %5629 = vmax.xlane.f32.xlu0 %v5628_v9  ;;  %v5494_v43 = vpop.f32.mrf.mxu1  ;;  %5632 = vmax.xlane.f32.xlu1 %v5631_v0 }
 0x4a3   :  { %v18814_v19 = vmul.f32 0.25, %v5494_v43  ;;  %v18828_v49 = vpop.permute.xlu1 %6153 }
 0x4a4   :  { %v16983_v47 = vpop.f32.mrf.mxu1 }
 0x4a5   :  { %v5634_v63 = vsel %vm2917_vm3, %v18814_v19, -inf  ;;  %v18836_v9 = vpop.permute.xlu0 %6076 }
 0x4a6   :  { %5635 = vmax.xlane.f32.xlu0 %v5634_v63  ;;  %v5572_v35 = vpop.f32.mrf.mxu0 }
 0x4a7   :  { %v18818_v29 = vmul.f32 0.25, %v5572_v35  ;;  %v18830_v25 = vpop.permute.xlu1 %6307 }
 0x4a8   :  { %v16988_v2 = vpop.f32.mrf.mxu0 }
 0x4a9   :  { %v5637_v32 = vsel %vm2917_vm3, %v18818_v29, -inf  ;;  %v18840_v43 = vpop.permute.xlu0 %6230 }
 0x4aa   :  { %5638 = vmax.xlane.f32.xlu1 %v5637_v32 }
 0x4ab   :  { %v18834_v31 = vpop.permute.xlu1 %6384 }
 0x4af   :  { %v18838_v0 = vpop.permute.xlu1 %6461 }
 0x4bb   :  { %6538 = vrot.lane.b32.xlu1 %v18041_v18, %s17727_s27 }
 0x4bc   :  { %6615 = vrot.lane.b32.xlu0 %v18069_v10, %s17727_s27 }
 0x513   :  { %v5594_v47 = vpop.xlane.xlu1 %5593  ;;  %v5597_v63 = vpop.xlane.xlu0 %5596 }
 0x514   :  { %v5640_v35 = vsub.f32 %v18758_v60, %v5594_v47  ;;  %v5641_v2 = vsub.f32 %v18760_v51, %v5597_v63 }
 0x516   :  { %v5656_v32 = vmul.f32 1.442695, %v5640_v35  ;;  %v5658_v21 = vmul.f32 1.442695, %v5641_v2 }
 0x517   :  { %v5603_v24 = vpop.xlane.xlu1 %5602  ;;  %v5600_v6 = vpop.xlane.xlu0 %5599 }
 0x518   :  { %17498 = vpow2.f32 %v5656_v32  ;;  %v5643_v7 = vsub.f32 %v18766_v38, %v5603_v24  ;;  %v5642_v39 = vsub.f32 %v18768_v5, %v5600_v6 }
 0x519   :  { %17500 = vpow2.f32 %v5658_v21 }
 0x51a   :  { %v5662_v4 = vmul.f32 1.442695, %v5643_v7  ;;  %v5660_v50 = vmul.f32 1.442695, %v5642_v39 }
 0x51b   :  { %v5609_v44 = vpop.xlane.xlu1 %5608  ;;  %v5606_v13 = vpop.xlane.xlu0 %5605 }
 0x51c   :  { %17502 = vpow2.f32 %v5662_v4  ;;  %v5645_v48 = vsub.f32 %v18774_v55, %v5609_v44  ;;  %v5644_v60 = vsub.f32 %v18776_v33, %v5606_v13 }
 0x51d   :  { %17504 = vpow2.f32 %v5660_v50 }
 0x51e   :  { %v5666_v51 = vmul.f32 1.442695, %v5645_v48  ;;  %v5664_v47 = vmul.f32 1.442695, %v5644_v60 }
 0x51f   :  { %v5612_v63 = vpop.xlane.xlu0 %5611  ;;  %v5615_v32 = vpop.xlane.xlu1 %5614 }
 0x520   :  { %17506 = vpow2.f32 %v5666_v51  ;;  %v5646_v35 = vsub.f32 %v18784_v57, %v5612_v63  ;;  %v5647_v63 = vsub.f32 %v18782_v37, %v5615_v32 }
 0x521   :  { %17508 = vpow2.f32 %v5664_v47 }
 0x522   :  { %v5668_v24 = vmul.f32 1.442695, %v5646_v35 }
 0x523   :  { %v5618_v2 = vpop.xlane.xlu0 %5617  ;;  %v5621_v51 = vpop.xlane.xlu1 %5620 }
 0x524   :  { %17510 = vpow2.f32 %v5668_v24  ;;  %v5648_v47 = vsub.f32 %v18790_v42, %v5618_v2 }
 0x525   :  { %v18849_v6 = vpop.eup %17498 }
 0x526   :  { %v18851_v21 = vpop.eup %17500  ;;  %v5688_v39 = vsel %vm2917_vm3, %v18849_v6, 0.0  ;;  %v5672_v24 = vmul.f32 1.442695, %v5648_v47 }
 0x527   :  { %5689 = vadd.xlane.f32.xlu0 %v5688_v39  ;;  %v5691_v44 = vsel %vm2917_vm3, %v18851_v21, 0.0  ;;  %v5624_v60 = vpop.xlane.xlu0 %5623 }
 0x528   :  { %5692 = vadd.xlane.f32.xlu1 %v5691_v44  ;;  %v5650_v39 = vsub.f32 %v18798_v11, %v5624_v60  ;;  %v5627_v44 = vpop.xlane.xlu1 %5626  ;;  %17512 = vpow2.f32 %v5672_v24 }
 0x529   :  { %v18857_v48 = vpop.eup %17502 }
 0x52a   :  { %v18859_v50 = vpop.eup %17504  ;;  %v5697_v13 = vsel %vm2917_vm3, %v18857_v48, 0.0 }
 0x52b   :  { %v5694_v4 = vsel %vm2917_vm3, %v18859_v50, 0.0  ;;  %v5630_v35 = vpop.xlane.xlu0 %5629 }
 0x52c   :  { %5698 = vadd.xlane.f32.xlu1 %v5697_v13  ;;  %5695 = vadd.xlane.f32.xlu0 %v5694_v4  ;;  %v5670_v13 = vmul.f32 1.442695, %v5647_v63  ;;  %v5649_v4 = vsub.f32 %v18792_v61, %v5621_v51  ;;  %v5652_v36 = vsub.f32 %v18806_v27, %v5630_v35  ;;  %v5633_v2 = vpop.xlane.xlu1 %5632 }
 0x52d   :  { %v18865_v7 = vpop.eup %17506  ;;  %v5653_v32 = vsub.f32 %v18808_v40, %v5633_v2 }
 0x52e   :  { %v18867_v38 = vpop.eup %17508  ;;  %v5703_v5 = vsel %vm2917_vm3, %v18865_v7, 0.0  ;;  %17514 = vpow2.f32 %v5670_v13  ;;  %v5674_v58 = vmul.f32 1.442695, %v5649_v4  ;;  %v5680_v11 = vmul.f32 1.442695, %v5652_v36 }
 0x52f   :  { %v5700_v55 = vsel %vm2917_vm3, %v18867_v38, 0.0 }
 0x530   :  { %5704 = vadd.xlane.f32.xlu1 %v5703_v5  ;;  %5701 = vadd.xlane.f32.xlu0 %v5700_v55  ;;  %v5651_v5 = vsub.f32 %v18800_v46, %v5627_v44  ;;  %v5676_v55 = vmul.f32 1.442695, %v5650_v39  ;;  %v5682_v46 = vmul.f32 1.442695, %v5653_v32 }
 0x531   :  { %v18873_v33 = vpop.eup %17510 }
 0x532   :  { %v5706_v57 = vsel %vm2917_vm3, %v18873_v33, 0.0  ;;  %v5678_v42 = vmul.f32 1.442695, %v5651_v5  ;;  %17516 = vpow2.f32 %v5676_v55 }
 0x533   :  { %17518 = vpow2.f32 %v5674_v58  ;;  %v5639_v60 = vpop.xlane.xlu1 %5638 }
 0x534   :  { %5707 = vadd.xlane.f32.xlu0 %v5706_v57  ;;  %v5636_v57 = vpop.xlane.xlu0 %5635  ;;  %17520 = vpow2.f32 %v5678_v42  ;;  %v5655_v51 = vsub.f32 %v18818_v29, %v5639_v60 }
 0x535   :  { %v5654_v37 = vsub.f32 %v18814_v19, %v5636_v57  ;;  %17522 = vpow2.f32 %v5680_v11  ;;  %v18890_v47 = vpop.eup %17512 }
 0x536   :  { %v5686_v63 = vmul.f32 1.442695, %v5655_v51  ;;  %v5712_v58 = vsel %vm2917_vm3, %v18890_v47, 0.0 }
 0x537   :  { %v5684_v61 = vmul.f32 1.442695, %v5654_v37  ;;  %v18940_v11 = vpop.permute.xlu1 %6538 }
 0x538   :  { %v18938_v2 = vpop.permute.xlu0 %6615 }
 0x539   :  { %17524 = vpow2.f32 %v5684_v61 }
 0x53a   :  { %17526 = vpow2.f32 %v5682_v46 }
 0x53b   :  { %v18892_v27 = vpop.eup %17514  ;;  %17528 = vpow2.f32 %v5686_v63 }
 0x53c   :  { %v5709_v19 = vsel %vm2917_vm3, %v18892_v27, 0.0 }
 0x53f   :  { %v18896_v36 = vpop.eup %17516 }
 0x540   :  { %v18898_v40 = vpop.eup %17518  ;;  %v5718_v29 = vsel %vm2917_vm3, %v18896_v36, 0.0 }
 0x541   :  { %6692 = vrot.lane.b32.xlu1 %v18073_v41, %s17727_s27  ;;  %v18904_v35 = vpop.eup %17520  ;;  %v5715_v39 = vsel %vm2917_vm3, %v18898_v40, 0.0 }
 0x542   :  { %v18906_v24 = vpop.eup %17522  ;;  %v5721_v44 = vsel %vm2917_vm3, %v18904_v35, 0.0 }
 0x543   :  { %v5724_v4 = vsel %vm2917_vm3, %v18906_v24, 0.0 }
 0x546   :  { %v18912_v13 = vpop.eup %17524 }
 0x547   :  { %v5730_v5 = vsel %vm2917_vm3, %v18912_v13, 0.0  ;;  %v18918_v55 = vpop.eup %17526 }
 0x548   :  { %v5727_v57 = vsel %vm2917_vm3, %v18918_v55, 0.0  ;;  %v18922_v42 = vpop.eup %17528 }
 0x549   :  { %v5733_v37 = vsel %vm2917_vm3, %v18922_v42, 0.0 }
 0x54a   :  { %6769 = vrot.lane.b32.xlu0 %v18105_v52, %s17727_s27 }
 0x565   :  { %5713 = vadd.xlane.f32.xlu1 %v5712_v58 }
 0x569   :  { %5710 = vadd.xlane.f32.xlu0 %v5709_v19  ;;  %5719 = vadd.xlane.f32.xlu1 %v5718_v29 }
 0x56d   :  { %5716 = vadd.xlane.f32.xlu0 %v5715_v39  ;;  %5722 = vadd.xlane.f32.xlu1 %v5721_v44 }
 0x571   :  { %5725 = vadd.xlane.f32.xlu0 %v5724_v4  ;;  %5731 = vadd.xlane.f32.xlu1 %v5730_v5 }
 0x575   :  { %5728 = vadd.xlane.f32.xlu0 %v5727_v57 }
 0x579   :  { %5734 = vadd.xlane.f32.xlu0 %v5733_v37 }
 0x582   :  { %6846 = vrot.lane.b32.xlu1 %v18110_v59, %s17727_s27 }
 0x586   :  { %7080 = vrot.lane.b32.xlu1 %v17873_v34, %s17728_s28 }
 0x58f   :  { %6923 = vrot.lane.b32.xlu0 %v18108_v56, %s17727_s27 }
 0x593   :  { %7082 = vrot.lane.b32.xlu0 %v17883_v45, %s17728_s28 }
 0x597   :  { %7084 = vrot.lane.b32.xlu0 %v17906_v20, %s17728_s28 }
 0x59b   :  { %7086 = vrot.lane.b32.xlu0 %v17914_v30, %s17728_s28 }
 0x5b0   :  { %v5690_v32 = vpop.xlane.xlu0 %5689 }
 0x5b1   :  { %v5693_v61 = vpop.xlane.xlu1 %5692  ;;  %17530 = vrcp.f32 %v5690_v32 }
 0x5b2   :  { %17532 = vrcp.f32 %v5693_v61 }
 0x5b5   :  { %v5699_v34 = vpop.xlane.xlu1 %5698  ;;  %v5696_v60 = vpop.xlane.xlu0 %5695 }
 0x5b6   :  { %17534 = vrcp.f32 %v5699_v34 }
 0x5b7   :  { %17536 = vrcp.f32 %v5696_v60 }
 0x5b9   :  { %v5705_v46 = vpop.xlane.xlu1 %5704  ;;  %v5702_v45 = vpop.xlane.xlu0 %5701 }
 0x5ba   :  { %17538 = vrcp.f32 %v5705_v46 }
 0x5bb   :  { %17540 = vrcp.f32 %v5702_v45 }
 0x5bd   :  { %v5708_v20 = vpop.xlane.xlu0 %5707 }
 0x5be   :  { %v17531_v51 = vpop.eup %17530  ;;  %17542 = vrcp.f32 %v5708_v20 }
 0x5bf   :  { %v17533_v30 = vpop.eup %17532  ;;  %v5752_v63 = vmul.f32 %v17531_v51, %v18849_v6 }
 0x5c0   :  { %v5753_v58 = vmul.f32 %v17533_v30, %v18851_v21 }
 0x5c1   :  { %16992 = vmatmul.mubr.msk.f32.vlgmr.msra.gmra.mxu1 %vm3096_vm4, %v5752_v63 }
 0x5c2   :  { %16997 = vmatmul.mubr.msk.f32.vlgmr.msra.gmra.mxu0 %vm3096_vm4, %v5753_v58  ;;  %17000 = vmatpush3.msk.msra.mxu1 %vm3100_vm2, %v18832_v8 }
 0x5c3   :  { %v17535_v19 = vpop.eup %17534  ;;  %17005 = vmatpush3.msk.msra.mxu0 %vm3100_vm2, %v18826_v12  ;;  %17001 = vmatprep.mubr.msk.f32.mxu1 %vm17723_vm1, %v21014_v26 }
 0x5c4   :  { %v17537_v29 = vpop.eup %17536  ;;  %17006 = vmatprep.mubr.msk.f32.mxu0 %vm17723_vm1, %v21014_v26  ;;  %17009 = vmatprep.subr.mxu1 %v21014_v26  ;;  %v5755_v6 = vmul.f32 %v17535_v19, %v18857_v48 }
 0x5c5   :  { %17014 = vmatprep.subr.mxu0 %v21014_v26  ;;  %v5754_v21 = vmul.f32 %v17537_v29, %v18859_v50 }
 0x5c6   :  { %17007 = vmatmul.mubr.msk.f32.vlgmr.msra.gmra.mxu0 %vm3096_vm4, %v5755_v6 }
 0x5c7   :  { %v17539_v8 = vpop.eup %17538  ;;  %17002 = vmatmul.mubr.msk.f32.vlgmr.msra.gmra.mxu1 %vm3096_vm4, %v5754_v21  ;;  %17015 = vmatpush3.msk.msra.mxu0 %vm3100_vm2, %v18828_v49 }
 0x5c8   :  { %v17541_v12 = vpop.eup %17540  ;;  %17010 = vmatpush3.msk.msra.mxu1 %vm3100_vm2, %v18836_v9  ;;  %17011 = vmatprep.mubr.msk.f32.mxu1 %vm17723_vm1, %v21014_v26  ;;  %v5757_v48 = vmul.f32 %v17539_v8, %v18865_v7 }
 0x5c9   :  { %17016 = vmatprep.mubr.msk.f32.mxu0 %vm17723_vm1, %v21014_v26  ;;  %17019 = vmatprep.subr.mxu1 %v21014_v26  ;;  %v5756_v50 = vmul.f32 %v17541_v12, %v18867_v38 }
 0x5ca   :  { %17024 = vmatprep.subr.mxu0 %v21014_v26  ;;  %17017 = vmatmul.mubr.msk.f32.vlgmr.msra.gmra.mxu0 %vm3096_vm4, %v5757_v48 }
 0x5cb   :  { %v17543_v49 = vpop.eup %17542  ;;  %17012 = vmatmul.mubr.msk.f32.vlgmr.msra.gmra.mxu1 %vm3096_vm4, %v5756_v50  ;;  %17025 = vmatpush3.msk.msra.mxu0 %vm3100_vm2, %v18830_v25  ;;  %v6693_v25 = vpop.permute.xlu1 %6692 }
 0x5cc   :  { %17020 = vmatpush3.msk.msra.mxu1 %vm3100_vm2, %v18840_v43  ;;  %17021 = vmatprep.mubr.msk.f32.mxu1 %vm17723_vm1, %v21014_v26  ;;  %v5758_v9 = vmul.f32 %v17543_v49, %v18873_v33  ;;  %v6770_v43 = vpop.permute.xlu0 %6769 }
 0x5cd   :  { %17029 = vmatprep.subr.mxu1 %v21014_v26  ;;  %17026 = vmatprep.mubr.msk.f32.mxu0 %vm17723_vm1, %v21014_v26 }
 0x5ce   :  { %17034 = vmatprep.subr.mxu0 %v21014_v26 }
 0x5cf   :  { %17022 = vmatmul.mubr.msk.f32.vlgmr.msra.gmra.mxu1 %vm3096_vm4, %v5758_v9 }
 0x5d0   :  { %17030 = vmatpush3.msk.msra.mxu1 %vm3100_vm2, %v18834_v31  ;;  %17031 = vmatprep.mubr.msk.f32.mxu1 %vm17723_vm1, %v21014_v26 }
 0x5d1   :  { %17039 = vmatprep.subr.mxu1 %v21014_v26 }
 0x5ee   :  { %v5714_v7 = vpop.xlane.xlu1 %5713 }
 0x5ef   :  { %17544 = vrcp.f32 %v5714_v7 }
 0x5f2   :  { %v5720_v38 = vpop.xlane.xlu1 %5719  ;;  %v5711_v33 = vpop.xlane.xlu0 %5710 }
 0x5f3   :  { %17546 = vrcp.f32 %v5720_v38 }
 0x5f4   :  { %17548 = vrcp.f32 %v5711_v33 }
 0x5f6   :  { %v5723_v39 = vpop.xlane.xlu1 %5722  ;;  %v5717_v44 = vpop.xlane.xlu0 %5716 }
 0x5f7   :  { %17550 = vrcp.f32 %v5717_v44 }
 0x5f8   :  { %17552 = vrcp.f32 %v5723_v39 }
 0x5fa   :  { %v5726_v4 = vpop.xlane.xlu0 %5725  ;;  %v5732_v5 = vpop.xlane.xlu1 %5731 }
 0x5fb   :  { %17554 = vrcp.f32 %v5726_v4 }
 0x5fc   :  { %v17545_v31 = vpop.eup %17544  ;;  %17556 = vrcp.f32 %v5732_v5 }
 0x5fd   :  { %v5760_v57 = vmul.f32 %v17545_v31, %v18890_v47 }
 0x5fe   :  { %v5729_v37 = vpop.xlane.xlu0 %5728  ;;  %v6847_v51 = vpop.permute.xlu1 %6846 }
 0x5ff   :  { %17558 = vrcp.f32 %v5729_v37  ;;  %17032 = vmatmul.mubr.msk.f32.vlgmr.msra.gmra.mxu1 %vm3096_vm4, %v5760_v57 }
 0x600   :  { %v17547_v32 = vpop.eup %17546  ;;  %17040 = vmatpush3.msk.msra.mxu1 %vm3100_vm2, %v18940_v11  ;;  %17041 = vmatprep.mubr.msk.f32.mxu1 %vm17723_vm1, %v21014_v26 }
 0x601   :  { %v17549_v61 = vpop.eup %17548  ;;  %17049 = vmatprep.subr.mxu1 %v21014_v26  ;;  %v5762_v34 = vmul.f32 %v17547_v32, %v18896_v36 }
 0x602   :  { %v5735_v60 = vpop.xlane.xlu0 %5734  ;;  %v5759_v47 = vmul.f32 %v17549_v61, %v18892_v27 }
 0x603   :  { %17560 = vrcp.f32 %v5735_v60  ;;  %17042 = vmatmul.mubr.msk.f32.vlgmr.msra.gmra.mxu1 %vm3096_vm4, %v5762_v34  ;;  %v7081_v34 = vpop.permute.xlu1 %7080 }
 0x604   :  { %17027 = vmatmul.mubr.msk.f32.vlgmr.msra.gmra.mxu0 %vm3096_vm4, %v5759_v47  ;;  %17050 = vmatpush3.msk.msra.mxu1 %vm3100_vm2, %v6693_v25  ;;  %v17551_v46 = vpop.eup %17550 }
 0x605   :  { %17035 = vmatpush3.msk.msra.mxu0 %vm3100_vm2, %v18838_v0  ;;  %17036 = vmatprep.mubr.msk.f32.mxu0 %vm17723_vm1, %v21014_v26  ;;  %v5761_v36 = vmul.f32 %v17551_v46, %v18898_v40  ;;  %v17553_v27 = vpop.eup %17552 }
 0x606   :  { %17044 = vmatprep.subr.mxu0 %v21014_v26  ;;  %17051 = vmatprep.mubr.msk.f32.mxu1 %vm17723_vm1, %v21014_v26  ;;  %v5763_v0 = vmul.f32 %v17553_v27, %v18904_v35  ;;  %v6924_v30 = vpop.permute.xlu0 %6923 }
 0x607   :  { %17059 = vmatprep.subr.mxu1 %v21014_v26 }
 0x608   :  { %17037 = vmatmul.mubr.msk.f32.vlgmr.msra.gmra.mxu0 %vm3096_vm4, %v5761_v36  ;;  %v17555_v11 = vpop.eup %17554 }
 0x609   :  { %17045 = vmatpush3.msk.msra.mxu0 %vm3100_vm2, %v18938_v2  ;;  %17046 = vmatprep.mubr.msk.f32.mxu0 %vm17723_vm1, %v21014_v26  ;;  %v5764_v40 = vmul.f32 %v17555_v11, %v18906_v24  ;;  %v17557_v45 = vpop.eup %17556 }
 0x60a   :  { %17054 = vmatprep.subr.mxu0 %v21014_v26  ;;  %v5766_v35 = vmul.f32 %v17557_v45, %v18912_v13  ;;  %v7083_v32 = vpop.permute.xlu0 %7082 }
 0x60b   :  { %17052 = vmatmul.mubr.msk.f32.vlgmr.msra.gmra.mxu1 %vm3096_vm4, %v5764_v40 }
 0x60c   :  { %v17559_v20 = vpop.eup %17558  ;;  %17047 = vmatmul.mubr.msk.f32.vlgmr.msra.gmra.mxu0 %vm3096_vm4, %v5763_v0  ;;  %17060 = vmatpush3.msk.msra.mxu1 %vm3100_vm2, %v6847_v51 }
 0x60d   :  { %17055 = vmatpush3.msk.msra.mxu0 %vm3100_vm2, %v6770_v43  ;;  %v5765_v2 = vmul.f32 %v17559_v20, %v18918_v55  ;;  %17056 = vmatprep.mubr.msk.f32.mxu0 %vm17723_vm1, %v21014_v26 }
 0x60e   :  { %17061 = vmatprep.mubr.msk.f32.mxu1 %vm17723_vm1, %v21014_v26  ;;  %17064 = vmatprep.subr.mxu0 %v21014_v26  ;;  %v7085_v61 = vpop.permute.xlu0 %7084 }
 0x60f   :  { %17062 = vmatmul.mubr.msk.f32.vlgmr.msra.gmra.mxu1 %vm3096_vm4, %v5766_v35 }
 0x610   :  { %v17561_v24 = vpop.eup %17560  ;;  %17057 = vmatmul.mubr.msk.f32.vlgmr.msra.gmra.mxu0 %vm3096_vm4, %v5765_v2 }
 0x611   :  { %17065 = vmatpush3.msk.msra.mxu0 %vm3100_vm2, %v6924_v30  ;;  %17066 = vmatprep.mubr.msk.f32.mxu0 %vm17723_vm1, %v21014_v26  ;;  %v5767_v55 = vmul.f32 %v17561_v24, %v18922_v42 }
 0x612   :  { %17098 = vmatprep.subr.mxu0 %v21014_v26  ;;  %v19094_v60 = vpop.permute.xlu0 %7086 }
 0x614   :  { %17067 = vmatmul.mubr.msk.f32.vlgmr.msra.gmra.mxu0 %vm3096_vm4, %v5767_v55 }
 0x615   :  { %17100 = vmatprep.mubr.msk.f32.mxu0 %vm17723_vm1, %v21014_v26 }
 0x681   :  { %v5841_v13 = vpop.f32.mrf.mxu1 }
 0x682   :  { %v5918_v63 = vpop.f32.mrf.mxu0  ;;  %7016 = vrot.lane.b32.xlu1 %v5841_v13, %s17729_s1 }
 0x683   :  { %7018 = vrot.lane.b32.xlu0 %v5918_v63, %s17729_s1  ;;  %v16993_v58 = vpop.f32.mrf.mxu1 }
 0x684   :  { %v16998_v19 = vpop.f32.mrf.mxu0 }
 0x686   :  { %v6072_v29 = vpop.f32.mrf.mxu0  ;;  %7090 = vrot.lane.b32.xlu1 %v17948_v15, %s17728_s28 }
 0x687   :  { %v5995_v42 = vpop.f32.mrf.mxu1  ;;  %7088 = vrot.lane.b32.xlu0 %v17941_v3, %s17728_s28  ;;  %v7947_v3 = vld [vmem:[%s20988_s2 + $0x18] sm:$0xff] }
 0x688   :  { %v17008_v6 = vpop.f32.mrf.mxu0  ;;  %17069 = vmatprep.subr.mxu1 %v7947_v3 }
 0x689   :  { %v17003_v21 = vpop.f32.mrf.mxu1  ;;  %17070 = vmatpush3.msra.mxu1 %v7947_v3 }
 0x68a   :  { %v6226_v8 = vpop.f32.mrf.mxu0  ;;  %7094 = vrot.lane.b32.xlu1 %v17996_v17, %s17728_s28  ;;  %v7944_v17 = vld [vmem:[%s20988_s2] sm:$0xff] }
 0x68b   :  { %v6149_v12 = vpop.f32.mrf.mxu1  ;;  %7092 = vrot.lane.b32.xlu0 %v17974_v54, %s17728_s28  ;;  %v7945_v54 = vld [vmem:[%s20988_s2 + $0x8] sm:$0xff] }
 0x68c   :  { %v17018_v48 = vpop.f32.mrf.mxu0 }
 0x68d   :  { %v17013_v50 = vpop.f32.mrf.mxu1 }
 0x68e   :  { %7020 = vrot.lane.b32.xlu1 %v5995_v42, %s17729_s1 }
 0x68f   :  { %v6303_v49 = vpop.f32.mrf.mxu1  ;;  %7096 = vrot.lane.b32.xlu0 %v17972_v53, %s17728_s28  ;;  %v7946_v53 = vld [vmem:[%s20988_s2 + $0x10] sm:$0xff] }
 0x690   :  { %17071 = vmatprep.subr.mxu1 %v7946_v53 }
 0x691   :  { %v17023_v15 = vpop.f32.mrf.mxu1  ;;  %17072 = vmatpush3.msra.mxu1 %v7946_v53 }
 0x692   :  { %7098 = vrot.lane.b32.xlu1 %v18035_v16, %s17728_s28  ;;  %17073 = vmatprep.subr.mxu1 %v7945_v54 }
 0x693   :  { %7100 = vrot.lane.b32.xlu0 %v18041_v18, %s17728_s28  ;;  %17074 = vmatpush3.msra.mxu1 %v7945_v54 }
 0x694   :  { %17075 = vmatprep.subr.mxu1 %v7944_v17 }
 0x695   :  { %17076 = vmatpush3.msra.mxu1 %v7944_v17 }
 0x696   :  { %7022 = vrot.lane.b32.xlu1 %v6072_v29, %s17729_s1  ;;  %17138 = vmatprep.subr.mxu1 %v21014_v26 }
 0x697   :  { %7028 = vrot.lane.b32.xlu0 %v6303_v49, %s17729_s1 }
 0x69a   :  { %7024 = vrot.lane.b32.xlu1 %v6149_v12, %s17729_s1 }
 0x69b   :  { %7102 = vrot.lane.b32.xlu0 %v18069_v10, %s17728_s28 }
 0x69e   :  { %7026 = vrot.lane.b32.xlu1 %v6226_v8, %s17729_s1 }
 0x6a2   :  { %7104 = vrot.lane.b32.xlu1 %v18073_v41, %s17728_s28 }
 0x6bf   :  { %v6457_v16 = vpop.f32.mrf.mxu1 }
 0x6c0   :  { %7032 = vrot.lane.b32.xlu0 %v6457_v16, %s17729_s1 }
 0x6c1   :  { %v17033_v18 = vpop.f32.mrf.mxu1 }
 0x6c3   :  { %v6611_v10 = vpop.f32.mrf.mxu1 }
 0x6c4   :  { %v6380_v41 = vpop.f32.mrf.mxu0  ;;  %7036 = vrot.lane.b32.xlu0 %v6611_v10, %s17729_s1 }
 0x6c5   :  { %7030 = vrot.lane.b32.xlu1 %v6380_v41, %s17729_s1  ;;  %v17043_v9 = vpop.f32.mrf.mxu1 }
 0x6c6   :  { %v17028_v25 = vpop.f32.mrf.mxu0 }
 0x6c8   :  { %v6534_v43 = vpop.f32.mrf.mxu0  ;;  %7106 = vrot.lane.b32.xlu0 %v18105_v52, %s17728_s28 }
 0x6c9   :  { %7034 = vrot.lane.b32.xlu1 %v6534_v43, %s17729_s1 }
 0x6ca   :  { %v17038_v7 = vpop.f32.mrf.mxu0 }
 0x6cb   :  { %v6765_v33 = vpop.f32.mrf.mxu1 }
 0x6cc   :  { %v6688_v38 = vpop.f32.mrf.mxu0 }
 0x6cd   :  { %7038 = vrot.lane.b32.xlu1 %v6688_v38, %s17729_s1  ;;  %v17053_v44 = vpop.f32.mrf.mxu1 }
 0x6ce   :  { %v17048_v39 = vpop.f32.mrf.mxu0 }
 0x6cf   :  { %v6919_v5 = vpop.f32.mrf.mxu1 }
 0x6d0   :  { %v6842_v4 = vpop.f32.mrf.mxu0 }
 0x6d1   :  { %7040 = vrot.lane.b32.xlu1 %v6765_v33, %s17729_s1  ;;  %7042 = vrot.lane.b32.xlu0 %v6842_v4, %s17729_s1  ;;  %v17063_v57 = vpop.f32.mrf.mxu1 }
 0x6d2   :  { %v17058_v31 = vpop.f32.mrf.mxu0 }
 0x6d4   :  { %v6996_v37 = vpop.f32.mrf.mxu0 }
 0x6d5   :  { %7044 = vrot.lane.b32.xlu1 %v6919_v5, %s17729_s1  ;;  %7046 = vrot.lane.b32.xlu0 %v6996_v37, %s17729_s1 }
 0x6d6   :  { %v17068_v52 = vpop.f32.mrf.mxu0 }
 0x6d9   :  { %7108 = vrot.lane.b32.xlu1 %v18110_v59, %s17728_s28  ;;  %7110 = vrot.lane.b32.xlu0 %v18108_v56, %s17728_s28 }
 0x6f4   :  { %v7017_v47 = vpop.permute.xlu1 %7016 }
 0x6f5   :  { %v7064_v46 = vsel %vm39_vm0, %v18726_v23, %v7017_v47  ;;  %v7019_v36 = vpop.permute.xlu0 %7018 }
 0x6f6   :  { %v7128_v27 = vadd.f32 %v7081_v34, %v7064_v46  ;;  %v7065_v11 = vsel %vm39_vm0, %v18728_v28, %v7019_v36 }
 0x6f7   :  { %v7129_v0 = vadd.f32 %v7083_v32, %v7065_v11 }
 0x6f8   :  { %v19100_v40 = vmax.f32 %v7128_v27, 0.0  ;;  %v19102_v59 = vpop.permute.xlu1 %7090 }
 0x6f9   :  { %v19104_v56 = vmax.f32 %v7129_v0, 0.0  ;;  %v19106_v45 = vpop.permute.xlu0 %7088 }
 0x6fa   :  { %21026 = vst [vmem:[#allocation18_spill] sm:$0xff] %v19100_v40  ;;  %v7176_v20 = vcombine.high %v19100_v40, %v19100_v40  ;;  %v7183_v23 = vrot.slane %v19100_v40, %v17833_v22 }
 0x6fb   :  { %21027 = vst [vmem:[#allocation19_spill] sm:$0xff] %v19104_v56  ;;  %v7224_v51 = vcombine.high %v19104_v56, %v19104_v56  ;;  %v7231_v28 = vrot.slane %v19104_v56, %v17833_v22 }
 0x6fc   :  { %v7190_v2 = vrot.slane %v7176_v20, %v17833_v22  ;;  %v7191_v35 = vcombine.high %v7183_v23, %v7183_v23  ;;  %v19117_v24 = vpop.permute.xlu1 %7094  ;;  %v7199_v19 = vrot.slane %v7183_v23, %v17833_v22 }
 0x6fd   :  { %v7238_v30 = vrot.slane %v7224_v51, %v17833_v22  ;;  %v7239_v55 = vcombine.high %v7231_v28, %v7231_v28  ;;  %v7247_v13 = vrot.slane %v7231_v28, %v17833_v22  ;;  %v7093_v63 = vpop.permute.xlu0 %7092 }
 0x6fe   :  { %v7192_v58 = vcombine.high %v7190_v2, %v7190_v2  ;;  %v7206_v29 = vrot.slane %v7190_v2, %v17833_v22  ;;  %v7213_v42 = vrot.slane %v7191_v35, %v17833_v22 }
 0x6ff   :  { %v7240_v6 = vcombine.high %v7238_v30, %v7238_v30  ;;  %v7254_v21 = vrot.slane %v7238_v30, %v17833_v22  ;;  %v7261_v8 = vrot.slane %v7239_v55, %v17833_v22  ;;  %v7269_v12 = vcombine.high %v7247_v13, %v7247_v13 }
 0x700   :  { %v7220_v48 = vrot.slane %v7192_v58, %v17833_v22  ;;  %v7948_v50 = vcombine.low %v7199_v19, %v7213_v42  ;;  %v16269_v49 = vcombine.high %v7199_v19, %v7213_v42  ;;  %v7222_v15 = vcombine.high %v7206_v29, %v7206_v29  ;;  %v7021_v3 = vpop.permute.xlu1 %7020 }
 0x701   :  { %v7271_v53 = vcombine.high %v7261_v8, %v7261_v8  ;;  %v7997_v54 = vcombine.low %v7261_v8, %v7269_v12  ;;  %v19127_v17 = vpop.permute.xlu0 %7096  ;;  %v7066_v10 = vsel %vm39_vm0, %v18730_v62, %v7021_v3  ;;  %v7268_v9 = vrot.slane %v7240_v6, %v17833_v22  ;;  %v21031_v12 = vld [vmem:[#allocation7_spill] sm:$0xff] }
 0x702   :  { %v7950_v16 = vcombine.low %v7206_v29, %v7220_v48  ;;  %v7951_v18 = vcombine.low %v7222_v15, %v7247_v13  ;;  %v7958_v41 = vrot.slane %v7948_v50, %v17833_v22  ;;  %v7130_v43 = vadd.f32 %v7085_v61, %v7066_v10 }
 0x703   :  { %v7998_v25 = vcombine.low %v7271_v53, %v7254_v21  ;;  %v7270_v7 = vcombine.high %v7254_v21, %v7254_v21  ;;  %v7965_v33 = vrot.slane %v16269_v49, %v17833_v22  ;;  %v8007_v31 = vrot.slane %v7997_v54, %v17833_v22 }
 0x704   :  { %v19133_v38 = vpop.permute.xlu1 %7098  ;;  %v7972_v39 = vrot.slane %v7950_v16, %v17833_v22  ;;  %v7979_v44 = vrot.slane %v7951_v18, %v17833_v22  ;;  %v19139_v5 = vmax.f32 %v7130_v43, 0.0  ;;  %v21033_v43 = vld [vmem:[#allocation9_spill] sm:$0xff] }
 0x705   :  { %v8014_v4 = vrot.slane %v7998_v25, %v17833_v22  ;;  %v19141_v62 = vpop.permute.xlu0 %7100  ;;  %v7980_v57 = vcombine.low %v7958_v41, %v7965_v33  ;;  %v7999_v61 = vcombine.low %v7268_v9, %v7270_v7 }
 0x706   :  { %21028 = vst [vmem:[#allocation20_spill] sm:$0xff] %v19139_v5  ;;  %v7981_v37 = vcombine.low %v7972_v39, %v7979_v44  ;;  %v7272_v52 = vcombine.high %v19139_v5, %v19139_v5  ;;  %v7279_v32 = vrot.slane %v19139_v5, %v17833_v22 }
 0x707   :  { %v7988_v47 = vrot.slane %v7980_v57, %v17833_v22  ;;  %v19150_v36 = vcombine.low %v8007_v31, %v8014_v4  ;;  %v8021_v58 = vrot.slane %v7999_v61, %v17833_v22 }
 0x708   :  { %v7023_v34 = vpop.permute.xlu1 %7022  ;;  %v7995_v46 = vrot.slane %v7981_v37, %v17833_v22  ;;  %v7286_v27 = vrot.slane %v7272_v52, %v17833_v22  ;;  %v7287_v11 = vcombine.high %v7279_v32, %v7279_v32  ;;  %v7295_v23 = vrot.slane %v7279_v32, %v17833_v22 }
 0x709   :  { %v7067_v0 = vsel %vm39_vm0, %v18732_v1, %v7023_v34  ;;  %v7029_v20 = vpop.permute.xlu0 %7028 }
 0x70a   :  { %v7131_v51 = vadd.f32 %v19094_v60, %v7067_v0  ;;  %v7070_v28 = vsel %vm39_vm0, %v18736_v14, %v7029_v20  ;;  %v7996_v2 = vcombine.low %v7988_v47, %v7995_v46  ;;  %v7288_v35 = vcombine.high %v7286_v27, %v7286_v27 }
 0x70b   :  { %v7302_v30 = vrot.slane %v7286_v27, %v17833_v22  ;;  %v7309_v55 = vrot.slane %v7287_v11, %v17833_v22  ;;  %v7134_v13 = vadd.f32 %v7093_v63, %v7070_v28  ;;  %v8037_v60 = vrot.slane %v19150_v36, %v17833_v22 }
 0x70c   :  { %v19162_v19 = vmax.f32 %v7131_v51, 0.0  ;;  %v7025_v1 = vpop.permute.xlu1 %7024  ;;  %17077 = vmatprep.mubr.msk.f32.mxu1 %vm8634_vm5, %v7996_v2  ;;  %v7316_v29 = vrot.slane %v7288_v35, %v17833_v22 }
 0x70d   :  { %v8000_v14 = vcombine.low %v7295_v23, %v7309_v55  ;;  %v16270_v42 = vcombine.high %v7295_v23, %v7309_v55  ;;  %v7318_v6 = vcombine.high %v7302_v30, %v7302_v30  ;;  %v19172_v8 = vmax.f32 %v7134_v13, 0.0 }
 0x70e   :  { %21029 = vst [vmem:[#allocation21_spill] sm:$0xff] %v19162_v19  ;;  %v7320_v21 = vcombine.high %v19162_v19, %v19162_v19  ;;  %v7327_v63 = vrot.slane %v19162_v19, %v17833_v22  ;;  %v7068_v48 = vsel %vm39_vm0, %v21031_v12, %v7025_v1  ;;  %v8047_v49 = vcombine.low %v7302_v30, %v7316_v29 }
 0x70f   :  { %21030 = vst [vmem:[#allocation22_spill] sm:$0xff] %v19172_v8  ;;  %v8028_v50 = vrot.slane %v8000_v14, %v17833_v22  ;;  %v7132_v15 = vadd.f32 %v19106_v45, %v7068_v48  ;;  %v8056_v3 = vrot.slane %v16270_v42, %v17833_v22  ;;  %v7464_v18 = vcombine.high %v19172_v8, %v19172_v8 }
 0x710   :  { %v7334_v53 = vrot.slane %v7320_v21, %v17833_v22  ;;  %v7335_v54 = vcombine.high %v7327_v63, %v7327_v63  ;;  %v7343_v16 = vrot.slane %v7327_v63, %v17833_v22  ;;  %v7027_v10 = vpop.permute.xlu1 %7026  ;;  %v7471_v9 = vrot.slane %v19172_v8, %v17833_v22 }
 0x711   :  { %v8030_v41 = vcombine.low %v8021_v58, %v8028_v50  ;;  %v19185_v25 = vmax.f32 %v7132_v15, 0.0  ;;  %v7069_v45 = vsel %vm39_vm0, %v21033_v43, %v7027_v10  ;;  %v7478_v31 = vrot.slane %v7464_v18, %v17833_v22 }
 0x712   :  { %v7336_v7 = vcombine.high %v7334_v53, %v7334_v53  ;;  %v7350_v33 = vrot.slane %v7334_v53, %v17833_v22  ;;  %v7357_v39 = vrot.slane %v7335_v54, %v17833_v22  ;;  %v7365_v44 = vcombine.high %v7343_v16, %v7343_v16 }
 0x713   :  { %21032 = vst [vmem:[#allocation7_spill] sm:$0xff] %v19185_v25  ;;  %v8048_v4 = vcombine.low %v7318_v6, %v7343_v16  ;;  %v7479_v57 = vcombine.high %v7471_v9, %v7471_v9  ;;  %v19193_v37 = vrot.slane %v7471_v9, %v17833_v22  ;;  %v7480_v47 = vcombine.high %v7478_v31, %v7478_v31 }
 0x714   :  { %v7364_v52 = vrot.slane %v7336_v7, %v17833_v22  ;;  %v7366_v32 = vcombine.high %v7350_v33, %v7350_v33  ;;  %v7367_v61 = vcombine.high %v7357_v39, %v7357_v39  ;;  %v8049_v34 = vcombine.low %v7357_v39, %v7365_v44 }
 0x715   :  { %v19197_v46 = vrot.slane %v7478_v31, %v17833_v22  ;;  %v19200_v36 = vrot.slane %v7479_v57, %v17833_v22  ;;  %v7368_v27 = vcombine.high %v19185_v25, %v19185_v25  ;;  %v7375_v0 = vrot.slane %v19185_v25, %v17833_v22 }
 0x716   :  { %v8095_v11 = vcombine.low %v7367_v61, %v7350_v33  ;;  %v7133_v20 = vadd.f32 %v19102_v59, %v7069_v45  ;;  %v8044_v23 = vrot.slane %v8030_v41, %v17833_v22  ;;  %v7508_v51 = vrot.slane %v7480_v47, %v17833_v22 }
 0x717   :  { %v8194_v28 = vcombine.low %v19193_v37, %v19200_v36  ;;  %v16272_v2 = vcombine.high %v19193_v37, %v19200_v36  ;;  %v7382_v35 = vrot.slane %v7368_v27, %v17833_v22  ;;  %v7383_v30 = vcombine.high %v7375_v0, %v7375_v0 }
 0x718   :  { %v7391_v55 = vrot.slane %v7375_v0, %v17833_v22  ;;  %v19215_v13 = vmax.f32 %v7133_v20, 0.0  ;;  %v8045_v58 = vcombine.low %v8037_v60, %v8044_v23  ;;  %v8196_v59 = vcombine.low %v19197_v46, %v7508_v51 }
 0x719   :  { %v7384_v1 = vcombine.high %v7382_v35, %v7382_v35  ;;  %v7398_v29 = vrot.slane %v7382_v35, %v17833_v22  ;;  %v8063_v14 = vrot.slane %v8047_v49, %v17833_v22  ;;  %v7405_v42 = vrot.slane %v7383_v30, %v17833_v22 }
 0x71a   :  { %21034 = vst [vmem:[#allocation9_spill] sm:$0xff] %v19215_v13  ;;  %v7416_v6 = vcombine.high %v19215_v13, %v19215_v13  ;;  %v7423_v21 = vrot.slane %v19215_v13, %v17833_v22  ;;  %17078 = vmatmul.mubr.msk.f32.vlgmr.msra.gmra.mxu1 %vm8634_vm5, %v8045_v58  ;;  %v8070_v63 = vrot.slane %v8048_v4, %v17833_v22 }
 0x71b   :  { %v7412_v60 = vrot.slane %v7384_v1, %v17833_v22  ;;  %v7414_v12 = vcombine.high %v7398_v29, %v7398_v29  ;;  %v8077_v48 = vrot.slane %v8049_v34, %v17833_v22  ;;  %v8078_v50 = vcombine.low %v8056_v3, %v8063_v14 }
 0x71c   :  { %v8097_v15 = vcombine.low %v7391_v55, %v7405_v42  ;;  %v16271_v49 = vcombine.high %v7391_v55, %v7405_v42  ;;  %v7430_v53 = vrot.slane %v7416_v6, %v17833_v22  ;;  %v7431_v54 = vcombine.high %v7423_v21, %v7423_v21 }
 0x71d   :  { %v8144_v16 = vcombine.low %v7398_v29, %v7412_v60  ;;  %v7439_v18 = vrot.slane %v7423_v21, %v17833_v22  ;;  %v8079_v10 = vcombine.low %v8070_v63, %v8077_v48  ;;  %v8086_v41 = vrot.slane %v8078_v50, %v17833_v22 }
 0x71e   :  { %v7432_v9 = vcombine.high %v7430_v53, %v7430_v53  ;;  %v7446_v43 = vrot.slane %v7430_v53, %v17833_v22  ;;  %v7453_v45 = vrot.slane %v7431_v54, %v17833_v22  ;;  %v8096_v7 = vcombine.low %v7364_v52, %v7366_v32  ;;  %v21035_v53 = vld [vmem:[#allocation8_spill] sm:$0xff] }
 0x71f   :  { %v7461_v33 = vcombine.high %v7439_v18, %v7439_v18  ;;  %v8145_v39 = vcombine.low %v7414_v12, %v7439_v18  ;;  %v8093_v3 = vrot.slane %v8079_v10, %v17833_v22  ;;  %v8105_v44 = vrot.slane %v8095_v11, %v17833_v22 }
 0x720   :  { %v7460_v4 = vrot.slane %v7432_v9, %v17833_v22  ;;  %v7462_v31 = vcombine.high %v7446_v43, %v7446_v43  ;;  %v7463_v57 = vcombine.high %v7453_v45, %v7453_v45  ;;  %v8112_v37 = vrot.slane %v8096_v7, %v17833_v22  ;;  %v21037_v9 = vld [vmem:[#allocation12_spill] sm:$0xff] }
 0x721   :  { %v8146_v61 = vcombine.low %v7453_v45, %v7461_v33  ;;  %v8094_v34 = vcombine.low %v8086_v41, %v8093_v3  ;;  %v8119_v47 = vrot.slane %v8097_v15, %v17833_v22  ;;  %v8126_v36 = vrot.slane %v16271_v49, %v17833_v22  ;;  %v19260_v49 = vpop.permute.xlu1 %7104  ;;  %v21038_v33 = vld [vmem:[#allocation10_spill] sm:$0xff] }
 0x722   :  { %v8147_v27 = vcombine.low %v7463_v57, %v7446_v43  ;;  %v8127_v52 = vcombine.low %v8105_v44, %v8112_v37  ;;  %v8154_v32 = vrot.slane %v8144_v16, %v17833_v22  ;;  %v8161_v0 = vrot.slane %v8145_v39, %v17833_v22 }
 0x723   :  { %17080 = vmatprep.mubr.msk.f32.mxu1 %vm8634_vm5, %v8094_v34  ;;  %v8128_v11 = vcombine.low %v8119_v47, %v8126_v36  ;;  %v8168_v20 = vrot.slane %v8146_v61, %v17833_v22  ;;  %v8193_v23 = vcombine.low %v7460_v4, %v7462_v31  ;;  %v8210_v55 = vrot.slane %v8194_v28, %v17833_v22 }
 0x724   :  { %v8135_v51 = vrot.slane %v8127_v52, %v17833_v22  ;;  %v8175_v35 = vrot.slane %v8147_v27, %v17833_v22  ;;  %v8176_v30 = vcombine.low %v8154_v32, %v8161_v0  ;;  %v8217_v29 = vrot.slane %v16272_v2, %v17833_v22  ;;  %v19258_v2 = vpop.permute.xlu0 %7102  ;;  %v21041_v32 = vld [vmem:[#allocation11_spill] sm:$0xff] }
 0x725   :  { %v8142_v58 = vrot.slane %v8128_v11, %v17833_v22  ;;  %v8203_v1 = vrot.slane %v8193_v23, %v17833_v22  ;;  %v8224_v14 = vrot.slane %v8196_v59, %v17833_v22  ;;  %v7510_v61 = vcombine.high %v19197_v46, %v19197_v46 }
 0x726   :  { %v8177_v42 = vcombine.low %v8168_v20, %v8175_v35  ;;  %v8184_v60 = vrot.slane %v8176_v30, %v17833_v22 }
 0x727   :  { %v8143_v6 = vcombine.low %v8135_v51, %v8142_v58  ;;  %v8225_v21 = vcombine.low %v8203_v1, %v8210_v55  ;;  %v8226_v63 = vcombine.low %v8217_v29, %v8224_v14 }
 0x728   :  { %v8191_v12 = vrot.slane %v8177_v42, %v17833_v22 }
 0x729   :  { %17081 = vmatmul.mubr.msk.f32.gmra.mxu1 %vm8634_vm5, %v8143_v6  ;;  %v8233_v28 = vrot.slane %v8225_v21, %v17833_v22  ;;  %v8240_v48 = vrot.slane %v8226_v63, %v17833_v22 }
 0x72a   :  { %v8192_v50 = vcombine.low %v8184_v60, %v8191_v12 }
 0x72b   :  { %v8241_v15 = vcombine.low %v8233_v28, %v8240_v48 }
 0x72c   :  { %17083 = vmatprep.mubr.msk.f32.mxu1 %vm8634_vm5, %v8192_v50 }
 0x72d   :  { %17084 = vmatmul.mubr.msk.f32.gmra.mxu1 %vm8634_vm5, %v8241_v15 }
 0x732   :  { %v7033_v59 = vpop.permute.xlu0 %7032 }
 0x733   :  { %v7072_v54 = vsel %vm39_vm0, %v21035_v53, %v7033_v59 }
 0x734   :  { %v7136_v16 = vadd.f32 %v19127_v17, %v7072_v54 }
 0x736   :  { %v19265_v18 = vmax.f32 %v7136_v16, 0.0  ;;  %v7037_v10 = vpop.permute.xlu0 %7036 }
 0x737   :  { %v7031_v41 = vpop.permute.xlu1 %7030  ;;  %v7074_v43 = vsel %vm39_vm0, %v21037_v9, %v7037_v10 }
 0x738   :  { %21036 = vst [vmem:[#allocation8_spill] sm:$0xff] %v19265_v18  ;;  %v7560_v45 = vcombine.high %v19265_v18, %v19265_v18  ;;  %v7567_v7 = vrot.slane %v19265_v18, %v17833_v22  ;;  %v7071_v39 = vsel %vm39_vm0, %v21038_v33, %v7031_v41  ;;  %v7138_v3 = vadd.f32 %v19141_v62, %v7074_v43 }
 0x739   :  { %v7135_v17 = vadd.f32 %v19117_v24, %v7071_v39 }
 0x73a   :  { %v7574_v44 = vrot.slane %v7560_v45, %v17833_v22  ;;  %v7575_v4 = vcombine.high %v7567_v7, %v7567_v7  ;;  %v19278_v31 = vmax.f32 %v7138_v3, 0.0  ;;  %v19281_v57 = vrot.slane %v7567_v7, %v17833_v22  ;;  %v7107_v1 = vpop.permute.xlu0 %7106  ;;  %v21043_v3 = vld [vmem:[#allocation14_spill] sm:$0xff] }
 0x73b   :  { %v19283_v37 = vmax.f32 %v7135_v17, 0.0  ;;  %v7035_v34 = vpop.permute.xlu1 %7034 }
 0x73c   :  { %21039 = vst [vmem:[#allocation12_spill] sm:$0xff] %v19278_v31  ;;  %v7576_v47 = vcombine.high %v7574_v44, %v7574_v44  ;;  %v19288_v36 = vrot.slane %v7574_v44, %v17833_v22  ;;  %v19291_v24 = vrot.slane %v7575_v4, %v17833_v22  ;;  %v7656_v62 = vcombine.high %v19278_v31, %v19278_v31 }
 0x73d   :  { %21040 = vst [vmem:[#allocation10_spill] sm:$0xff] %v19283_v37  ;;  %v7512_v27 = vcombine.high %v19283_v37, %v19283_v37  ;;  %v7519_v52 = vrot.slane %v19283_v37, %v17833_v22  ;;  %v7663_v46 = vrot.slane %v19278_v31, %v17833_v22  ;;  %v7073_v0 = vsel %vm39_vm0, %v21041_v32, %v7035_v34 }
 0x73e   :  { %v19304_v11 = vrot.slane %v7576_v47, %v17833_v22  ;;  %v7670_v51 = vrot.slane %v7656_v62, %v17833_v22  ;;  %v7137_v59 = vadd.f32 %v19133_v38, %v7073_v0  ;;  %v7606_v39 = vcombine.high %v19288_v36, %v19288_v36  ;;  %v21044_v47 = vld [vmem:[#allocation13_spill] sm:$0xff] }
 0x73f   :  { %v7526_v35 = vrot.slane %v7512_v27, %v17833_v22  ;;  %v7527_v30 = vcombine.high %v7519_v52, %v7519_v52  ;;  %v7535_v55 = vrot.slane %v7519_v52, %v17833_v22  ;;  %v7671_v58 = vcombine.high %v7663_v46, %v7663_v46  ;;  %v7039_v29 = vpop.permute.xlu1 %7038  ;;  %v21045_v52 = vld [vmem:[#allocation15_spill] sm:$0xff] }
 0x740   :  { %v7672_v42 = vcombine.high %v7670_v51, %v7670_v51  ;;  %v19316_v6 = vrot.slane %v7663_v46, %v17833_v22  ;;  %v19319_v21 = vrot.slane %v7670_v51, %v17833_v22  ;;  %v19341_v33 = vmax.f32 %v7137_v59, 0.0 }
 0x741   :  { %v7528_v63 = vcombine.high %v7526_v35, %v7526_v35  ;;  %v7542_v60 = vrot.slane %v7526_v35, %v17833_v22  ;;  %v7549_v12 = vrot.slane %v7527_v30, %v17833_v22  ;;  %v7557_v28 = vcombine.high %v7535_v55, %v7535_v55 }
 0x742   :  { %v19323_v48 = vcombine.low %v7510_v61, %v7535_v55  ;;  %v19326_v50 = vrot.slane %v7671_v58, %v17833_v22  ;;  %v19329_v15 = vrot.slane %v7672_v42, %v17833_v22  ;;  %21042 = vst [vmem:[#allocation11_spill] sm:$0xff] %v19341_v33  ;;  %v7075_v17 = vsel %vm39_vm0, %v21043_v3, %v7039_v29  ;;  %v21048_v42 = vld [vmem:[#allocation16_spill] sm:$0xff] }
 0x743   :  { %v7556_v53 = vrot.slane %v7528_v63, %v17833_v22  ;;  %v7558_v54 = vcombine.high %v7542_v60, %v7542_v60  ;;  %v7559_v16 = vcombine.high %v7549_v12, %v7549_v12  ;;  %v19333_v10 = vcombine.low %v7549_v12, %v7557_v28  ;;  %v7041_v41 = vpop.permute.xlu1 %7040  ;;  %v7043_v9 = vpop.permute.xlu0 %7042 }
 0x744   :  { %v7702_v44 = vcombine.high %v19319_v21, %v19319_v21  ;;  %v7608_v4 = vcombine.high %v19341_v33, %v19341_v33  ;;  %v7615_v61 = vrot.slane %v19341_v33, %v17833_v22  ;;  %v7139_v34 = vadd.f32 %v19258_v2, %v7075_v17 }
 0x745   :  { %v19343_v38 = vcombine.low %v7559_v16, %v7542_v60  ;;  %v7076_v62 = vsel %vm39_vm0, %v21044_v47, %v7041_v41  ;;  %v7077_v46 = vsel %vm39_vm0, %v21045_v52, %v7043_v9  ;;  %v19361_v51 = vcombine.low %v7556_v53, %v7558_v54  ;;  %v21049_v60 = vld [vmem:[#allocation17_spill] sm:$0xff] }
 0x746   :  { %v7140_v27 = vadd.f32 %v19260_v49, %v7076_v62  ;;  %v8252_v35 = vrot.slane %v19323_v48, %v17833_v22  ;;  %v7622_v30 = vrot.slane %v7608_v4, %v17833_v22  ;;  %v7623_v55 = vcombine.high %v7615_v61, %v7615_v61 }
 0x747   :  { %v7045_v32 = vpop.permute.xlu1 %7044  ;;  %v7047_v0 = vpop.permute.xlu0 %7046  ;;  %v7631_v2 = vrot.slane %v7615_v61, %v17833_v22  ;;  %v19367_v58 = vmax.f32 %v7139_v34, 0.0  ;;  %v7141_v49 = vadd.f32 %v7107_v1, %v7077_v46 }
 0x748   :  { %v19369_v29 = vmax.f32 %v7140_v27, 0.0  ;;  %v7078_v63 = vsel %vm39_vm0, %v21048_v42, %v7045_v32  ;;  %v7079_v12 = vsel %vm39_vm0, %v21049_v60, %v7047_v0  ;;  %v7624_v28 = vcombine.high %v7622_v30, %v7622_v30 }
 0x749   :  { %21046 = vst [vmem:[#allocation14_spill] sm:$0xff] %v19367_v58  ;;  %v19376_v59 = vrot.slane %v7622_v30, %v17833_v22  ;;  %v7645_v53 = vrot.slane %v7623_v55, %v17833_v22  ;;  %v7653_v54 = vcombine.high %v7631_v2, %v7631_v2  ;;  %v19379_v16 = vcombine.low %v7606_v39, %v7631_v2 }
 0x74a   :  { %21047 = vst [vmem:[#allocation13_spill] sm:$0xff] %v19369_v29  ;;  %v7704_v41 = vcombine.high %v19367_v58, %v19367_v58  ;;  %v7711_v1 = vrot.slane %v19367_v58, %v17833_v22  ;;  %v7752_v9 = vcombine.high %v19369_v29, %v19369_v29  ;;  %v19388_v17 = vrot.slane %v7624_v28, %v17833_v22 }
 0x74b   :  { %v7109_v3 = vpop.permute.xlu1 %7108  ;;  %v7655_v61 = vcombine.high %v7645_v53, %v7645_v53  ;;  %v19392_v34 = vcombine.low %v7645_v53, %v7653_v54  ;;  %v7759_v27 = vrot.slane %v19369_v29, %v17833_v22  ;;  %v19402_v32 = vmax.f32 %v7141_v49, 0.0 }
 0x74c   :  { %v7718_v39 = vrot.slane %v7704_v41, %v17833_v22  ;;  %v7719_v47 = vcombine.high %v7711_v1, %v7711_v1  ;;  %v7727_v62 = vrot.slane %v7711_v1, %v17833_v22  ;;  %v7766_v46 = vrot.slane %v7752_v9, %v17833_v22  ;;  %v7111_v41 = vpop.permute.xlu0 %7110 }
 0x74d   :  { %v19399_v52 = vcombine.low %v7655_v61, %v19376_v59  ;;  %21050 = vst [vmem:[#allocation15_spill] sm:$0xff] %v19402_v32  ;;  %v7142_v0 = vadd.f32 %v7109_v3, %v7078_v63  ;;  %v7767_v28 = vcombine.high %v7759_v27, %v7759_v27  ;;  %v19411_v54 = vrot.slane %v7759_v27, %v17833_v22 }
 0x74e   :  { %v7720_v30 = vcombine.high %v7718_v39, %v7718_v39  ;;  %v19405_v55 = vrot.slane %v7718_v39, %v17833_v22  ;;  %v7741_v2 = vrot.slane %v7719_v47, %v17833_v22  ;;  %v7749_v42 = vcombine.high %v7727_v62, %v7727_v62 }
 0x74f   :  { %v19408_v60 = vcombine.low %v7702_v44, %v7727_v62  ;;  %v7768_v53 = vcombine.high %v7766_v46, %v7766_v46  ;;  %v19421_v3 = vrot.slane %v7766_v46, %v17833_v22  ;;  %v19424_v44 = vrot.slane %v7767_v28, %v17833_v22 }
 0x750   :  { %v19414_v1 = vrot.slane %v7720_v30, %v17833_v22  ;;  %v7751_v63 = vcombine.high %v7741_v2, %v7741_v2  ;;  %v19418_v9 = vcombine.low %v7741_v2, %v7749_v42  ;;  %v7800_v39 = vcombine.high %v19402_v32, %v19402_v32 }
 0x751   :  { %v19427_v61 = vrot.slane %v7768_v53, %v17833_v22  ;;  %v7807_v62 = vrot.slane %v19402_v32, %v17833_v22  ;;  %v19436_v27 = vmax.f32 %v7142_v0, 0.0  ;;  %v7143_v30 = vadd.f32 %v7111_v41, %v7079_v12 }
 0x752   :  { %v19432_v47 = vcombine.low %v7751_v63, %v19405_v55  ;;  %v7798_v28 = vcombine.high %v19421_v3, %v19421_v3  ;;  %v7814_v53 = vrot.slane %v7800_v39, %v17833_v22  ;;  %v8259_v2 = vrot.slane %v19333_v10, %v17833_v22 }
 0x753   :  { %21051 = vst [vmem:[#allocation16_spill] sm:$0xff] %v19436_v27  ;;  %v7815_v63 = vcombine.high %v7807_v62, %v7807_v62  ;;  %v7823_v49 = vrot.slane %v7807_v62, %v17833_v22  ;;  %v7848_v12 = vcombine.high %v19436_v27, %v19436_v27  ;;  %v7855_v0 = vrot.slane %v19436_v27, %v17833_v22 }
 0x754   :  { %v19452_v41 = vmax.f32 %v7143_v30, 0.0  ;;  %v8266_v42 = vrot.slane %v19343_v38, %v17833_v22  ;;  %v7816_v46 = vcombine.high %v7814_v53, %v7814_v53  ;;  %v19459_v39 = vrot.slane %v7814_v53, %v17833_v22 }
 0x755   :  { %v7837_v62 = vrot.slane %v7815_v63, %v17833_v22  ;;  %v7845_v7 = vcombine.high %v7823_v49, %v7823_v49  ;;  %v19462_v45 = vcombine.low %v7798_v28, %v7823_v49  ;;  %v7862_v43 = vrot.slane %v7848_v12, %v17833_v22 }
 0x756   :  { %21052 = vst [vmem:[#allocation17_spill] sm:$0xff] %v19452_v41  ;;  %v7863_v4 = vcombine.high %v7855_v0, %v7855_v0  ;;  %v7871_v30 = vrot.slane %v7855_v0, %v17833_v22  ;;  %v19467_v14 = vrot.slane %v7816_v46, %v17833_v22  ;;  %v7896_v28 = vcombine.high %v19452_v41, %v19452_v41 }
 0x757   :  { %v7847_v38 = vcombine.high %v7837_v62, %v7837_v62  ;;  %v19471_v23 = vcombine.low %v7837_v62, %v7845_v7  ;;  %v7864_v53 = vcombine.high %v7862_v43, %v7862_v43  ;;  %v19474_v63 = vrot.slane %v7862_v43, %v17833_v22 }
 0x758   :  { %v7885_v49 = vrot.slane %v7863_v4, %v17833_v22  ;;  %v7903_v46 = vrot.slane %v19452_v41, %v17833_v22  ;;  %v8273_v0 = vrot.slane %v19361_v51, %v17833_v22  ;;  %v8274_v7 = vcombine.low %v8252_v35, %v8259_v2 }
 0x759   :  { %v19480_v12 = vcombine.low %v7847_v38, %v19459_v39  ;;  %v19490_v43 = vrot.slane %v7864_v53, %v17833_v22  ;;  %v7894_v10 = vcombine.high %v19474_v63, %v19474_v63  ;;  %v7910_v38 = vrot.slane %v7896_v28, %v17833_v22 }
 0x75a   :  { %v8537_v4 = vcombine.low %v7871_v30, %v7885_v49  ;;  %v16276_v62 = vcombine.high %v7871_v30, %v7885_v49  ;;  %v7911_v20 = vcombine.high %v7903_v46, %v7903_v46  ;;  %v7919_v41 = vrot.slane %v7903_v46, %v17833_v22 }
 0x75b   :  { %v8275_v27 = vcombine.low %v8266_v42, %v8273_v0  ;;  %v8539_v51 = vcombine.low %v19474_v63, %v19490_v43  ;;  %v8282_v2 = vrot.slane %v8274_v7, %v17833_v22  ;;  %v7912_v30 = vcombine.high %v7910_v38, %v7910_v38 }
 0x75c   :  { %v19499_v48 = vrot.slane %v8537_v4, %v17833_v22  ;;  %v19502_v35 = vrot.slane %v16276_v62, %v17833_v22  ;;  %v7926_v53 = vrot.slane %v7910_v38, %v17833_v22  ;;  %v7933_v49 = vrot.slane %v7911_v20, %v17833_v22 }
 0x75d   :  { %v7941_v28 = vcombine.high %v7919_v41, %v7919_v41  ;;  %v19507_v29 = vcombine.low %v7894_v10, %v7919_v41  ;;  %v8289_v42 = vrot.slane %v8275_v27, %v17833_v22  ;;  %v21053_v63 = vcombine.low %v19281_v57, %v19291_v24 }
 0x75e   :  { %v21054_v0 = vcombine.high %v19281_v57, %v19291_v24  ;;  %v7940_v43 = vrot.slane %v7912_v30, %v17833_v22  ;;  %v7942_v4 = vcombine.high %v7926_v53, %v7926_v53  ;;  %v7943_v62 = vcombine.high %v7933_v49, %v7933_v49 }
 0x75f   :  { %v8301_v46 = vrot.slane %v21053_v63, %v17833_v22  ;;  %v8586_v20 = vcombine.low %v7933_v49, %v7941_v28  ;;  %v8595_v41 = vrot.slane %v19507_v29, %v17833_v22  ;;  %v8290_v10 = vcombine.low %v8282_v2, %v8289_v42 }
 0x760   :  { %v8308_v7 = vrot.slane %v21054_v0, %v17833_v22  ;;  %v21055_v27 = vcombine.low %v19288_v36, %v19304_v11  ;;  %v8322_v63 = vrot.slane %v19379_v16, %v17833_v22  ;;  %v8587_v32 = vcombine.low %v7943_v62, %v7926_v53 }
 0x761   :  { %v8588_v57 = vcombine.low %v7940_v43, %v7942_v4  ;;  %v21056_v30 = vcombine.high %v19376_v59, %v19376_v59  ;;  %17086 = vmatprep.mubr.msk.f32.mxu1 %vm8634_vm5, %v8290_v10  ;;  %v8350_v2 = vrot.slane %v19392_v34, %v17833_v22  ;;  %v8357_v36 = vrot.slane %v19399_v52, %v17833_v22 }
 0x762   :  { %v8315_v38 = vrot.slane %v21055_v27, %v17833_v22  ;;  %v8323_v24 = vcombine.low %v8301_v46, %v8308_v7  ;;  %v21057_v11 = vcombine.low %v19316_v6, %v19326_v50  ;;  %v21059_v34 = vcombine.low %v19319_v21, %v19329_v15 }
 0x763   :  { %v8342_v49 = vcombine.low %v19388_v17, %v21056_v30  ;;  %v21058_v17 = vcombine.high %v19316_v6, %v19326_v50  ;;  %v8372_v46 = vcombine.low %v8350_v2, %v8357_v36  ;;  %v8413_v0 = vrot.slane %v19408_v60, %v17833_v22 }
 0x764   :  { %v8324_v29 = vcombine.low %v8315_v38, %v8322_v63  ;;  %v8371_v16 = vrot.slane %v21057_v11, %v17833_v22  ;;  %v8331_v53 = vrot.slane %v8323_v24, %v17833_v22  ;;  %v8406_v42 = vrot.slane %v21059_v34, %v17833_v22 }
 0x765   :  { %v8364_v59 = vrot.slane %v8342_v49, %v17833_v22  ;;  %v8399_v28 = vrot.slane %v21058_v17, %v17833_v22  ;;  %v8420_v7 = vrot.slane %v19418_v9, %v17833_v22  ;;  %v21060_v6 = vcombine.high %v19405_v55, %v19405_v55 }
 0x766   :  { %v8338_v52 = vrot.slane %v8324_v29, %v17833_v22  ;;  %v8448_v21 = vrot.slane %v19432_v47, %v17833_v22  ;;  %v8380_v62 = vrot.slane %v8372_v46, %v17833_v22  ;;  %v21061_v60 = vcombine.low %v19411_v54, %v19424_v44 }
 0x767   :  { %v8373_v43 = vcombine.low %v8364_v59, %v8371_v16  ;;  %v8421_v4 = vcombine.low %v8399_v28, %v8406_v42  ;;  %v8439_v50 = vcombine.low %v19414_v1, %v21060_v6  ;;  %v8422_v10 = vcombine.low %v8413_v0, %v8420_v7 }
 0x768   :  { %v8339_v15 = vcombine.low %v8331_v53, %v8338_v52  ;;  %v8462_v27 = vrot.slane %v21061_v60, %v17833_v22  ;;  %v21062_v1 = vcombine.high %v19411_v54, %v19424_v44  ;;  %v21063_v24 = vcombine.low %v19421_v3, %v19427_v61 }
 0x769   :  { %v8387_v9 = vrot.slane %v8373_v43, %v17833_v22  ;;  %v8429_v38 = vrot.slane %v8421_v4, %v17833_v22  ;;  %v8455_v55 = vrot.slane %v8439_v50, %v17833_v22  ;;  %v8436_v63 = vrot.slane %v8422_v10, %v17833_v22 }
 0x76a   :  { %v8469_v47 = vrot.slane %v21062_v1, %v17833_v22  ;;  %17087 = vmatmul.mubr.msk.f32.gmra.mxu1 %vm8634_vm5, %v8339_v15  ;;  %v8497_v30 = vrot.slane %v21063_v24, %v17833_v22  ;;  %v8504_v49 = vrot.slane %v19462_v45, %v17833_v22  ;;  %v8511_v29 = vrot.slane %v19471_v23, %v17833_v22 }
 0x76b   :  { %v8388_v2 = vcombine.low %v8380_v62, %v8387_v9  ;;  %v8470_v36 = vcombine.low %v8448_v21, %v8455_v55  ;;  %v8518_v54 = vrot.slane %v19480_v12, %v17833_v22  ;;  %v8437_v44 = vcombine.low %v8429_v38, %v8436_v63 }
 0x76c   :  { %v8471_v11 = vcombine.low %v8462_v27, %v8469_v47  ;;  %v8519_v16 = vcombine.low %v8497_v30, %v8504_v49  ;;  %v21064_v53 = vcombine.high %v19459_v39, %v19459_v39  ;;  %v8567_v61 = vrot.slane %v8539_v51, %v17833_v22 }
 0x76d   :  { %17089 = vmatprep.mubr.msk.f32.mxu1 %vm8634_vm5, %v8388_v2  ;;  %v8478_v45 = vrot.slane %v8470_v36, %v17833_v22  ;;  %v8520_v59 = vcombine.low %v8511_v29, %v8518_v54  ;;  %v8602_v17 = vrot.slane %v8586_v20, %v17833_v22  ;;  %v8616_v42 = vrot.slane %v8588_v57, %v17833_v22 }
 0x76e   :  { %v8536_v3 = vcombine.low %v19467_v14, %v21064_v53  ;;  %v8485_v23 = vrot.slane %v8471_v11, %v17833_v22  ;;  %17090 = vmatmul.mubr.msk.f32.gmra.mxu1 %vm8634_vm5, %v8437_v44  ;;  %v8527_v12 = vrot.slane %v8519_v16, %v17833_v22  ;;  %v8569_v39 = vcombine.low %v19502_v35, %v8567_v61 }
 0x76f   :  { %v8609_v14 = vrot.slane %v8587_v32, %v17833_v22  ;;  %v8534_v34 = vrot.slane %v8520_v59, %v17833_v22  ;;  %v8617_v52 = vcombine.low %v8595_v41, %v8602_v17 }
 0x770   :  { %v8546_v28 = vrot.slane %v8536_v3, %v17833_v22  ;;  %v8486_v51 = vcombine.low %v8478_v45, %v8485_v23  ;;  %v8583_v20 = vrot.slane %v8569_v39, %v17833_v22 }
 0x771   :  { %v8535_v0 = vcombine.low %v8527_v12, %v8534_v34  ;;  %v8618_v7 = vcombine.low %v8609_v14, %v8616_v42  ;;  %v8625_v43 = vrot.slane %v8617_v52, %v17833_v22 }
 0x772   :  { %v8568_v46 = vcombine.low %v8546_v28, %v19499_v48  ;;  %17092 = vmatprep.mubr.msk.f32.mxu1 %vm8634_vm5, %v8486_v51 }
 0x773   :  { %17093 = vmatmul.mubr.msk.f32.gmra.mxu1 %vm8634_vm5, %v8535_v0  ;;  %v8632_v32 = vrot.slane %v8618_v7, %v17833_v22 }
 0x774   :  { %v8576_v35 = vrot.slane %v8568_v46, %v17833_v22 }
 0x775   :  { %v8633_v6 = vcombine.low %v8625_v43, %v8632_v32 }
 0x776   :  { %v8584_v4 = vcombine.low %v8576_v35, %v8583_v20 }
 0x778   :  { %17095 = vmatprep.mubr.msk.f32.mxu1 %vm8634_vm5, %v8584_v4 }
 0x779   :  { %17096 = vmatmul.mubr.msk.f32.gmra.mxu1 %vm8634_vm5, %v8633_v6 }
 0x77a   :  { %17140 = vmatprep.mubr.msk.f32.mxu1 %vm17723_vm1, %v21014_v26 }
 0x7da   :  { %v17079_v48 = vpop.f32.mrf.mxu1 }
 0x7db   :  { %v8868_v57 = vrot.slane %v17079_v48, %v17833_v22  ;;  %v8861_v10 = vcombine.high %v17079_v48, %v17079_v48 }
 0x7dc   :  { %v8729_v41 = vpop.f32.mrf.mxu1 }
 0x7dd   :  { %v8812_v50 = vcombine.high %v8729_v41, %v8729_v41  ;;  %v8819_v21 = vrot.slane %v8729_v41, %v17833_v22  ;;  %v8876_v60 = vcombine.high %v8868_v57, %v8868_v57  ;;  %v8884_v1 = vrot.slane %v8868_v57, %v17833_v22 }
 0x7de   :  { %v8875_v49 = vrot.slane %v8861_v10, %v17833_v22 }
 0x7df   :  { %v8826_v15 = vrot.slane %v8812_v50, %v17833_v22  ;;  %v8827_v62 = vcombine.high %v8819_v21, %v8819_v21  ;;  %v8835_v9 = vrot.slane %v8819_v21, %v17833_v22  ;;  %v8898_v29 = vrot.slane %v8876_v60, %v17833_v22 }
 0x7e0   :  { %v8906_v54 = vcombine.high %v8884_v1, %v8884_v1  ;;  %v8877_v45 = vcombine.high %v8875_v49, %v8875_v49  ;;  %v8891_v12 = vrot.slane %v8875_v49, %v17833_v22 }
 0x7e1   :  { %v8828_v27 = vcombine.high %v8826_v15, %v8826_v15  ;;  %v8842_v38 = vrot.slane %v8826_v15, %v17833_v22  ;;  %v8849_v55 = vrot.slane %v8827_v62, %v17833_v22  ;;  %v8908_v23 = vcombine.high %v8898_v29, %v8898_v29 }
 0x7e2   :  { %v9623_v28 = vcombine.low %v8898_v29, %v8906_v54  ;;  %v8905_v43 = vrot.slane %v8877_v45, %v17833_v22 }
 0x7e3   :  { %v8856_v47 = vrot.slane %v8828_v27, %v17833_v22  ;;  %v8858_v63 = vcombine.high %v8842_v38, %v8842_v38  ;;  %v9498_v24 = vcombine.low %v8835_v9, %v8849_v55  ;;  %v16291_v30 = vcombine.high %v8835_v9, %v8849_v55 }
 0x7e4   :  { %v9624_v35 = vcombine.low %v8908_v23, %v8891_v12  ;;  %v9638_v50 = vrot.slane %v9623_v28, %v17833_v22  ;;  %v9652_v27 = vrot.slane %v8905_v43, %v17833_v22  ;;  %v16296_v9 = vcombine.high %v8891_v12, %v8905_v43 }
 0x7e5   :  { %v9500_v2 = vcombine.low %v8842_v38, %v8856_v47  ;;  %v9507_v36 = vrot.slane %v9498_v24, %v17833_v22  ;;  %v9514_v11 = vrot.slane %v16291_v30, %v17833_v22  ;;  %v8860_v44 = vcombine.high %v8856_v47, %v8856_v47 }
 0x7e6   :  { %v9528_v53 = vrot.slane %v8858_v63, %v17833_v22 }
 0x7e7   :  { %v9521_v16 = vrot.slane %v9500_v2, %v17833_v22  ;;  %v9529_v3 = vcombine.low %v9507_v36, %v9514_v11  ;;  %v9622_v39 = vcombine.low %v8860_v44, %v8884_v1  ;;  %v9645_v1 = vrot.slane %v9624_v35, %v17833_v22 }
 0x7e9   :  { %v17082_v61 = vpop.f32.mrf.mxu1  ;;  %v9530_v59 = vcombine.low %v9521_v16, %v9528_v53  ;;  %v9537_v34 = vrot.slane %v9529_v3, %v17833_v22  ;;  %v9631_v21 = vrot.slane %v9622_v39, %v17833_v22  ;;  %v9755_v53 = vrot.slane %v16296_v9, %v17833_v22 }
 0x7ea   :  { %v8959_v17 = vcombine.high %v17082_v61, %v17082_v61  ;;  %v8966_v14 = vrot.slane %v17082_v61, %v17833_v22  ;;  %v9654_v23 = vcombine.low %v9645_v1, %v9652_v27 }
 0x7eb   :  { %v8739_v51 = vpop.f32.mrf.mxu1  ;;  %v9544_v42 = vrot.slane %v9530_v59, %v17833_v22  ;;  %v9653_v49 = vcombine.low %v9631_v21, %v9638_v50 }
 0x7ec   :  { %v8973_v52 = vrot.slane %v8959_v17, %v17833_v22  ;;  %v8910_v46 = vcombine.high %v8739_v51, %v8739_v51  ;;  %v8974_v20 = vcombine.high %v8966_v14, %v8966_v14  ;;  %v8982_v0 = vrot.slane %v8966_v14, %v17833_v22 }
 0x7ed   :  { %v8917_v7 = vrot.slane %v8739_v51, %v17833_v22  ;;  %v19634_v32 = vcombine.low %v9537_v34, %v9544_v42  ;;  %v19649_v30 = vpop.f32.mrf.mxu1  ;;  %v9661_v28 = vrot.slane %v9653_v49, %v17833_v22  ;;  %v9668_v35 = vrot.slane %v9654_v23, %v17833_v22 }
 0x7ee   :  { %v8975_v4 = vcombine.high %v8973_v52, %v8973_v52  ;;  %v8996_v6 = vrot.slane %v8974_v20, %v17833_v22  ;;  %v9004_v48 = vcombine.high %v8982_v0, %v8982_v0  ;;  %v8924_v41 = vrot.slane %v8910_v46, %v17833_v22 }
 0x7ef   :  { %v8925_v57 = vcombine.high %v8917_v7, %v8917_v7  ;;  %9546 = vrot.lane.b32.xlu1 %v19634_v32, %s17721_s0  ;;  %v8933_v38 = vrot.slane %v8917_v7, %v17833_v22  ;;  %v8989_v29 = vrot.slane %v8973_v52, %v17833_v22  ;;  %v8749_v12 = vpop.f32.mrf.mxu1  ;;  %v9064_v46 = vrot.slane %v19649_v30, %v17833_v22 }
 0x7f0   :  { %v9006_v15 = vcombine.high %v8996_v6, %v8996_v6  ;;  %v9872_v62 = vcombine.low %v8996_v6, %v9004_v48  ;;  %v8926_v10 = vcombine.high %v8924_v41, %v8924_v41  ;;  %v8940_v60 = vrot.slane %v8924_v41, %v17833_v22 }
 0x7f1   :  { %v8947_v55 = vrot.slane %v8925_v57, %v17833_v22  ;;  %v9003_v47 = vrot.slane %v8975_v4, %v17833_v22  ;;  %v9008_v43 = vcombine.high %v8749_v12, %v8749_v12 }
 0x7f2   :  { %v8954_v63 = vrot.slane %v8926_v10, %v17833_v22  ;;  %v8956_v24 = vcombine.high %v8940_v60, %v8940_v60  ;;  %v9893_v11 = vrot.slane %v9872_v62, %v17833_v22  ;;  %v9900_v54 = vrot.slane %v9006_v15, %v17833_v22 }
 0x7f3   :  { %v9747_v2 = vcombine.low %v8933_v38, %v8947_v55  ;;  %v16297_v36 = vcombine.high %v8933_v38, %v8947_v55  ;;  %v9776_v45 = vrot.slane %v8940_v60, %v17833_v22  ;;  %v9994_v59 = vcombine.low %v8989_v29, %v9003_v47 }
 0x7f4   :  { %v8958_v44 = vcombine.high %v8954_v63, %v8954_v63  ;;  %v9870_v16 = vcombine.low %v8954_v63, %v8956_v24  ;;  %v16302_v39 = vcombine.high %v8989_v29, %v9003_v47  ;;  %v9902_v34 = vcombine.low %v9893_v11, %v9900_v54 }
 0x7f5   :  { %v9762_v3 = vrot.slane %v9747_v2, %v17833_v22  ;;  %v9769_v61 = vrot.slane %v16297_v36, %v17833_v22  ;;  %v10003_v4 = vrot.slane %v9994_v59, %v17833_v22  ;;  %v9022_v57 = vrot.slane %v9008_v43, %v17833_v22 }
 0x7f6   :  { %v9871_v17 = vcombine.low %v8958_v44, %v8982_v0  ;;  %v9879_v42 = vrot.slane %v9870_v16, %v17833_v22  ;;  %v9015_v0 = vrot.slane %v8749_v12, %v17833_v22  ;;  %v10010_v48 = vrot.slane %v16302_v39, %v17833_v22 }
 0x7f7   :  { %v9777_v14 = vcombine.low %v9755_v53, %v9762_v3  ;;  %v9778_v51 = vcombine.low %v9769_v61, %v9776_v45  ;;  %v9916_v21 = vrot.slane %v9902_v34, %v17833_v22  ;;  %v9072_v62 = vcombine.high %v9064_v46, %v9064_v46 }
 0x7f8   :  { %v9886_v52 = vrot.slane %v9871_v17, %v17833_v22  ;;  %v9023_v50 = vcombine.high %v9015_v0, %v9015_v0  ;;  %v9031_v10 = vrot.slane %v9015_v0, %v17833_v22  ;;  %v9024_v60 = vcombine.high %v9022_v57, %v9022_v57 }
 0x7f9   :  { %v9785_v20 = vrot.slane %v9777_v14, %v17833_v22  ;;  %v9792_v7 = vrot.slane %v9778_v51, %v17833_v22  ;;  %v9038_v27 = vrot.slane %v9022_v57, %v17833_v22  ;;  %v19677_v38 = vcombine.low %v9661_v28, %v9668_v35 }
 0x7fa   :  { %v9901_v6 = vcombine.low %v9879_v42, %v9886_v52  ;;  %v9045_v9 = vrot.slane %v9023_v50, %v17833_v22  ;;  %v9053_v55 = vcombine.high %v9031_v10, %v9031_v10  ;;  %v9052_v47 = vrot.slane %v9024_v60, %v17833_v22 }
 0x7fb   :  { %v19669_v41 = vcombine.low %v9785_v20, %v9792_v7  ;;  %v9054_v63 = vcombine.high %v9038_v27, %v9038_v27  ;;  %9670 = vrot.lane.b32.xlu0 %v19677_v38, %s17721_s0  ;;  %v10025_v29 = vcombine.low %v10003_v4, %v10010_v48  ;;  %v9080_v2 = vrot.slane %v9064_v46, %v17833_v22 }
 0x7fc   :  { %v9909_v15 = vrot.slane %v9901_v6, %v17833_v22  ;;  %v9055_v24 = vcombine.high %v9045_v9, %v9045_v9  ;;  %v9996_v49 = vcombine.low %v9031_v10, %v9045_v9  ;;  %v9094_v36 = vrot.slane %v9072_v62, %v17833_v22 }
 0x7fd   :  { %9794 = vrot.lane.b32.xlu1 %v19669_v41, %s17721_s0  ;;  %v10024_v11 = vrot.slane %v9053_v55, %v17833_v22  ;;  %v9056_v54 = vcombine.high %v9052_v47, %v9052_v47  ;;  %v10119_v53 = vcombine.low %v9052_v47, %v9054_v63  ;;  %v10033_v59 = vrot.slane %v10025_v29, %v17833_v22 }
 0x7fe   :  { %v19681_v1 = vcombine.low %v9909_v15, %v9916_v21  ;;  %v10017_v44 = vrot.slane %v9996_v49, %v17833_v22  ;;  %v10118_v16 = vcombine.low %v9055_v24, %v9038_v27  ;;  %v10148_v17 = vrot.slane %v9094_v36, %v17833_v22 }
 0x7ff   :  { %v10120_v61 = vcombine.low %v9056_v54, %v9080_v2  ;;  %v10134_v23 = vrot.slane %v10119_v53, %v17833_v22  ;;  %v9057_v46 = vcombine.high %v19649_v30, %v19649_v30  ;;  %v16307_v4 = vcombine.high %v9080_v2, %v9094_v36 }
 0x800   :  { %v10026_v3 = vcombine.low %v10017_v44, %v10024_v11  ;;  %v10127_v45 = vrot.slane %v10118_v16, %v17833_v22  ;;  %9918 = vrot.lane.b32.xlu0 %v19681_v1, %s17721_s0 }
 0x801   :  { %v10141_v28 = vrot.slane %v10120_v61, %v17833_v22  ;;  %v9071_v20 = vrot.slane %v9057_v46, %v17833_v22  ;;  %v10251_v48 = vrot.slane %v16307_v4, %v17833_v22 }
 0x802   :  { %v10040_v12 = vrot.slane %v10026_v3, %v17833_v22  ;;  %v10149_v39 = vcombine.low %v10127_v45, %v10134_v23 }
 0x803   :  { %v10150_v51 = vcombine.low %v10141_v28, %v10148_v17  ;;  %v9073_v7 = vcombine.high %v9071_v20, %v9071_v20  ;;  %v9087_v0 = vrot.slane %v9071_v20, %v17833_v22 }
 0x804   :  { %v19698_v14 = vcombine.low %v10033_v59, %v10040_v12  ;;  %v10157_v34 = vrot.slane %v10149_v39, %v17833_v22 }
 0x805   :  { %v10164_v42 = vrot.slane %v10150_v51, %v17833_v22  ;;  %v9101_v43 = vrot.slane %v9073_v7, %v17833_v22 }
 0x806   :  { %10042 = vrot.lane.b32.xlu1 %v19698_v14, %s17721_s0 }
 0x807   :  { %v19704_v52 = vcombine.low %v10157_v34, %v10164_v42  ;;  %v10243_v35 = vcombine.low %v9087_v0, %v9101_v43  ;;  %v16308_v57 = vcombine.high %v9087_v0, %v9101_v43 }
 0x809   :  { %10166 = vrot.lane.b32.xlu0 %v19704_v52, %s17721_s0  ;;  %v10258_v6 = vrot.slane %v10243_v35, %v17833_v22  ;;  %v10265_v63 = vrot.slane %v16308_v57, %v17833_v22 }
 0x80b   :  { %v10273_v50 = vcombine.low %v10251_v48, %v10258_v6 }
 0x80d   :  { %v10281_v9 = vrot.slane %v10273_v50, %v17833_v22 }
 0x82a   :  { %v17088_v21 = vpop.f32.mrf.mxu1 }
 0x82b   :  { %v9155_v15 = vcombine.high %v17088_v21, %v17088_v21  ;;  %v9162_v62 = vrot.slane %v17088_v21, %v17833_v22 }
 0x82c   :  { %v8759_v30 = vpop.f32.mrf.mxu1 }
 0x82d   :  { %v9169_v10 = vrot.slane %v9155_v15, %v17833_v22  ;;  %v9170_v60 = vcombine.high %v9162_v62, %v9162_v62  ;;  %v9106_v27 = vcombine.high %v8759_v30, %v8759_v30  ;;  %v9178_v55 = vrot.slane %v9162_v62, %v17833_v22 }
 0x82e   :  { %v9113_v47 = vrot.slane %v8759_v30, %v17833_v22  ;;  %v17091_v24 = vpop.f32.mrf.mxu1 }
 0x82f   :  { %v9171_v49 = vcombine.high %v9169_v10, %v9169_v10  ;;  %v9185_v29 = vrot.slane %v9169_v10, %v17833_v22  ;;  %v9192_v2 = vrot.slane %v9170_v60, %v17833_v22  ;;  %v9120_v36 = vrot.slane %v9106_v27, %v17833_v22 }
 0x830   :  { %v9121_v11 = vcombine.high %v9113_v47, %v9113_v47  ;;  %v9129_v54 = vrot.slane %v9113_v47, %v17833_v22  ;;  %v9253_v44 = vcombine.high %v17091_v24, %v17091_v24  ;;  %v9260_v16 = vrot.slane %v17091_v24, %v17833_v22 }
 0x831   :  { %v19727_v53 = vrot.slane %v9171_v49, %v17833_v22  ;;  %v9201_v3 = vcombine.high %v9185_v29, %v9185_v29  ;;  %v10490_v61 = vcombine.low %v9178_v55, %v9192_v2  ;;  %v16313_v45 = vcombine.high %v9178_v55, %v9192_v2 }
 0x832   :  { %v9122_v23 = vcombine.high %v9120_v36, %v9120_v36  ;;  %v9136_v59 = vrot.slane %v9120_v36, %v17833_v22  ;;  %v9143_v17 = vrot.slane %v9121_v11, %v17833_v22  ;;  %v9151_v12 = vcombine.high %v9129_v54, %v9129_v54 }
 0x833   :  { %v10492_v28 = vcombine.low %v9185_v29, %v19727_v53  ;;  %v10499_v39 = vrot.slane %v10490_v61, %v17833_v22  ;;  %v10506_v51 = vrot.slane %v16313_v45, %v17833_v22  ;;  %v10520_v34 = vrot.slane %v9201_v3, %v17833_v22  ;;  %v8769_v29 = vpop.f32.mrf.mxu1 }
 0x834   :  { %v9150_v42 = vrot.slane %v9122_v23, %v17833_v22  ;;  %v9152_v46 = vcombine.high %v9136_v59, %v9136_v59  ;;  %v9153_v20 = vcombine.high %v9143_v17, %v9143_v17  ;;  %v10272_v7 = vrot.slane %v9129_v54, %v17833_v22 }
 0x835   :  { %v10513_v43 = vrot.slane %v10492_v28, %v17833_v22  ;;  %v10521_v0 = vcombine.low %v10499_v39, %v10506_v51  ;;  %v10366_v35 = vcombine.low %v9143_v17, %v9151_v12  ;;  %v9267_v4 = vrot.slane %v9253_v44, %v17833_v22  ;;  %v17094_v44 = vpop.f32.mrf.mxu1 }
 0x836   :  { %v9154_v6 = vcombine.high %v9150_v42, %v9150_v42  ;;  %v10274_v48 = vcombine.low %v10265_v63, %v10272_v7  ;;  %v10367_v57 = vcombine.low %v9153_v20, %v9136_v59  ;;  %v10368_v50 = vcombine.low %v9150_v42, %v9152_v46 }
 0x837   :  { %v10522_v21 = vcombine.low %v10513_v43, %v10520_v34  ;;  %v10529_v15 = vrot.slane %v10521_v0, %v17833_v22  ;;  %v10375_v62 = vrot.slane %v10366_v35, %v17833_v22  ;;  %v9268_v30 = vcombine.high %v9260_v16, %v9260_v16 }
 0x838   :  { %v10288_v10 = vrot.slane %v10274_v48, %v17833_v22  ;;  %v10382_v60 = vrot.slane %v10367_v57, %v17833_v22  ;;  %v10389_v27 = vrot.slane %v10368_v50, %v17833_v22  ;;  %v10396_v55 = vrot.slane %v9154_v6, %v17833_v22  ;;  %v8779_v6 = vpop.f32.mrf.mxu1 }
 0x839   :  { %v10536_v47 = vrot.slane %v10522_v21, %v17833_v22  ;;  %v9269_v24 = vcombine.high %v9267_v4, %v9267_v4  ;;  %v9276_v63 = vrot.slane %v9260_v16, %v17833_v22  ;;  %v9283_v49 = vrot.slane %v9267_v4, %v17833_v22 }
 0x83a   :  { %v19748_v2 = vcombine.low %v10281_v9, %v10288_v10  ;;  %v10397_v36 = vcombine.low %v10375_v62, %v10382_v60  ;;  %v10398_v11 = vcombine.low %v10389_v27, %v10396_v55  ;;  %v9290_v54 = vrot.slane %v9268_v30, %v17833_v22 }
 0x83b   :  { %v19751_v3 = vcombine.low %v10529_v15, %v10536_v47  ;;  %v19758_v16 = vrot.slane %v9269_v24, %v17833_v22  ;;  %v9299_v9 = vcombine.high %v9283_v49, %v9283_v49  ;;  %v9204_v59 = vcombine.high %v8769_v29, %v8769_v29 }
 0x83c   :  { %v10405_v61 = vrot.slane %v10397_v36, %v17833_v22  ;;  %v10412_v45 = vrot.slane %v10398_v11, %v17833_v22  ;;  %v16319_v23 = vcombine.high %v9276_v63, %v9290_v54  ;;  %10290 = vrot.lane.b32.xlu1 %v19748_v2, %s17721_s0  ;;  %v9211_v17 = vrot.slane %v8769_v29, %v17833_v22 }
 0x83d   :  { %v9203_v39 = vcombine.high %v19727_v53, %v19727_v53  ;;  %v9351_v51 = vcombine.high %v17094_v44, %v17094_v44  ;;  %v9218_v34 = vrot.slane %v9204_v59, %v17833_v22  ;;  %v9358_v20 = vrot.slane %v17094_v44, %v17833_v22 }
 0x83e   :  { %v19761_v12 = vcombine.low %v10405_v61, %v10412_v45  ;;  %v10761_v28 = vrot.slane %v16319_v23, %v17833_v22  ;;  %v9219_v42 = vcombine.high %v9211_v17, %v9211_v17  ;;  %v9227_v46 = vrot.slane %v9211_v17, %v17833_v22 }
 0x83f   :  { %v10768_v7 = vrot.slane %v9283_v49, %v17833_v22  ;;  %v9365_v43 = vrot.slane %v9351_v51, %v17833_v22  ;;  %v10739_v0 = vcombine.low %v9276_v63, %v9290_v54  ;;  %v9220_v35 = vcombine.high %v9218_v34, %v9218_v34 }
 0x840   :  { %10538 = vrot.lane.b32.xlu1 %v19751_v3, %s17721_s0  ;;  %v9241_v4 = vrot.slane %v9219_v42, %v17833_v22  ;;  %v9249_v53 = vcombine.high %v9227_v46, %v9227_v46  ;;  %10414 = vrot.lane.b32.xlu0 %v19761_v12, %s17721_s0  ;;  %v19777_v57 = vcombine.low %v19758_v16, %v9299_v9 }
 0x841   :  { %v10770_v48 = vcombine.low %v10761_v28, %v10768_v7  ;;  %v10614_v50 = vcombine.low %v9203_v39, %v9227_v46  ;;  %v9366_v21 = vcombine.high %v9358_v20, %v9358_v20  ;;  %v9234_v15 = vrot.slane %v9218_v34, %v17833_v22 }
 0x842   :  { %v9248_v62 = vrot.slane %v9220_v35, %v17833_v22  ;;  %v9251_v30 = vcombine.high %v9241_v4, %v9241_v4  ;;  %v10615_v10 = vcombine.low %v9241_v4, %v9249_v53  ;;  %v9367_v60 = vcombine.high %v9365_v43, %v9365_v43 }
 0x843   :  { %v9374_v27 = vrot.slane %v9358_v20, %v17833_v22  ;;  %v9388_v55 = vrot.slane %v9366_v21, %v17833_v22  ;;  %v9302_v47 = vcombine.high %v8779_v6, %v8779_v6  ;;  %v10623_v63 = vrot.slane %v10614_v50, %v17833_v22 }
 0x844   :  { %v10616_v24 = vcombine.low %v9251_v30, %v9234_v15  ;;  %v10630_v49 = vrot.slane %v10615_v10, %v17833_v22  ;;  %v16318_v29 = vcombine.high %v9234_v15, %v9248_v62  ;;  %v10754_v36 = vrot.slane %v10739_v0, %v17833_v22 }
 0x845   :  { %v10644_v11 = vrot.slane %v9248_v62, %v17833_v22  ;;  %v9381_v54 = vrot.slane %v9365_v43, %v17833_v22  ;;  %v10988_v44 = vcombine.low %v9374_v27, %v9388_v55  ;;  %v9309_v9 = vrot.slane %v8779_v6, %v17833_v22  ;;  %v17097_v6 = vpop.f32.mrf.mxu1 }
 0x846   :  { %v10637_v61 = vrot.slane %v10616_v24, %v17833_v22  ;;  %v10645_v45 = vcombine.low %v10623_v63, %v10630_v49  ;;  %v10747_v23 = vrot.slane %v16318_v29, %v17833_v22  ;;  %v10784_v59 = vrot.slane %v10770_v48, %v17833_v22 }
 0x847   :  { %v9396_v17 = vcombine.high %v9374_v27, %v9374_v27  ;;  %v9398_v28 = vcombine.high %v9388_v55, %v9388_v55  ;;  %v9301_v39 = vcombine.high %v19758_v16, %v19758_v16  ;;  %v19795_v42 = vrot.slane %v9367_v60, %v17833_v22 }
 0x848   :  { %v10646_v51 = vcombine.low %v10637_v61, %v10644_v11  ;;  %v10769_v34 = vcombine.low %v10747_v23, %v10754_v36  ;;  %v9316_v46 = vrot.slane %v9302_v47, %v17833_v22  ;;  %v10653_v20 = vrot.slane %v10645_v45, %v17833_v22  ;;  %v8789_v11 = vpop.f32.mrf.mxu1 }
 0x849   :  { %v9397_v7 = vcombine.high %v9381_v54, %v9381_v54  ;;  %v11009_v43 = vrot.slane %v10988_v44, %v17833_v22  ;;  %v9317_v0 = vcombine.high %v9309_v9, %v9309_v9  ;;  %v9325_v16 = vrot.slane %v9309_v9, %v17833_v22 }
 0x84a   :  { %v10660_v35 = vrot.slane %v10646_v51, %v17833_v22  ;;  %v10777_v4 = vrot.slane %v10769_v34, %v17833_v22  ;;  %v9318_v53 = vcombine.high %v9316_v46, %v9316_v46  ;;  %v11016_v48 = vrot.slane %v9396_v17, %v17833_v22 }
 0x84b   :  { %v19804_v50 = vcombine.low %v9398_v28, %v9381_v54  ;;  %v9332_v21 = vrot.slane %v9316_v46, %v17833_v22  ;;  %v9339_v15 = vrot.slane %v9317_v0, %v17833_v22  ;;  %v9347_v60 = vcombine.high %v9325_v16, %v9325_v16 }
 0x84c   :  { %v19808_v62 = vcombine.low %v10653_v20, %v10660_v35  ;;  %v19810_v30 = vcombine.low %v10777_v4, %v10784_v59  ;;  %v9346_v10 = vrot.slane %v9318_v53, %v17833_v22  ;;  %v11018_v27 = vcombine.low %v11009_v43, %v11016_v48 }
 0x84d   :  { %v11111_v55 = vcombine.low %v19795_v42, %v9397_v7  ;;  %v9349_v47 = vcombine.high %v9339_v15, %v9339_v15  ;;  %v10863_v24 = vcombine.low %v9301_v39, %v9325_v16  ;;  %v10864_v63 = vcombine.low %v9339_v15, %v9347_v60 }
 0x84e   :  { %v10986_v49 = vcombine.low %v9332_v21, %v9346_v10  ;;  %v16324_v29 = vcombine.high %v9332_v21, %v9346_v10  ;;  %v9449_v36 = vcombine.high %v17097_v6, %v17097_v6  ;;  %10786 = vrot.lane.b32.xlu1 %v19810_v30, %s17721_s0  ;;  %v10871_v54 = vrot.slane %v19777_v57, %v17833_v22 }
 0x84f   :  { %v10878_v44 = vrot.slane %v10863_v24, %v17833_v22  ;;  %v10892_v61 = vrot.slane %v9349_v47, %v17833_v22  ;;  %v9456_v45 = vrot.slane %v17097_v6, %v17833_v22  ;;  %10662 = vrot.lane.b32.xlu0 %v19808_v62, %s17721_s0  ;;  %v10885_v23 = vrot.slane %v10864_v63, %v17833_v22 }
 0x850   :  { %v10995_v9 = vrot.slane %v10986_v49, %v17833_v22  ;;  %v11002_v59 = vrot.slane %v16324_v29, %v17833_v22  ;;  %v9463_v17 = vrot.slane %v9449_v36, %v17833_v22  ;;  %v9400_v51 = vcombine.high %v8789_v11, %v8789_v11 }
 0x851   :  { %v10893_v28 = vcombine.low %v10871_v54, %v10878_v44  ;;  %v9464_v39 = vcombine.high %v9456_v45, %v9456_v45  ;;  %v9472_v57 = vrot.slane %v9456_v45, %v17833_v22  ;;  %v10894_v34 = vcombine.low %v10885_v23, %v10892_v61 }
 0x852   :  { %v11017_v46 = vcombine.low %v10995_v9, %v11002_v59  ;;  %v9465_v20 = vcombine.high %v9463_v17, %v9463_v17  ;;  %v9479_v7 = vrot.slane %v9463_v17, %v17833_v22  ;;  %v11032_v43 = vrot.slane %v11018_v27, %v17833_v22 }
 0x853   :  { %v10901_v0 = vrot.slane %v10893_v28, %v17833_v22  ;;  %v9486_v35 = vrot.slane %v9464_v39, %v17833_v22  ;;  %v9494_v4 = vcombine.high %v9472_v57, %v9472_v57  ;;  %v10908_v53 = vrot.slane %v10894_v34, %v17833_v22 }
 0x854   :  { %v11025_v16 = vrot.slane %v11017_v46, %v17833_v22  ;;  %v9493_v6 = vrot.slane %v9465_v20, %v17833_v22  ;;  %v9495_v48 = vcombine.high %v9479_v7, %v9479_v7  ;;  %v9407_v15 = vrot.slane %v8789_v11, %v17833_v22 }
 0x855   :  { %v9496_v21 = vcombine.high %v9486_v35, %v9486_v35  ;;  %v9414_v10 = vrot.slane %v9400_v51, %v17833_v22  ;;  %v19837_v60 = vcombine.low %v10901_v0, %v10908_v53  ;;  %v11119_v63 = vrot.slane %v19804_v50, %v17833_v22 }
 0x856   :  { %v19839_v27 = vcombine.low %v11025_v16, %v11032_v43  ;;  %v9497_v47 = vcombine.high %v9493_v6, %v9493_v6  ;;  %v11360_v24 = vcombine.low %v9493_v6, %v9495_v48  ;;  %v9415_v29 = vcombine.high %v9407_v15, %v9407_v15 }
 0x857   :  { %v11359_v49 = vcombine.low %v9496_v21, %v9479_v7  ;;  %v9416_v36 = vcombine.high %v9414_v10, %v9414_v10  ;;  %v11126_v54 = vrot.slane %v11111_v55, %v17833_v22  ;;  %v11358_v44 = vcombine.low %v9486_v35, %v9494_v4  ;;  %10910 = vrot.lane.b32.xlu0 %v19837_v60, %s17721_s0 }
 0x858   :  { %v9399_v11 = vcombine.high %v19795_v42, %v19795_v42  ;;  %v9423_v61 = vrot.slane %v9407_v15, %v17833_v22  ;;  %v9430_v45 = vrot.slane %v9414_v10, %v17833_v22  ;;  %v9437_v23 = vrot.slane %v9415_v29, %v17833_v22  ;;  %11034 = vrot.lane.b32.xlu1 %v19839_v27, %s17721_s0 }
 0x859   :  { %v9444_v50 = vrot.slane %v9416_v36, %v17833_v22  ;;  %v11374_v55 = vrot.slane %v11359_v49, %v17833_v22  ;;  %v11381_v9 = vrot.slane %v11360_v24, %v17833_v22  ;;  %v11388_v42 = vrot.slane %v9497_v47, %v17833_v22 }
 0x85a   :  { %v11112_v59 = vcombine.low %v9399_v11, %v9423_v61  ;;  %v11140_v17 = vrot.slane %v9437_v23, %v17833_v22  ;;  %v16329_v28 = vcombine.high %v9423_v61, %v9437_v23  ;;  %v11141_v51 = vcombine.low %v11119_v63, %v11126_v54 }
 0x85b   :  { %v11235_v39 = vcombine.low %v9430_v45, %v9444_v50  ;;  %v11367_v34 = vrot.slane %v11358_v44, %v17833_v22  ;;  %v16330_v20 = vcombine.high %v9430_v45, %v9444_v50  ;;  %v11264_v7 = vrot.slane %v9472_v57, %v17833_v22 }
 0x85c   :  { %v11133_v46 = vrot.slane %v11112_v59, %v17833_v22  ;;  %v11243_v43 = vrot.slane %v16329_v28, %v17833_v22  ;;  %v11390_v4 = vcombine.low %v11381_v9, %v11388_v42  ;;  %v11149_v48 = vrot.slane %v11141_v51, %v17833_v22 }
 0x85d   :  { %v11250_v0 = vrot.slane %v11235_v39, %v17833_v22  ;;  %v11389_v35 = vcombine.low %v11367_v34, %v11374_v55  ;;  %v11257_v16 = vrot.slane %v16330_v20, %v17833_v22 }
 0x85e   :  { %v11142_v53 = vcombine.low %v11133_v46, %v11140_v17  ;;  %v11404_v24 = vrot.slane %v11390_v4, %v17833_v22 }
 0x85f   :  { %v11265_v6 = vcombine.low %v11243_v43, %v11250_v0  ;;  %v11266_v15 = vcombine.low %v11257_v16, %v11264_v7  ;;  %v11397_v57 = vrot.slane %v11389_v35, %v17833_v22 }
 0x860   :  { %v11156_v21 = vrot.slane %v11142_v53, %v17833_v22 }
 0x861   :  { %v11273_v10 = vrot.slane %v11265_v6, %v17833_v22  ;;  %v9547_v47 = vpop.permute.xlu1 %9546  ;;  %v11280_v49 = vrot.slane %v11266_v15, %v17833_v22  ;;  %v19880_v36 = vcombine.low %v11397_v57, %v11404_v24 }
 0x862   :  { %v19869_v63 = vcombine.low %v11149_v48, %v11156_v21  ;;  %17099 = vmatpush3.xpose.msk.msra.mxu0 %vm39_vm0, %v9547_v47 }
 0x863   :  { %17103 = vmatprep.subr.mxu0 %v21014_v26  ;;  %v19874_v29 = vcombine.low %v11273_v10, %v11280_v49 }
 0x864   :  { %11158 = vrot.lane.b32.xlu0 %v19869_v63, %s17721_s0 }
 0x865   :  { %17101 = vmatmul.mubr.msk.f32.vlgmr.msra.gmra.mxu0 %vm39_vm0, %v19634_v32  ;;  %11282 = vrot.lane.b32.xlu1 %v19874_v29, %s17721_s0 }
 0x866   :  { %17105 = vmatprep.mubr.msk.f32.mxu0 %vm17723_vm1, %v21014_v26 }
 0x868   :  { %11406 = vrot.lane.b32.xlu0 %v19880_v36, %s17721_s0 }
 0x869   :  { %11751 = vrot.lane.b32.xlu1 %v19677_v38, %s17724_s25 }
 0x86c   :  { %11674 = vrot.lane.b32.xlu0 %v19634_v32, %s17724_s25 }
 0x86d   :  { %11905 = vrot.lane.b32.xlu1 %v19681_v1, %s17724_s25  ;;  %v9671_v22 = vpop.permute.xlu0 %9670 }
 0x86e   :  { %17104 = vmatpush3.xpose.msk.msra.mxu0 %vm39_vm0, %v9671_v22 }
 0x86f   :  { %v9795_v54 = vpop.permute.xlu1 %9794  ;;  %17108 = vmatprep.subr.mxu0 %v21014_v26 }
 0x870   :  { %11828 = vrot.lane.b32.xlu0 %v19669_v41, %s17724_s25 }
 0x871   :  { %11982 = vrot.lane.b32.xlu1 %v19698_v14, %s17724_s25  ;;  %17106 = vmatmul.mubr.msk.f32.vlgmr.msra.gmra.mxu0 %vm39_vm0, %v19677_v38 }
 0x872   :  { %17109 = vmatpush3.xpose.msk.msra.mxu0 %vm39_vm0, %v9795_v54  ;;  %17110 = vmatprep.mubr.msk.f32.mxu0 %vm17723_vm1, %v21014_v26  ;;  %v9919_v44 = vpop.permute.xlu0 %9918 }
 0x873   :  { %17113 = vmatprep.subr.mxu0 %v21014_v26 }
 0x874   :  { %12059 = vrot.lane.b32.xlu0 %v19704_v52, %s17724_s25 }
 0x875   :  { %12136 = vrot.lane.b32.xlu1 %v19748_v2, %s17724_s25  ;;  %17111 = vmatmul.mubr.msk.f32.vlgmr.msra.gmra.mxu0 %vm39_vm0, %v19669_v41 }
 0x876   :  { %17114 = vmatpush3.xpose.msk.msra.mxu0 %vm39_vm0, %v9919_v44  ;;  %17115 = vmatprep.mubr.msk.f32.mxu0 %vm17723_vm1, %v21014_v26 }
 0x877   :  { %17118 = vmatprep.subr.mxu0 %v21014_v26 }
 0x878   :  { %12213 = vrot.lane.b32.xlu0 %v19761_v12, %s17724_s25  ;;  %v10043_v11 = vpop.permute.xlu1 %10042 }
 0x879   :  { %12290 = vrot.lane.b32.xlu1 %v19751_v3, %s17724_s25  ;;  %17116 = vmatmul.mubr.msk.f32.vlgmr.msra.gmra.mxu0 %vm39_vm0, %v19681_v1 }
 0x87a   :  { %17119 = vmatpush3.xpose.msk.msra.mxu0 %vm39_vm0, %v10043_v11  ;;  %17120 = vmatprep.mubr.msk.f32.mxu0 %vm17723_vm1, %v21014_v26 }
 0x87b   :  { %v10167_v61 = vpop.permute.xlu0 %10166  ;;  %17123 = vmatprep.subr.mxu0 %v21014_v26 }
 0x87c   :  { %12367 = vrot.lane.b32.xlu0 %v19808_v62, %s17724_s25 }
 0x87d   :  { %12444 = vrot.lane.b32.xlu1 %v19810_v30, %s17724_s25  ;;  %17121 = vmatmul.mubr.msk.f32.vlgmr.msra.gmra.mxu0 %vm39_vm0, %v19698_v14 }
 0x87e   :  { %17124 = vmatpush3.xpose.msk.msra.mxu0 %vm39_vm0, %v10167_v61  ;;  %17125 = vmatprep.mubr.msk.f32.mxu0 %vm17723_vm1, %v21014_v26 }
 0x87f   :  { %17128 = vmatprep.subr.mxu0 %v21014_v26 }
 0x880   :  { %12521 = vrot.lane.b32.xlu0 %v19837_v60, %s17724_s25 }
 0x881   :  { %12598 = vrot.lane.b32.xlu1 %v19839_v27, %s17724_s25  ;;  %17126 = vmatmul.mubr.msk.f32.vlgmr.msra.gmra.mxu0 %vm39_vm0, %v19704_v52 }
 0x882   :  { %17130 = vmatprep.mubr.msk.f32.mxu0 %vm17723_vm1, %v21014_v26 }
 0x884   :  { %12675 = vrot.lane.b32.xlu0 %v19869_v63, %s17724_s25 }
 0x885   :  { %12908 = vrot.lane.b32.xlu1 %v19634_v32, %s17725_s26 }
 0x888   :  { %12829 = vrot.lane.b32.xlu0 %v19880_v36, %s17724_s25 }
 0x889   :  { %12906 = vrot.lane.b32.xlu1 %v19634_v32, %s17726_s4 }
 0x88c   :  { %12986 = vrot.lane.b32.xlu0 %v19677_v38, %s17725_s26 }
 0x88d   :  { %13064 = vrot.lane.b32.xlu1 %v19669_v41, %s17725_s26 }
 0x890   :  { %12984 = vrot.lane.b32.xlu0 %v19677_v38, %s17726_s4 }
 0x891   :  { %13062 = vrot.lane.b32.xlu1 %v19669_v41, %s17726_s4 }
 0x894   :  { %13142 = vrot.lane.b32.xlu0 %v19681_v1, %s17725_s26 }
 0x895   :  { %13220 = vrot.lane.b32.xlu1 %v19698_v14, %s17725_s26 }
 0x898   :  { %13140 = vrot.lane.b32.xlu0 %v19681_v1, %s17726_s4 }
 0x899   :  { %13218 = vrot.lane.b32.xlu1 %v19698_v14, %s17726_s4 }
 0x89c   :  { %13298 = vrot.lane.b32.xlu0 %v19704_v52, %s17725_s26 }
 0x89d   :  { %12752 = vrot.lane.b32.xlu1 %v19874_v29, %s17724_s25 }
 0x8ae   :  { %v10291_v45 = vpop.permute.xlu1 %10290 }
 0x8af   :  { %17129 = vmatpush3.xpose.msk.msra.mxu0 %vm39_vm0, %v10291_v45 }
 0x8b0   :  { %17133 = vmatprep.subr.mxu0 %v21014_v26 }
 0x8b2   :  { %v10539_v23 = vpop.permute.xlu1 %10538  ;;  %17131 = vmatmul.mubr.msk.f32.vlgmr.msra.gmra.mxu0 %vm39_vm0, %v19748_v2  ;;  %v10415_v50 = vpop.permute.xlu0 %10414 }
 0x8b3   :  { %17139 = vmatpush3.xpose.msk.msra.mxu1 %vm39_vm0, %v10539_v23  ;;  %17135 = vmatprep.mubr.msk.f32.mxu0 %vm17723_vm1, %v21014_v26 }
 0x8b4   :  { %17134 = vmatpush3.xpose.msk.msra.mxu0 %vm39_vm0, %v10415_v50  ;;  %17148 = vmatprep.subr.mxu1 %v21014_v26 }
 0x8b5   :  { %17143 = vmatprep.subr.mxu0 %v21014_v26 }
 0x8b6   :  { %17141 = vmatmul.mubr.msk.f32.vlgmr.msra.gmra.mxu1 %vm39_vm0, %v19751_v3 }
 0x8b7   :  { %17136 = vmatmul.mubr.msk.f32.vlgmr.msra.gmra.mxu0 %vm39_vm0, %v19761_v12  ;;  %17150 = vmatprep.mubr.msk.f32.mxu1 %vm17723_vm1, %v21014_v26 }
 0x8b8   :  { %17145 = vmatprep.mubr.msk.f32.mxu0 %vm17723_vm1, %v21014_v26 }
 0x8c0   :  { %v10787_v55 = vpop.permute.xlu1 %10786 }
 0x8c1   :  { %v10663_v9 = vpop.permute.xlu0 %10662  ;;  %17149 = vmatpush3.xpose.msk.msra.mxu1 %vm39_vm0, %v10787_v55 }
 0x8c2   :  { %17144 = vmatpush3.xpose.msk.msra.mxu0 %vm39_vm0, %v10663_v9  ;;  %17158 = vmatprep.subr.mxu1 %v21014_v26 }
 0x8c3   :  { %17153 = vmatprep.subr.mxu0 %v21014_v26 }
 0x8c4   :  { %17151 = vmatmul.mubr.msk.f32.vlgmr.msra.gmra.mxu1 %vm39_vm0, %v19810_v30 }
 0x8c5   :  { %17146 = vmatmul.mubr.msk.f32.vlgmr.msra.gmra.mxu0 %vm39_vm0, %v19808_v62  ;;  %17160 = vmatprep.mubr.msk.f32.mxu1 %vm17723_vm1, %v21014_v26 }
 0x8c6   :  { %17155 = vmatprep.mubr.msk.f32.mxu0 %vm17723_vm1, %v21014_v26 }
 0x8c9   :  { %v10911_v42 = vpop.permute.xlu0 %10910 }
 0x8ca   :  { %17154 = vmatpush3.xpose.msk.msra.mxu0 %vm39_vm0, %v10911_v42  ;;  %v11035_v59 = vpop.permute.xlu1 %11034 }
 0x8cb   :  { %17159 = vmatpush3.xpose.msk.msra.mxu1 %vm39_vm0, %v11035_v59  ;;  %17163 = vmatprep.subr.mxu0 %v21014_v26 }
 0x8cc   :  { %17168 = vmatprep.subr.mxu1 %v21014_v26 }
 0x8cd   :  { %17156 = vmatmul.mubr.msk.f32.vlgmr.msra.gmra.mxu0 %vm39_vm0, %v19837_v60 }
 0x8ce   :  { %17161 = vmatmul.mubr.msk.f32.vlgmr.msra.gmra.mxu1 %vm39_vm0, %v19839_v27  ;;  %17165 = vmatprep.mubr.msk.f32.mxu0 %vm17723_vm1, %v21014_v26 }
 0x8cf   :  { %17170 = vmatprep.mubr.msk.f32.mxu1 %vm17723_vm1, %v21014_v26 }
 0x8d6   :  { %v11159_v17 = vpop.permute.xlu0 %11158 }
 0x8d7   :  { %17164 = vmatpush3.xpose.msk.msra.mxu0 %vm39_vm0, %v11159_v17  ;;  %v11283_v28 = vpop.permute.xlu1 %11282 }
 0x8d8   :  { %17173 = vmatprep.subr.mxu0 %v21014_v26  ;;  %17169 = vmatpush3.xpose.msk.msra.mxu1 %vm39_vm0, %v11283_v28 }
 0x8d9   :  { %17178 = vmatprep.subr.mxu1 %v21014_v26 }
 0x8da   :  { %17166 = vmatmul.mubr.msk.f32.vlgmr.msra.gmra.mxu0 %vm39_vm0, %v19869_v63  ;;  %v11407_v39 = vpop.permute.xlu0 %11406 }
 0x8db   :  { %17174 = vmatpush3.xpose.msk.msra.mxu0 %vm39_vm0, %v11407_v39  ;;  %17175 = vmatprep.mubr.msk.f32.mxu0 %vm17723_vm1, %v21014_v26  ;;  %v11752_v51 = vpop.permute.xlu1 %11751 }
 0x8dc   :  { %17171 = vmatmul.mubr.msk.f32.vlgmr.msra.gmra.mxu1 %vm39_vm0, %v19874_v29  ;;  %17183 = vmatprep.subr.mxu0 %v21014_v26 }
 0x8dd   :  { %17180 = vmatprep.mubr.msk.f32.mxu1 %vm17723_vm1, %v21014_v26 }
 0x8de   :  { %17176 = vmatmul.mubr.msk.f32.vlgmr.msra.gmra.mxu0 %vm39_vm0, %v19880_v36  ;;  %v11675_v34 = vpop.permute.xlu0 %11674 }
 0x8df   :  { %17179 = vmatpush3.msk.msra.mxu1 %vm3100_vm2, %v11675_v34  ;;  %17184 = vmatpush3.msk.msra.mxu0 %vm3100_vm2, %v11752_v51  ;;  %v20056_v61 = vpop.permute.xlu1 %11905 }
 0x8e0   :  { %17188 = vmatprep.subr.mxu1 %v21014_v26  ;;  %17185 = vmatprep.mubr.msk.f32.mxu0 %vm17723_vm1, %v21014_v26 }
 0x8e1   :  { %17193 = vmatprep.subr.mxu0 %v21014_v26 }
 0x8e3   :  { %v20058_v45 = vpop.permute.xlu1 %11982 }
 0x8e7   :  { %v20062_v59 = vpop.permute.xlu1 %12136 }
 0x925   :  { %v9618_v46 = vpop.f32.mrf.mxu0 }
 0x926   :  { %v20036_v20 = vmul.f32 0.25, %v9618_v46 }
 0x927   :  { %v17102_v7 = vpop.f32.mrf.mxu0 }
 0x928   :  { %v11498_v43 = vsel %vm2917_vm3, %v20036_v20, -inf  ;;  %v20072_v7 = vpop.permute.xlu0 %11828 }
 0x929   :  { %11499 = vmax.xlane.f32.xlu1 %v11498_v43 }
 0x931   :  { %v9742_v0 = vpop.f32.mrf.mxu0 }
 0x932   :  { %v20040_v35 = vmul.f32 0.25, %v9742_v0  ;;  %v20076_v0 = vpop.permute.xlu1 %12290 }
 0x933   :  { %v17107_v4 = vpop.f32.mrf.mxu0 }
 0x934   :  { %v11501_v53 = vsel %vm2917_vm3, %v20040_v35, -inf  ;;  %v20078_v4 = vpop.permute.xlu0 %12059 }
 0x935   :  { %11502 = vmax.xlane.f32.xlu0 %v11501_v53  ;;  %v9866_v16 = vpop.f32.mrf.mxu0 }
 0x936   :  { %v20044_v6 = vmul.f32 0.25, %v9866_v16  ;;  %v20080_v53 = vpop.permute.xlu1 %12444 }
 0x937   :  { %v17112_v48 = vpop.f32.mrf.mxu0 }
 0x938   :  { %v11504_v21 = vsel %vm2917_vm3, %v20044_v6, -inf }
 0x939   :  { %11505 = vmax.xlane.f32.xlu0 %v11504_v21  ;;  %v9990_v15 = vpop.f32.mrf.mxu0 }
 0x93a   :  { %v20048_v10 = vmul.f32 0.25, %v9990_v15 }
 0x93b   :  { %v17117_v47 = vpop.f32.mrf.mxu0 }
 0x93c   :  { %v11507_v57 = vsel %vm2917_vm3, %v20048_v10, -inf }
 0x93d   :  { %11508 = vmax.xlane.f32.xlu1 %v11507_v57  ;;  %v10114_v24 = vpop.f32.mrf.mxu0 }
 0x93e   :  { %v20066_v39 = vmul.f32 0.25, %v10114_v24 }
 0x93f   :  { %v17122_v49 = vpop.f32.mrf.mxu0 }
 0x940   :  { %v11510_v43 = vsel %vm2917_vm3, %v20066_v39, -inf  ;;  %v20088_v49 = vpop.permute.xlu0 %12213 }
 0x941   :  { %v10238_v22 = vpop.f32.mrf.mxu0 }
 0x942   :  { %v20052_v54 = vmul.f32 0.25, %v10238_v22 }
 0x943   :  { %v17127_v44 = vpop.f32.mrf.mxu0 }
 0x944   :  { %v11513_v11 = vsel %vm2917_vm3, %v20052_v54, -inf  ;;  %v20092_v44 = vpop.permute.xlu1 %12598 }
 0x945   :  { %11514 = vmax.xlane.f32.xlu1 %v11513_v11  ;;  %v20094_v11 = vpop.permute.xlu0 %12367 }
 0x972   :  { %v10362_v23 = vpop.f32.mrf.mxu0 }
 0x974   :  { %v17132_v50 = vpop.f32.mrf.mxu0 }
 0x976   :  { %v10610_v55 = vpop.f32.mrf.mxu1 }
 0x977   :  { %v20060_v9 = vmul.f32 0.25, %v10610_v55  ;;  %v10486_v42 = vpop.f32.mrf.mxu0  ;;  %v20096_v55 = vpop.permute.xlu1 %12908 }
 0x978   :  { %v20064_v17 = vmul.f32 0.25, %v10486_v42  ;;  %v17142_v28 = vpop.f32.mrf.mxu1 }
 0x979   :  { %v11522_v51 = vsel %vm2917_vm3, %v20060_v9, -inf  ;;  %v17137_v34 = vpop.f32.mrf.mxu0 }
 0x97a   :  { %11523 = vmax.xlane.f32.xlu0 %v11522_v51  ;;  %v11519_v46 = vsel %vm2917_vm3, %v20064_v17, -inf }
 0x97b   :  { %11520 = vmax.xlane.f32.xlu1 %v11519_v46 }
 0x97e   :  { %11511 = vmax.xlane.f32.xlu0 %v11510_v43 }
 0x984   :  { %v10858_v16 = vpop.f32.mrf.mxu1 }
 0x985   :  { %v10734_v48 = vpop.f32.mrf.mxu0  ;;  %v20082_v21 = vmul.f32 0.25, %v10858_v16  ;;  %v20104_v16 = vmul.f32 0.25, %v10362_v23 }
 0x986   :  { %v20084_v15 = vmul.f32 0.25, %v10734_v48  ;;  %v17152_v47 = vpop.f32.mrf.mxu1 }
 0x987   :  { %v17147_v57 = vpop.f32.mrf.mxu0  ;;  %v11528_v24 = vsel %vm2917_vm3, %v20082_v21, -inf  ;;  %v20108_v47 = vpop.permute.xlu0 %12521 }
 0x988   :  { %v11525_v22 = vsel %vm2917_vm3, %v20084_v15, -inf  ;;  %11529 = vmax.xlane.f32.xlu0 %v11528_v24  ;;  %v20110_v57 = vpop.permute.xlu1 %12906  ;;  %v11516_v24 = vsel %vm2917_vm3, %v20104_v16, -inf }
 0x989   :  { %11526 = vmax.xlane.f32.xlu1 %v11525_v22 }
 0x98b   :  { %v20114_v22 = vpop.permute.xlu0 %12675 }
 0x98d   :  { %v10982_v50 = vpop.f32.mrf.mxu0 }
 0x98e   :  { %v20098_v42 = vmul.f32 0.25, %v10982_v50  ;;  %v11106_v28 = vpop.f32.mrf.mxu1 }
 0x98f   :  { %v17157_v51 = vpop.f32.mrf.mxu0  ;;  %v20100_v34 = vmul.f32 0.25, %v11106_v28  ;;  %v20116_v28 = vpop.permute.xlu1 %13064 }
 0x990   :  { %v17162_v46 = vpop.f32.mrf.mxu1  ;;  %v11531_v43 = vsel %vm2917_vm3, %v20098_v42, -inf  ;;  %v20128_v18 = vpop.permute.xlu0 %12829 }
 0x991   :  { %11532 = vmax.xlane.f32.xlu1 %v11531_v43  ;;  %v11534_v48 = vsel %vm2917_vm3, %v20100_v34, -inf  ;;  %21065 = vst [vmem:[#allocation23_spill] sm:$0xff] %v20128_v18 }
 0x992   :  { %11535 = vmax.xlane.f32.xlu0 %v11534_v48 }
 0x996   :  { %11517 = vmax.xlane.f32.xlu0 %v11516_v24 }
 0x99a   :  { %v11230_v50 = vpop.f32.mrf.mxu0 }
 0x99b   :  { %v20118_v23 = vmul.f32 0.25, %v11230_v50  ;;  %v20130_v50 = vpop.permute.xlu1 %13062 }
 0x99c   :  { %v17167_v51 = vpop.f32.mrf.mxu0  ;;  %v11354_v46 = vpop.f32.mrf.mxu1 }
 0x99d   :  { %v20120_v43 = vmul.f32 0.25, %v11354_v46  ;;  %v11537_v48 = vsel %vm2917_vm3, %v20118_v23, -inf  ;;  %v20134_v46 = vpop.permute.xlu0 %12986 }
 0x99e   :  { %11538 = vmax.xlane.f32.xlu1 %v11537_v48  ;;  %v11478_v33 = vpop.f32.mrf.mxu0  ;;  %v17172_v58 = vpop.f32.mrf.mxu1  ;;  %21066 = vst [vmem:[#allocation24_spill] sm:$0xff] %v20134_v46 }
 0x99f   :  { %v20124_v31 = vmul.f32 0.25, %v11478_v33  ;;  %v11540_v24 = vsel %vm2917_vm3, %v20120_v43, -inf  ;;  %v20136_v48 = vpop.permute.xlu1 %13220 }
 0x9a0   :  { %v17177_v8 = vpop.f32.mrf.mxu0  ;;  %11541 = vmax.xlane.f32.xlu0 %v11540_v24  ;;  %21067 = vst [vmem:[#allocation25_spill] sm:$0xff] %v20136_v48 }
 0x9a1   :  { %v11543_v51 = vsel %vm2917_vm3, %v20124_v31, -inf  ;;  %v20138_v58 = vpop.permute.xlu0 %12984 }
 0x9a2   :  { %11544 = vmax.xlane.f32.xlu1 %v11543_v51  ;;  %21068 = vst [vmem:[#allocation26_spill] sm:$0xff] %v20138_v58 }
 0x9a3   :  { %v20140_v33 = vpop.permute.xlu1 %13218 }
 0x9a4   :  { %21069 = vst [vmem:[#allocation27_spill] sm:$0xff] %v20140_v33 }
 0x9a5   :  { %v20142_v37 = vpop.permute.xlu0 %13142 }
 0x9a6   :  { %21070 = vst [vmem:[#allocation28_spill] sm:$0xff] %v20142_v37 }
 0x9a7   :  { %v20144_v25 = vpop.permute.xlu1 %12752 }
 0x9a9   :  { %v20150_v24 = vpop.permute.xlu0 %13140 }
 0x9aa   :  { %21071 = vst [vmem:[#allocation29_spill] sm:$0xff] %v20150_v24 }
 0x9ad   :  { %v20153_v13 = vpop.permute.xlu0 %13298 }
 0x9b2   :  { %v11500_v8 = vpop.xlane.xlu1 %11499 }
 0x9b3   :  { %13376 = vrot.lane.b32.xlu1 %v19748_v2, %s17725_s26  ;;  %v11546_v51 = vsub.f32 %v20036_v20, %v11500_v8 }
 0x9b5   :  { %v11562_v5 = vmul.f32 1.442695, %v11546_v51 }
 0x9b6   :  { %13296 = vrot.lane.b32.xlu0 %v19704_v52, %s17726_s4 }
 0x9b7   :  { %17562 = vpow2.f32 %v11562_v5 }
 0x9be   :  { %v11503_v56 = vpop.xlane.xlu0 %11502 }
 0x9bf   :  { %v11547_v40 = vsub.f32 %v20040_v35, %v11503_v56 }
 0x9c1   :  { %v11564_v19 = vmul.f32 1.442695, %v11547_v40 }
 0x9c2   :  { %v11506_v37 = vpop.xlane.xlu0 %11505 }
 0x9c3   :  { %17564 = vpow2.f32 %v11564_v19  ;;  %v11548_v58 = vsub.f32 %v20044_v6, %v11506_v37 }
 0x9c4   :  { %v20158_v48 = vpop.eup %17562 }
 0x9c5   :  { %v11566_v46 = vmul.f32 1.442695, %v11548_v58  ;;  %v11594_v5 = vsel %vm2917_vm3, %v20158_v48, 0.0 }
 0x9c6   :  { %v11509_v33 = vpop.xlane.xlu1 %11508 }
 0x9c7   :  { %17566 = vpow2.f32 %v11566_v46  ;;  %v11549_v18 = vsub.f32 %v20048_v10, %v11509_v33 }
 0x9c9   :  { %v11568_v24 = vmul.f32 1.442695, %v11549_v18 }
 0x9cb   :  { %17568 = vpow2.f32 %v11568_v24 }
 0x9ce   :  { %v11515_v20 = vpop.xlane.xlu1 %11514 }
 0x9cf   :  { %v11551_v56 = vsub.f32 %v20052_v54, %v11515_v20 }
 0x9d0   :  { %v20163_v40 = vpop.eup %17564 }
 0x9d1   :  { %v11572_v19 = vmul.f32 1.442695, %v11551_v56  ;;  %v11597_v37 = vsel %vm2917_vm3, %v20163_v40, 0.0 }
 0x9d3   :  { %17570 = vpow2.f32 %v11572_v19 }
 0x9d4   :  { %v20167_v35 = vpop.eup %17566 }
 0x9d5   :  { %11595 = vadd.xlane.f32.xlu0 %v11594_v5  ;;  %v11600_v18 = vsel %vm2917_vm3, %v20167_v35, 0.0 }
 0x9d7   :  { %11598 = vadd.xlane.f32.xlu1 %v11597_v37 }
 0x9d8   :  { %v20171_v6 = vpop.eup %17568 }
 0x9d9   :  { %11601 = vadd.xlane.f32.xlu0 %v11600_v18  ;;  %v11603_v10 = vsel %vm2917_vm3, %v20171_v6, 0.0 }
 0x9db   :  { %11604 = vadd.xlane.f32.xlu1 %v11603_v10 }
 0x9e0   :  { %v20175_v54 = vpop.eup %17570 }
 0x9e1   :  { %v11609_v46 = vsel %vm2917_vm3, %v20175_v54, 0.0 }
 0x9e2   :  { %11610 = vadd.xlane.f32.xlu1 %v11609_v46 }
 0x9f3   :  { %13374 = vrot.lane.b32.xlu1 %v19748_v2, %s17726_s4 }
 0xa03   :  { %v11524_v58 = vpop.xlane.xlu0 %11523 }
 0xa04   :  { %v11554_v33 = vsub.f32 %v20060_v9, %v11524_v58 }
 0xa06   :  { %v11578_v8 = vmul.f32 1.442695, %v11554_v33 }
 0xa07   :  { %v11512_v24 = vpop.xlane.xlu0 %11511 }
 0xa08   :  { %17572 = vpow2.f32 %v11578_v8  ;;  %v11550_v51 = vsub.f32 %v20066_v39, %v11512_v24 }
 0xa0a   :  { %v11570_v5 = vmul.f32 1.442695, %v11550_v51 }
 0xa0c   :  { %17574 = vpow2.f32 %v11570_v5 }
 0xa11   :  { %v11530_v20 = vpop.xlane.xlu0 %11529 }
 0xa12   :  { %v11556_v56 = vsub.f32 %v20082_v21, %v11530_v20  ;;  %v11521_v21 = vpop.xlane.xlu1 %11520 }
 0xa14   :  { %v11582_v37 = vmul.f32 1.442695, %v11556_v56  ;;  %v11553_v56 = vsub.f32 %v20064_v17, %v11521_v21 }
 0xa15   :  { %v20184_v19 = vpop.eup %17572 }
 0xa16   :  { %v11618_v18 = vsel %vm2917_vm3, %v20184_v19, 0.0  ;;  %17576 = vpow2.f32 %v11582_v37  ;;  %v11527_v20 = vpop.xlane.xlu1 %11526 }
 0xa17   :  { %11619 = vadd.xlane.f32.xlu0 %v11618_v18  ;;  %v11576_v18 = vmul.f32 1.442695, %v11553_v56 }
 0xa19   :  { %v20188_v10 = vpop.eup %17574 }
 0xa1a   :  { %v11606_v9 = vsel %vm2917_vm3, %v20188_v10, 0.0 }
 0xa1b   :  { %11607 = vadd.xlane.f32.xlu0 %v11606_v9  ;;  %v11536_v39 = vpop.xlane.xlu0 %11535  ;;  %v11555_v9 = vsub.f32 %v20084_v15, %v11527_v20 }
 0xa1c   :  { %v11558_v46 = vsub.f32 %v20100_v34, %v11536_v39 }
 0xa1e   :  { %v11586_v58 = vmul.f32 1.442695, %v11558_v46  ;;  %v11533_v46 = vpop.xlane.xlu1 %11532 }
 0xa1f   :  { %v11518_v33 = vpop.xlane.xlu0 %11517 }
 0xa20   :  { %17578 = vpow2.f32 %v11586_v58  ;;  %v11552_v8 = vsub.f32 %v20104_v16, %v11518_v33  ;;  %v11580_v33 = vmul.f32 1.442695, %v11555_v9 }
 0xa22   :  { %v11574_v51 = vmul.f32 1.442695, %v11552_v8  ;;  %v11557_v8 = vsub.f32 %v20098_v42, %v11533_v46 }
 0xa23   :  { %v20194_v24 = vpop.eup %17576 }
 0xa24   :  { %v11624_v5 = vsel %vm2917_vm3, %v20194_v24, 0.0  ;;  %17580 = vpow2.f32 %v11574_v51  ;;  %v11584_v15 = vmul.f32 1.442695, %v11557_v8 }
 0xa25   :  { %11625 = vadd.xlane.f32.xlu0 %v11624_v5 }
 0xa27   :  { %v11539_v17 = vpop.xlane.xlu1 %11538 }
 0xa28   :  { %v11559_v51 = vsub.f32 %v20118_v23, %v11539_v17 }
 0xa29   :  { %v11542_v37 = vpop.xlane.xlu0 %11541 }
 0xa2a   :  { %v11560_v34 = vsub.f32 %v20120_v43, %v11542_v37  ;;  %v11588_v5 = vmul.f32 1.442695, %v11559_v51 }
 0xa2c   :  { %v11590_v39 = vmul.f32 1.442695, %v11560_v34 }
 0xa2d   :  { %v20201_v16 = vpop.eup %17578  ;;  %v20234_v17 = vpop.permute.xlu0 %13296 }
 0xa2e   :  { %17582 = vpow2.f32 %v11590_v39  ;;  %v11630_v58 = vsel %vm2917_vm3, %v20201_v16, 0.0 }
 0xa2f   :  { %17584 = vpow2.f32 %v11576_v18  ;;  %11631 = vadd.xlane.f32.xlu0 %v11630_v58  ;;  %v11545_v58 = vpop.xlane.xlu1 %11544 }
 0xa30   :  { %17586 = vpow2.f32 %v11580_v33  ;;  %v11561_v33 = vsub.f32 %v20124_v31, %v11545_v58 }
 0xa31   :  { %v20206_v21 = vpop.eup %17580  ;;  %17588 = vpow2.f32 %v11584_v15 }
 0xa32   :  { %v11612_v43 = vsel %vm2917_vm3, %v20206_v21, 0.0  ;;  %17590 = vpow2.f32 %v11588_v5  ;;  %v11592_v8 = vmul.f32 1.442695, %v11561_v33 }
 0xa33   :  { %11613 = vadd.xlane.f32.xlu0 %v11612_v43  ;;  %v20236_v43 = vpop.permute.xlu1 %13376 }
 0xa34   :  { %17592 = vpow2.f32 %v11592_v8 }
 0xa3b   :  { %v20211_v20 = vpop.eup %17582 }
 0xa3c   :  { %v11636_v42 = vsel %vm2917_vm3, %v20211_v20, 0.0  ;;  %v20215_v56 = vpop.eup %17584 }
 0xa3d   :  { %11637 = vadd.xlane.f32.xlu1 %v11636_v42  ;;  %v11615_v37 = vsel %vm2917_vm3, %v20215_v56, 0.0  ;;  %v20219_v34 = vpop.eup %17586 }
 0xa3e   :  { %v11621_v23 = vsel %vm2917_vm3, %v20219_v34, 0.0  ;;  %v20223_v18 = vpop.eup %17588 }
 0xa3f   :  { %v11627_v9 = vsel %vm2917_vm3, %v20223_v18, 0.0  ;;  %v20227_v39 = vpop.eup %17590 }
 0xa40   :  { %v11633_v46 = vsel %vm2917_vm3, %v20227_v39, 0.0 }
 0xa41   :  { %11616 = vadd.xlane.f32.xlu1 %v11615_v37  ;;  %v20242_v42 = vpop.eup %17592 }
 0xa42   :  { %v11639_v37 = vsel %vm2917_vm3, %v20242_v42, 0.0 }
 0xa45   :  { %11622 = vadd.xlane.f32.xlu1 %v11621_v23 }
 0xa49   :  { %11628 = vadd.xlane.f32.xlu1 %v11627_v9  ;;  %13454 = vrot.lane.b32.xlu0 %v19761_v12, %s17725_s26 }
 0xa4d   :  { %11634 = vadd.xlane.f32.xlu1 %v11633_v46 }
 0xa5e   :  { %13532 = vrot.lane.b32.xlu1 %v19751_v3, %s17725_s26  ;;  %v11596_v15 = vpop.xlane.xlu0 %11595 }
 0xa5f   :  { %17594 = vrcp.f32 %v11596_v15 }
 0xa60   :  { %v11599_v51 = vpop.xlane.xlu1 %11598 }
 0xa61   :  { %17596 = vrcp.f32 %v11599_v51 }
 0xa62   :  { %13530 = vrot.lane.b32.xlu1 %v19751_v3, %s17726_s4  ;;  %v11602_v5 = vpop.xlane.xlu0 %11601 }
 0xa63   :  { %17598 = vrcp.f32 %v11602_v5 }
 0xa64   :  { %v11605_v31 = vpop.xlane.xlu1 %11604 }
 0xa65   :  { %17600 = vrcp.f32 %v11605_v31 }
 0xa66   :  { %13688 = vrot.lane.b32.xlu1 %v19810_v30, %s17725_s26 }
 0xa68   :  { %11640 = vadd.xlane.f32.xlu0 %v11639_v37 }
 0xa6a   :  { %13686 = vrot.lane.b32.xlu1 %v19810_v30, %s17726_s4 }
 0xa6b   :  { %v11611_v33 = vpop.xlane.xlu1 %11610 }
 0xa6c   :  { %v17595_v23 = vpop.eup %17594  ;;  %17602 = vrcp.f32 %v11611_v33 }
 0xa6d   :  { %v11658_v9 = vmul.f32 %v17595_v23, %v20158_v48 }
 0xa6e   :  { %v17597_v46 = vpop.eup %17596  ;;  %13844 = vrot.lane.b32.xlu1 %v19839_v27, %s17725_s26 }
 0xa6f   :  { %17181 = vmatmul.mubr.msk.f32.vlgmr.msra.gmra.mxu1 %vm3096_vm4, %v11658_v9  ;;  %v11659_v58 = vmul.f32 %v17597_v46, %v20163_v40 }
 0xa70   :  { %17189 = vmatpush3.msk.msra.mxu1 %vm3100_vm2, %v20072_v7  ;;  %17190 = vmatprep.mubr.msk.f32.mxu1 %vm17723_vm1, %v21014_v26  ;;  %v17599_v8 = vpop.eup %17598 }
 0xa71   :  { %17186 = vmatmul.mubr.msk.f32.vlgmr.msra.gmra.mxu0 %vm3096_vm4, %v11659_v58  ;;  %17198 = vmatprep.subr.mxu1 %v21014_v26  ;;  %v11660_v48 = vmul.f32 %v17599_v8, %v20167_v35 }
 0xa72   :  { %13842 = vrot.lane.b32.xlu1 %v19839_v27, %s17726_s4  ;;  %17194 = vmatpush3.msk.msra.mxu0 %vm3100_vm2, %v20056_v61  ;;  %v17601_v7 = vpop.eup %17600 }
 0xa73   :  { %17195 = vmatprep.mubr.msk.f32.mxu0 %vm17723_vm1, %v21014_v26  ;;  %17203 = vmatprep.subr.mxu0 %v21014_v26  ;;  %v11661_v61 = vmul.f32 %v17601_v7, %v20171_v6 }
 0xa74   :  { %17191 = vmatmul.mubr.msk.f32.vlgmr.msra.gmra.mxu1 %vm3096_vm4, %v11660_v48  ;;  %v21075_v48 = vld [vmem:[#allocation24_spill] sm:$0xff] }
 0xa75   :  { %17199 = vmatpush3.msk.msra.mxu1 %vm3100_vm2, %v20058_v45  ;;  %17200 = vmatprep.mubr.msk.f32.mxu1 %vm17723_vm1, %v21014_v26 }
 0xa76   :  { %14000 = vrot.lane.b32.xlu1 %v19874_v29, %s17725_s26  ;;  %17208 = vmatprep.subr.mxu1 %v21014_v26 }
 0xa77   :  { %17196 = vmatmul.mubr.msk.f32.vlgmr.msra.gmra.mxu0 %vm3096_vm4, %v11661_v61  ;;  %v21076_v61 = vld [vmem:[#allocation26_spill] sm:$0xff] }
 0xa78   :  { %17204 = vmatpush3.msk.msra.mxu0 %vm3100_vm2, %v20078_v4  ;;  %17205 = vmatprep.mubr.msk.f32.mxu0 %vm17723_vm1, %v21014_v26 }
 0xa79   :  { %17213 = vmatprep.subr.mxu0 %v21014_v26  ;;  %v17603_v45 = vpop.eup %17602 }
 0xa7a   :  { %13998 = vrot.lane.b32.xlu1 %v19874_v29, %s17726_s4  ;;  %v11663_v40 = vmul.f32 %v17603_v45, %v20175_v54  ;;  %v21077_v45 = vld [vmem:[#allocation28_spill] sm:$0xff] }
 0xa7c   :  { %17206 = vmatmul.mubr.msk.f32.vlgmr.msra.gmra.mxu0 %vm3096_vm4, %v11663_v40  ;;  %v21078_v40 = vld [vmem:[#allocation29_spill] sm:$0xff] }
 0xa7d   :  { %17214 = vmatpush3.msk.msra.mxu0 %vm3100_vm2, %v20088_v49  ;;  %17215 = vmatprep.mubr.msk.f32.mxu0 %vm17723_vm1, %v21014_v26 }
 0xa7e   :  { %14423 = vrot.lane.b32.xlu1 %v19677_v38, %s17727_s27  ;;  %13452 = vrot.lane.b32.xlu0 %v19761_v12, %s17726_s4 }
 0xa7f   :  { %17223 = vmatprep.subr.mxu0 %v21014_v26 }
 0xa82   :  { %14577 = vrot.lane.b32.xlu1 %v19681_v1, %s17727_s27  ;;  %13610 = vrot.lane.b32.xlu0 %v19808_v62, %s17725_s26 }
 0xa86   :  { %14654 = vrot.lane.b32.xlu1 %v19698_v14, %s17727_s27  ;;  %13608 = vrot.lane.b32.xlu0 %v19808_v62, %s17726_s4 }
 0xa8a   :  { %14808 = vrot.lane.b32.xlu1 %v19748_v2, %s17727_s27  ;;  %13766 = vrot.lane.b32.xlu0 %v19837_v60, %s17725_s26 }
 0xa8e   :  { %14962 = vrot.lane.b32.xlu1 %v19751_v3, %s17727_s27  ;;  %13764 = vrot.lane.b32.xlu0 %v19837_v60, %s17726_s4 }
 0xa92   :  { %15116 = vrot.lane.b32.xlu1 %v19810_v30, %s17727_s27  ;;  %13922 = vrot.lane.b32.xlu0 %v19869_v63, %s17725_s26 }
 0xa96   :  { %13920 = vrot.lane.b32.xlu0 %v19869_v63, %s17726_s4 }
 0xa9a   :  { %14078 = vrot.lane.b32.xlu0 %v19880_v36, %s17725_s26 }
 0xa9e   :  { %14076 = vrot.lane.b32.xlu0 %v19880_v36, %s17726_s4 }
 0xaa0   :  { %v11620_v38 = vpop.xlane.xlu0 %11619 }
 0xaa2   :  { %14346 = vrot.lane.b32.xlu0 %v19634_v32, %s17727_s27 }
 0xaa4   :  { %v11608_v1 = vpop.xlane.xlu0 %11607 }
 0xaa5   :  { %17604 = vrcp.f32 %v11608_v1 }
 0xaa6   :  { %14500 = vrot.lane.b32.xlu0 %v19669_v41, %s17727_s27 }
 0xaaa   :  { %14731 = vrot.lane.b32.xlu0 %v19704_v52, %s17727_s27  ;;  %v20340_v52 = vpop.permute.xlu1 %13374 }
 0xaae   :  { %14885 = vrot.lane.b32.xlu0 %v19761_v12, %s17727_s27  ;;  %v11626_v3 = vpop.xlane.xlu0 %11625 }
 0xab2   :  { %v17605_v14 = vpop.eup %17604  ;;  %15039 = vrot.lane.b32.xlu0 %v19808_v62, %s17727_s27 }
 0xab3   :  { %v11662_v2 = vmul.f32 %v17605_v14, %v20188_v10 }
 0xab5   :  { %17201 = vmatmul.mubr.msk.f32.vlgmr.msra.gmra.mxu1 %vm3096_vm4, %v11662_v2 }
 0xab6   :  { %17209 = vmatpush3.msk.msra.mxu1 %vm3100_vm2, %v20062_v59  ;;  %17210 = vmatprep.mubr.msk.f32.mxu1 %vm17723_vm1, %v21014_v26 }
 0xab7   :  { %17218 = vmatprep.subr.mxu1 %v21014_v26 }
 0xab8   :  { %v11632_v32 = vpop.xlane.xlu0 %11631 }
 0xabc   :  { %v11614_v41 = vpop.xlane.xlu0 %11613 }
 0xabd   :  { %17606 = vrcp.f32 %v11614_v41 }
 0xabe   :  { %17608 = vrcp.f32 %v11620_v38 }
 0xabf   :  { %17610 = vrcp.f32 %v11626_v3 }
 0xac0   :  { %17612 = vrcp.f32 %v11632_v32 }
 0xac6   :  { %v11638_v12 = vpop.xlane.xlu1 %11637 }
 0xaca   :  { %v11617_v62 = vpop.xlane.xlu1 %11616  ;;  %v17607_v30 = vpop.eup %17606 }
 0xacb   :  { %17614 = vrcp.f32 %v11617_v62  ;;  %v11664_v59 = vmul.f32 %v17607_v30, %v20206_v21  ;;  %v17609_v4 = vpop.eup %17608 }
 0xacc   :  { %17616 = vrcp.f32 %v11638_v12  ;;  %v11666_v35 = vmul.f32 %v17609_v4, %v20184_v19  ;;  %v17611_v6 = vpop.eup %17610 }
 0xacd   :  { %17211 = vmatmul.mubr.msk.f32.vlgmr.msra.gmra.mxu1 %vm3096_vm4, %v11664_v59  ;;  %v17613_v10 = vpop.eup %17612 }
 0xace   :  { %v11623_v49 = vpop.xlane.xlu1 %11622  ;;  %17219 = vmatpush3.msk.msra.mxu1 %vm3100_vm2, %v20076_v0  ;;  %17220 = vmatprep.mubr.msk.f32.mxu1 %vm17723_vm1, %v21014_v26  ;;  %v11668_v0 = vmul.f32 %v17611_v6, %v20194_v24 }
 0xacf   :  { %17618 = vrcp.f32 %v11623_v49  ;;  %17228 = vmatprep.subr.mxu1 %v21014_v26 }
 0xad1   :  { %17221 = vmatmul.mubr.msk.f32.vlgmr.msra.gmra.mxu1 %vm3096_vm4, %v11666_v35 }
 0xad2   :  { %v11629_v54 = vpop.xlane.xlu1 %11628  ;;  %17229 = vmatpush3.msk.msra.mxu1 %vm3100_vm2, %v20080_v53  ;;  %17230 = vmatprep.mubr.msk.f32.mxu1 %vm17723_vm1, %v21014_v26  ;;  %v11670_v53 = vmul.f32 %v17613_v10, %v20201_v16 }
 0xad3   :  { %17620 = vrcp.f32 %v11629_v54  ;;  %17238 = vmatprep.subr.mxu1 %v21014_v26 }
 0xad5   :  { %17231 = vmatmul.mubr.msk.f32.vlgmr.msra.gmra.mxu1 %vm3096_vm4, %v11668_v0 }
 0xad6   :  { %v11635_v21 = vpop.xlane.xlu1 %11634  ;;  %17239 = vmatpush3.msk.msra.mxu1 %vm3100_vm2, %v20092_v44  ;;  %17240 = vmatprep.mubr.msk.f32.mxu1 %vm17723_vm1, %v21014_v26 }
 0xad7   :  { %17622 = vrcp.f32 %v11635_v21  ;;  %17248 = vmatprep.subr.mxu1 %v21014_v26 }
 0xad8   :  { %v17615_v19 = vpop.eup %17614 }
 0xad9   :  { %v17617_v15 = vpop.eup %17616  ;;  %v11665_v51 = vmul.f32 %v17615_v19, %v20215_v56  ;;  %17241 = vmatmul.mubr.msk.f32.vlgmr.msra.gmra.mxu1 %vm3096_vm4, %v11670_v53 }
 0xada   :  { %v13533_v24 = vpop.permute.xlu1 %13532  ;;  %17249 = vmatpush3.msk.msra.mxu1 %vm3100_vm2, %v20144_v25  ;;  %v11672_v16 = vmul.f32 %v17617_v15, %v20211_v20  ;;  %17250 = vmatprep.mubr.msk.f32.mxu1 %vm17723_vm1, %v21014_v26 }
 0xadb   :  { %17216 = vmatmul.mubr.msk.f32.vlgmr.msra.gmra.mxu0 %vm3096_vm4, %v11665_v51  ;;  %17258 = vmatprep.subr.mxu1 %v21014_v26 }
 0xadc   :  { %v17619_v44 = vpop.eup %17618  ;;  %17224 = vmatpush3.msk.msra.mxu0 %vm3100_vm2, %v20094_v11  ;;  %17225 = vmatprep.mubr.msk.f32.mxu0 %vm17723_vm1, %v21014_v26 }
 0xadd   :  { %17233 = vmatprep.subr.mxu0 %v21014_v26  ;;  %v11667_v56 = vmul.f32 %v17619_v44, %v20219_v34  ;;  %17251 = vmatmul.mubr.msk.f32.vlgmr.msra.gmra.mxu1 %vm3096_vm4, %v11672_v16  ;;  %v21074_v34 = vld [vmem:[#allocation27_spill] sm:$0xff] }
 0xade   :  { %v13531_v5 = vpop.permute.xlu1 %13530  ;;  %17259 = vmatpush3.xpose.msk.msra.mxu1 %vm39_vm0, %v20096_v55  ;;  %17260 = vmatprep.mubr.msk.f32.mxu1 %vm17723_vm1, %v21014_v26 }
 0xadf   :  { %17226 = vmatmul.mubr.msk.f32.vlgmr.msra.gmra.mxu0 %vm3096_vm4, %v11667_v56  ;;  %17268 = vmatprep.subr.mxu1 %v21014_v26 }
 0xae0   :  { %v17621_v25 = vpop.eup %17620  ;;  %17234 = vmatpush3.msk.msra.mxu0 %vm3100_vm2, %v20108_v47  ;;  %17235 = vmatprep.mubr.msk.f32.mxu0 %vm17723_vm1, %v21014_v26 }
 0xae1   :  { %17243 = vmatprep.subr.mxu0 %v21014_v26  ;;  %v11669_v11 = vmul.f32 %v17621_v25, %v20223_v18  ;;  %17261 = vmatmul.mubr.msk.f32.vlgmr.msra.gmra.mxu1 %vm39_vm0, %v20110_v57  ;;  %v13455_v18 = vpop.permute.xlu0 %13454 }
 0xae2   :  { %v13689_v20 = vpop.permute.xlu1 %13688  ;;  %17269 = vmatpush3.xpose.msk.msra.mxu1 %vm39_vm0, %v20116_v28  ;;  %17270 = vmatprep.mubr.msk.f32.mxu1 %vm17723_vm1, %v21014_v26  ;;  %v21072_v28 = vld [vmem:[#allocation25_spill] sm:$0xff] }
 0xae3   :  { %17236 = vmatmul.mubr.msk.f32.vlgmr.msra.gmra.mxu0 %vm3096_vm4, %v11669_v11  ;;  %17278 = vmatprep.subr.mxu1 %v21014_v26 }
 0xae4   :  { %v17623_v55 = vpop.eup %17622  ;;  %17244 = vmatpush3.msk.msra.mxu0 %vm3100_vm2, %v20114_v22  ;;  %17245 = vmatprep.mubr.msk.f32.mxu0 %vm17723_vm1, %v21014_v26  ;;  %v21073_v22 = vld [vmem:[#allocation23_spill] sm:$0xff] }
 0xae5   :  { %17253 = vmatprep.subr.mxu0 %v21014_v26  ;;  %v11671_v47 = vmul.f32 %v17623_v55, %v20227_v39  ;;  %17271 = vmatmul.mubr.msk.f32.vlgmr.msra.gmra.mxu1 %vm39_vm0, %v20130_v50 }
 0xae6   :  { %v13687_v57 = vpop.permute.xlu1 %13686  ;;  %17279 = vmatpush3.xpose.msk.msra.mxu1 %vm39_vm0, %v21072_v28  ;;  %17280 = vmatprep.mubr.msk.f32.mxu1 %vm17723_vm1, %v21014_v26 }
 0xae7   :  { %17246 = vmatmul.mubr.msk.f32.vlgmr.msra.gmra.mxu0 %vm3096_vm4, %v11671_v47  ;;  %17288 = vmatprep.subr.mxu1 %v21014_v26 }
 0xae8   :  { %17254 = vmatpush3.msk.msra.mxu0 %vm3100_vm2, %v21073_v22  ;;  %17255 = vmatprep.mubr.msk.f32.mxu0 %vm17723_vm1, %v21014_v26 }
 0xae9   :  { %17281 = vmatmul.mubr.msk.f32.vlgmr.msra.gmra.mxu1 %vm39_vm0, %v21074_v34  ;;  %17263 = vmatprep.subr.mxu0 %v21014_v26 }
 0xaea   :  { %v13845_v50 = vpop.permute.xlu1 %13844  ;;  %17289 = vmatpush3.xpose.msk.msra.mxu1 %vm39_vm0, %v20236_v43  ;;  %17290 = vmatprep.mubr.msk.f32.mxu1 %vm17723_vm1, %v21014_v26 }
 0xaeb   :  { %17298 = vmatprep.subr.mxu1 %v21014_v26 }
 0xaed   :  { %17291 = vmatmul.mubr.msk.f32.vlgmr.msra.gmra.mxu1 %vm39_vm0, %v20340_v52 }
 0xaee   :  { %17299 = vmatpush3.xpose.msk.msra.mxu1 %vm39_vm0, %v13533_v24  ;;  %17300 = vmatprep.mubr.msk.f32.mxu1 %vm17723_vm1, %v21014_v26  ;;  %v13843_v39 = vpop.permute.xlu1 %13842 }
 0xaef   :  { %17308 = vmatprep.subr.mxu1 %v21014_v26 }
 0xaf1   :  { %17301 = vmatmul.mubr.msk.f32.vlgmr.msra.gmra.mxu1 %vm39_vm0, %v13531_v5  ;;  %v11641_v43 = vpop.xlane.xlu0 %11640 }
 0xaf2   :  { %17309 = vmatpush3.xpose.msk.msra.mxu1 %vm39_vm0, %v13689_v20  ;;  %17624 = vrcp.f32 %v11641_v43  ;;  %17310 = vmatprep.mubr.msk.f32.mxu1 %vm17723_vm1, %v21014_v26  ;;  %v14001_v37 = vpop.permute.xlu1 %14000 }
 0xaf3   :  { %17318 = vmatprep.subr.mxu1 %v21014_v26 }
 0xaf5   :  { %17311 = vmatmul.mubr.msk.f32.vlgmr.msra.gmra.mxu1 %vm39_vm0, %v13687_v57  ;;  %v13453_v31 = vpop.permute.xlu0 %13452 }
 0xaf6   :  { %17319 = vmatpush3.xpose.msk.msra.mxu1 %vm39_vm0, %v13845_v50  ;;  %17320 = vmatprep.mubr.msk.f32.mxu1 %vm17723_vm1, %v21014_v26  ;;  %v13999_v9 = vpop.permute.xlu1 %13998 }
 0xaf7   :  { %17328 = vmatprep.subr.mxu1 %v21014_v26 }
 0xaf9   :  { %17321 = vmatmul.mubr.msk.f32.vlgmr.msra.gmra.mxu1 %vm39_vm0, %v13843_v39  ;;  %v13611_v23 = vpop.permute.xlu0 %13610 }
 0xafa   :  { %17329 = vmatpush3.xpose.msk.msra.mxu1 %vm39_vm0, %v14001_v37  ;;  %17330 = vmatprep.mubr.msk.f32.mxu1 %vm17723_vm1, %v21014_v26  ;;  %v14424_v14 = vpop.permute.xlu1 %14423 }
 0xafb   :  { %17338 = vmatprep.subr.mxu1 %v21014_v26 }
 0xafd   :  { %17331 = vmatmul.mubr.msk.f32.vlgmr.msra.gmra.mxu1 %vm39_vm0, %v13999_v9  ;;  %v13609_v46 = vpop.permute.xlu0 %13608 }
 0xafe   :  { %17340 = vmatprep.mubr.msk.f32.mxu1 %vm17723_vm1, %v21014_v26 }
 0xaff   :  { %v17625_v58 = vpop.eup %17624 }
 0xb00   :  { %v11673_v33 = vmul.f32 %v17625_v58, %v20242_v42 }
 0xb01   :  { %v13767_v8 = vpop.permute.xlu0 %13766 }
 0xb02   :  { %17256 = vmatmul.mubr.msk.f32.vlgmr.msra.gmra.mxu0 %vm3096_vm4, %v11673_v33 }
 0xb03   :  { %17264 = vmatpush3.xpose.msk.msra.mxu0 %vm39_vm0, %v21075_v48  ;;  %17265 = vmatprep.mubr.msk.f32.mxu0 %vm17723_vm1, %v21014_v26 }
 0xb04   :  { %17273 = vmatprep.subr.mxu0 %v21014_v26 }
 0xb05   :  { %v13765_v7 = vpop.permute.xlu0 %13764 }
 0xb06   :  { %17266 = vmatmul.mubr.msk.f32.vlgmr.msra.gmra.mxu0 %vm39_vm0, %v21076_v61 }
 0xb07   :  { %17274 = vmatpush3.xpose.msk.msra.mxu0 %vm39_vm0, %v21077_v45  ;;  %17275 = vmatprep.mubr.msk.f32.mxu0 %vm17723_vm1, %v21014_v26 }
 0xb08   :  { %17283 = vmatprep.subr.mxu0 %v21014_v26 }
 0xb09   :  { %v13923_v42 = vpop.permute.xlu0 %13922 }
 0xb0a   :  { %17276 = vmatmul.mubr.msk.f32.vlgmr.msra.gmra.mxu0 %vm39_vm0, %v21078_v40 }
 0xb0b   :  { %17284 = vmatpush3.xpose.msk.msra.mxu0 %vm39_vm0, %v20153_v13  ;;  %17285 = vmatprep.mubr.msk.f32.mxu0 %vm17723_vm1, %v21014_v26 }
 0xb0c   :  { %17293 = vmatprep.subr.mxu0 %v21014_v26 }
 0xb0d   :  { %v13921_v38 = vpop.permute.xlu0 %13920 }
 0xb0e   :  { %17286 = vmatmul.mubr.msk.f32.vlgmr.msra.gmra.mxu0 %vm39_vm0, %v20234_v17 }
 0xb0f   :  { %17294 = vmatpush3.xpose.msk.msra.mxu0 %vm39_vm0, %v13455_v18  ;;  %17295 = vmatprep.mubr.msk.f32.mxu0 %vm17723_vm1, %v21014_v26 }
 0xb10   :  { %17303 = vmatprep.subr.mxu0 %v21014_v26 }
 0xb11   :  { %v14079_v1 = vpop.permute.xlu0 %14078 }
 0xb12   :  { %17296 = vmatmul.mubr.msk.f32.vlgmr.msra.gmra.mxu0 %vm39_vm0, %v13453_v31 }
 0xb13   :  { %17304 = vmatpush3.xpose.msk.msra.mxu0 %vm39_vm0, %v13611_v23  ;;  %17305 = vmatprep.mubr.msk.f32.mxu0 %vm17723_vm1, %v21014_v26 }
 0xb14   :  { %17313 = vmatprep.subr.mxu0 %v21014_v26 }
 0xb15   :  { %v14077_v13 = vpop.permute.xlu0 %14076 }
 0xb16   :  { %17306 = vmatmul.mubr.msk.f32.vlgmr.msra.gmra.mxu0 %vm39_vm0, %v13609_v46 }
 0xb17   :  { %17314 = vmatpush3.xpose.msk.msra.mxu0 %vm39_vm0, %v13767_v8  ;;  %17315 = vmatprep.mubr.msk.f32.mxu0 %vm17723_vm1, %v21014_v26 }
 0xb18   :  { %17323 = vmatprep.subr.mxu0 %v21014_v26 }
 0xb19   :  { %v14347_v17 = vpop.permute.xlu0 %14346 }
 0xb1a   :  { %17316 = vmatmul.mubr.msk.f32.vlgmr.msra.gmra.mxu0 %vm39_vm0, %v13765_v7  ;;  %17339 = vmatpush3.msk.msra.mxu1 %vm3100_vm2, %v14347_v17 }
 0xb1b   :  { %17324 = vmatpush3.xpose.msk.msra.mxu0 %vm39_vm0, %v13923_v42  ;;  %17325 = vmatprep.mubr.msk.f32.mxu0 %vm17723_vm1, %v21014_v26 }
 0xb1c   :  { %17333 = vmatprep.subr.mxu0 %v21014_v26  ;;  %17348 = vmatprep.subr.mxu1 %v21014_v26 }
 0xb1e   :  { %17326 = vmatmul.mubr.msk.f32.vlgmr.msra.gmra.mxu0 %vm39_vm0, %v13921_v38 }
 0xb1f   :  { %17334 = vmatpush3.xpose.msk.msra.mxu0 %vm39_vm0, %v14079_v1  ;;  %17335 = vmatprep.mubr.msk.f32.mxu0 %vm17723_vm1, %v21014_v26 }
 0xb20   :  { %17343 = vmatprep.subr.mxu0 %v21014_v26 }
 0xb22   :  { %17336 = vmatmul.mubr.msk.f32.vlgmr.msra.gmra.mxu0 %vm39_vm0, %v14077_v13 }
 0xb23   :  { %17344 = vmatpush3.msk.msra.mxu0 %vm3100_vm2, %v14424_v14  ;;  %17345 = vmatprep.mubr.msk.f32.mxu0 %vm17723_vm1, %v21014_v26 }
 0xb24   :  { %17353 = vmatprep.subr.mxu0 %v21014_v26 }
 0xb2f   :  { %v20504_v2 = vpop.f32.mrf.mxu1 }
 0xb31   :  { %v17182_v3 = vpop.f32.mrf.mxu1  ;;  %v20506_v32 = vpop.f32.mrf.mxu0 }
 0xb33   :  { %v17187_v41 = vpop.f32.mrf.mxu0 }
 0xb34   :  { %v20508_v52 = vpop.f32.mrf.mxu1 }
 0xb36   :  { %v17192_v12 = vpop.f32.mrf.mxu1 }
 0xb37   :  { %v20510_v62 = vpop.f32.mrf.mxu0 }
 0xb39   :  { %v17197_v30 = vpop.f32.mrf.mxu0 }
 0xb3c   :  { %v20512_v59 = vpop.f32.mrf.mxu0 }
 0xb3e   :  { %v17207_v4 = vpop.f32.mrf.mxu0 }
 0xb75   :  { %v20514_v49 = vpop.f32.mrf.mxu1 }
 0xb77   :  { %v17202_v35 = vpop.f32.mrf.mxu1 }
 0xb8d   :  { %v20516_v6 = vpop.f32.mrf.mxu1 }
 0xb8f   :  { %v17212_v54 = vpop.f32.mrf.mxu1 }
 0xb91   :  { %v20518_v0 = vpop.f32.mrf.mxu1 }
 0xb93   :  { %v17222_v10 = vpop.f32.mrf.mxu1 }
 0xb95   :  { %v20520_v21 = vpop.f32.mrf.mxu1 }
 0xb97   :  { %v17232_v19 = vpop.f32.mrf.mxu1 }
 0xb99   :  { %v20522_v53 = vpop.f32.mrf.mxu1 }
 0xb9b   :  { %v20524_v15 = vpop.f32.mrf.mxu0  ;;  %v17242_v51 = vpop.f32.mrf.mxu1 }
 0xb9d   :  { %v17217_v24 = vpop.f32.mrf.mxu0  ;;  %v20526_v44 = vpop.f32.mrf.mxu1 }
 0xb9f   :  { %v20528_v16 = vpop.f32.mrf.mxu0  ;;  %v17252_v56 = vpop.f32.mrf.mxu1 }
 0xba1   :  { %v17227_v5 = vpop.f32.mrf.mxu0  ;;  %v12980_v25 = vpop.f32.mrf.mxu1 }
 0xba2   :  { %v20532_v20 = vmul.f32 0.25, %v12980_v25 }
 0xba3   :  { %v20530_v11 = vpop.f32.mrf.mxu0  ;;  %v17262_v55 = vpop.f32.mrf.mxu1 }
 0xba4   :  { %v14170_v57 = vsel %vm2917_vm3, %v20532_v20, -inf }
 0xba5   :  { %v17237_v47 = vpop.f32.mrf.mxu0  ;;  %14171 = vmax.xlane.f32.xlu1 %v14170_v57  ;;  %v13136_v28 = vpop.f32.mrf.mxu1 }
 0xba6   :  { %v20542_v38 = vmul.f32 0.25, %v13136_v28 }
 0xba7   :  { %v20536_v22 = vpop.f32.mrf.mxu0  ;;  %v17272_v34 = vpop.f32.mrf.mxu1 }
 0xba8   :  { %v14176_v41 = vsel %vm2917_vm3, %v20542_v38, -inf }
 0xba9   :  { %v17247_v50 = vpop.f32.mrf.mxu0  ;;  %v13292_v18 = vpop.f32.mrf.mxu1 }
 0xbaa   :  { %v20548_v3 = vmul.f32 0.25, %v13292_v18 }
 0xbab   :  { %v17282_v39 = vpop.f32.mrf.mxu1 }
 0xbac   :  { %v14182_v10 = vsel %vm2917_vm3, %v20548_v3, -inf }
 0xbad   :  { %v13448_v43 = vpop.f32.mrf.mxu1 }
 0xbae   :  { %v20556_v54 = vmul.f32 0.25, %v13448_v43 }
 0xbaf   :  { %v17292_v31 = vpop.f32.mrf.mxu1 }
 0xbb0   :  { %v14188_v25 = vsel %vm2917_vm3, %v20556_v54, -inf }
 0xbb1   :  { %v13604_v37 = vpop.f32.mrf.mxu1 }
 0xbb2   :  { %v20564_v5 = vmul.f32 0.25, %v13604_v37 }
 0xbb3   :  { %v17302_v23 = vpop.f32.mrf.mxu1 }
 0xbb4   :  { %v14194_v50 = vsel %vm2917_vm3, %v20564_v5, -inf }
 0xbb5   :  { %v13760_v9 = vpop.f32.mrf.mxu1 }
 0xbb6   :  { %v20572_v34 = vmul.f32 0.25, %v13760_v9 }
 0xbb7   :  { %v17312_v46 = vpop.f32.mrf.mxu1 }
 0xbb8   :  { %v14200_v23 = vsel %vm2917_vm3, %v20572_v34, -inf }
 0xbb9   :  { %v13916_v58 = vpop.f32.mrf.mxu1 }
 0xbba   :  { %v20580_v37 = vmul.f32 0.25, %v13916_v58 }
 0xbbb   :  { %v17322_v33 = vpop.f32.mrf.mxu1 }
 0xbbd   :  { %v14072_v8 = vpop.f32.mrf.mxu1 }
 0xbbf   :  { %v17332_v48 = vpop.f32.mrf.mxu1 }
 0xbc2   :  { %v20538_v7 = vpop.f32.mrf.mxu0 }
 0xbc4   :  { %v17257_v61 = vpop.f32.mrf.mxu0 }
 0xbc5   :  { %v20588_v61 = vmul.f32 0.25, %v14072_v8  ;;  %v20606_v8 = vpop.permute.xlu1 %14577 }
 0xbc6   :  { %v13058_v45 = vpop.f32.mrf.mxu0 }
 0xbc7   :  { %v20540_v42 = vmul.f32 0.25, %v13058_v45  ;;  %v14206_v45 = vsel %vm2917_vm3, %v20580_v37, -inf }
 0xbc8   :  { %v17267_v40 = vpop.f32.mrf.mxu0 }
 0xbc9   :  { %v14173_v1 = vsel %vm2917_vm3, %v20540_v42, -inf }
 0xbca   :  { %14174 = vmax.xlane.f32.xlu0 %v14173_v1  ;;  %v13214_v13 = vpop.f32.mrf.mxu0 }
 0xbcb   :  { %v20546_v17 = vmul.f32 0.25, %v13214_v13 }
 0xbcc   :  { %v17277_v14 = vpop.f32.mrf.mxu0 }
 0xbcd   :  { %v14179_v12 = vsel %vm2917_vm3, %v20546_v17, -inf  ;;  %v14212_v14 = vsel %vm2917_vm3, %v20588_v61, -inf }
 0xbce   :  { %14177 = vmax.xlane.f32.xlu0 %v14176_v41  ;;  %14180 = vmax.xlane.f32.xlu1 %v14179_v12  ;;  %v13370_v30 = vpop.f32.mrf.mxu0  ;;  %v20608_v12 = vpop.permute.xlu1 %14654 }
 0xbcf   :  { %v20554_v4 = vmul.f32 0.25, %v13370_v30 }
 0xbd0   :  { %v17287_v35 = vpop.f32.mrf.mxu0 }
 0xbd1   :  { %v14185_v19 = vsel %vm2917_vm3, %v20554_v4, -inf }
 0xbd2   :  { %14183 = vmax.xlane.f32.xlu0 %v14182_v10  ;;  %14186 = vmax.xlane.f32.xlu1 %v14185_v19  ;;  %v13526_v51 = vpop.f32.mrf.mxu0  ;;  %v20610_v30 = vpop.permute.xlu1 %14808 }
 0xbd3   :  { %v20562_v24 = vmul.f32 0.25, %v13526_v51 }
 0xbd4   :  { %v17297_v56 = vpop.f32.mrf.mxu0 }
 0xbd5   :  { %v14191_v55 = vsel %vm2917_vm3, %v20562_v24, -inf  ;;  %v20617_v56 = vpop.permute.xlu0 %14500 }
 0xbd6   :  { %14189 = vmax.xlane.f32.xlu0 %v14188_v25  ;;  %14192 = vmax.xlane.f32.xlu1 %v14191_v55  ;;  %v13682_v47 = vpop.f32.mrf.mxu0  ;;  %v20612_v35 = vpop.permute.xlu1 %14962 }
 0xbd7   :  { %v20570_v57 = vmul.f32 0.25, %v13682_v47 }
 0xbd8   :  { %v17307_v28 = vpop.f32.mrf.mxu0 }
 0xbd9   :  { %v14197_v18 = vsel %vm2917_vm3, %v20570_v57, -inf  ;;  %v20623_v25 = vpop.permute.xlu0 %14731 }
 0xbda   :  { %14195 = vmax.xlane.f32.xlu0 %v14194_v50  ;;  %14198 = vmax.xlane.f32.xlu1 %v14197_v18  ;;  %v13838_v39 = vpop.f32.mrf.mxu0  ;;  %v20614_v10 = vpop.permute.xlu1 %15116 }
 0xbdb   :  { %v20578_v43 = vmul.f32 0.25, %v13838_v39 }
 0xbdc   :  { %v17317_v31 = vpop.f32.mrf.mxu0 }
 0xbdd   :  { %v14203_v9 = vsel %vm2917_vm3, %v20578_v43, -inf  ;;  %v20625_v55 = vpop.permute.xlu0 %14885 }
 0xbde   :  { %14201 = vmax.xlane.f32.xlu0 %v14200_v23  ;;  %14204 = vmax.xlane.f32.xlu1 %v14203_v9  ;;  %v13994_v46 = vpop.f32.mrf.mxu0 }
 0xbdf   :  { %v20586_v33 = vmul.f32 0.25, %v13994_v46 }
 0xbe0   :  { %v17327_v48 = vpop.f32.mrf.mxu0 }
 0xbe1   :  { %v14209_v58 = vsel %vm2917_vm3, %v20586_v33, -inf  ;;  %v20627_v47 = vpop.permute.xlu0 %15039 }
 0xbe2   :  { %14207 = vmax.xlane.f32.xlu0 %v14206_v45  ;;  %14210 = vmax.xlane.f32.xlu1 %v14209_v58  ;;  %v14150_v40 = vpop.f32.mrf.mxu0 }
 0xbe3   :  { %v20594_v1 = vmul.f32 0.25, %v14150_v40 }
 0xbe4   :  { %v17337_v13 = vpop.f32.mrf.mxu0 }
 0xbe5   :  { %v14215_v41 = vsel %vm2917_vm3, %v20594_v1, -inf }
 0xbe6   :  { %14213 = vmax.xlane.f32.xlu0 %v14212_v14  ;;  %14216 = vmax.xlane.f32.xlu1 %v14215_v41 }
 0xbf7   :  { %15270 = vrot.lane.b32.xlu1 %v19839_v27, %s17727_s27 }
 0xbfc   :  { %15193 = vrot.lane.b32.xlu0 %v19837_v60, %s17727_s27 }
 0xc00   :  { %15347 = vrot.lane.b32.xlu0 %v19869_v63, %s17727_s27 }
 0xc2e   :  { %v14172_v19 = vpop.xlane.xlu1 %14171 }
 0xc2f   :  { %v14218_v51 = vsub.f32 %v20532_v20, %v14172_v19 }
 0xc31   :  { %v14234_v27 = vmul.f32 1.442695, %v14218_v51 }
 0xc33   :  { %17626 = vpow2.f32 %v14234_v27 }
 0xc40   :  { %v20619_v60 = vpop.eup %17626 }
 0xc41   :  { %v14266_v63 = vsel %vm2917_vm3, %v20619_v60, 0.0 }
 0xc42   :  { %14267 = vadd.xlane.f32.xlu0 %v14266_v63 }
 0xc53   :  { %v14175_v28 = vpop.xlane.xlu0 %14174 }
 0xc54   :  { %v14219_v50 = vsub.f32 %v20540_v42, %v14175_v28 }
 0xc56   :  { %v14236_v20 = vmul.f32 1.442695, %v14219_v50 }
 0xc57   :  { %v14181_v18 = vpop.xlane.xlu1 %14180  ;;  %v14178_v39 = vpop.xlane.xlu0 %14177 }
 0xc58   :  { %17628 = vpow2.f32 %v14236_v20  ;;  %v14221_v31 = vsub.f32 %v20546_v17, %v14181_v18  ;;  %v14220_v23 = vsub.f32 %v20542_v38, %v14178_v39 }
 0xc5a   :  { %v14240_v9 = vmul.f32 1.442695, %v14221_v31  ;;  %v14238_v46 = vmul.f32 1.442695, %v14220_v23 }
 0xc5b   :  { %v14187_v48 = vpop.xlane.xlu1 %14186  ;;  %v14184_v45 = vpop.xlane.xlu0 %14183 }
 0xc5c   :  { %17630 = vpow2.f32 %v14240_v9  ;;  %v14223_v58 = vsub.f32 %v20554_v4, %v14187_v48  ;;  %v14222_v40 = vsub.f32 %v20548_v3, %v14184_v45 }
 0xc5d   :  { %17632 = vpow2.f32 %v14238_v46 }
 0xc5e   :  { %v14244_v13 = vmul.f32 1.442695, %v14223_v58  ;;  %v14242_v42 = vmul.f32 1.442695, %v14222_v40 }
 0xc5f   :  { %v14193_v14 = vpop.xlane.xlu1 %14192  ;;  %v14190_v41 = vpop.xlane.xlu0 %14189 }
 0xc60   :  { %17634 = vpow2.f32 %v14244_v13  ;;  %v14225_v19 = vsub.f32 %v20562_v24, %v14193_v14  ;;  %v14224_v17 = vsub.f32 %v20556_v54, %v14190_v41 }
 0xc61   :  { %17636 = vpow2.f32 %v14242_v42 }
 0xc62   :  { %v14248_v38 = vmul.f32 1.442695, %v14225_v19  ;;  %v14246_v51 = vmul.f32 1.442695, %v14224_v17 }
 0xc63   :  { %v14199_v27 = vpop.xlane.xlu1 %14198  ;;  %v14196_v63 = vpop.xlane.xlu0 %14195 }
 0xc64   :  { %17638 = vpow2.f32 %v14248_v38  ;;  %v14227_v4 = vsub.f32 %v20570_v57, %v14199_v27  ;;  %v14226_v3 = vsub.f32 %v20564_v5, %v14196_v63 }
 0xc65   :  { %v20638_v28 = vpop.eup %17628  ;;  %17640 = vpow2.f32 %v14246_v51 }
 0xc66   :  { %v14252_v50 = vmul.f32 1.442695, %v14227_v4  ;;  %v14250_v20 = vmul.f32 1.442695, %v14226_v3  ;;  %v14269_v24 = vsel %vm2917_vm3, %v20638_v28, 0.0 }
 0xc67   :  { %v14205_v18 = vpop.xlane.xlu1 %14204  ;;  %14270 = vadd.xlane.f32.xlu1 %v14269_v24  ;;  %v14202_v54 = vpop.xlane.xlu0 %14201 }
 0xc68   :  { %17642 = vpow2.f32 %v14252_v50  ;;  %v14229_v39 = vsub.f32 %v20578_v43, %v14205_v18  ;;  %v14228_v31 = vsub.f32 %v20572_v34, %v14202_v54 }
 0xc69   :  { %v20644_v23 = vpop.eup %17630  ;;  %17644 = vpow2.f32 %v14250_v20 }
 0xc6a   :  { %v20646_v5 = vpop.eup %17632  ;;  %v14256_v57 = vmul.f32 1.442695, %v14229_v39  ;;  %v14254_v9 = vmul.f32 1.442695, %v14228_v31  ;;  %v14275_v46 = vsel %vm2917_vm3, %v20644_v23, 0.0 }
 0xc6b   :  { %v14211_v48 = vpop.xlane.xlu1 %14210  ;;  %14276 = vadd.xlane.f32.xlu1 %v14275_v46  ;;  %v14272_v45 = vsel %vm2917_vm3, %v20646_v5, 0.0  ;;  %v14208_v58 = vpop.xlane.xlu0 %14207 }
 0xc6c   :  { %17646 = vpow2.f32 %v14256_v57  ;;  %v14231_v43 = vsub.f32 %v20586_v33, %v14211_v48  ;;  %14273 = vadd.xlane.f32.xlu0 %v14272_v45  ;;  %v14230_v34 = vsub.f32 %v20580_v37, %v14208_v58 }
 0xc6d   :  { %v20654_v40 = vpop.eup %17634  ;;  %17648 = vpow2.f32 %v14254_v9 }
 0xc6e   :  { %v20656_v13 = vpop.eup %17636  ;;  %v14260_v42 = vmul.f32 1.442695, %v14231_v43  ;;  %v14258_v14 = vmul.f32 1.442695, %v14230_v34  ;;  %v14281_v41 = vsel %vm2917_vm3, %v20654_v40, 0.0 }
 0xc6f   :  { %v14217_v19 = vpop.xlane.xlu1 %14216  ;;  %14282 = vadd.xlane.f32.xlu1 %v14281_v41  ;;  %v14278_v17 = vsel %vm2917_vm3, %v20656_v13, 0.0  ;;  %v14214_v38 = vpop.xlane.xlu0 %14213 }
 0xc70   :  { %17650 = vpow2.f32 %v14260_v42  ;;  %v14233_v33 = vsub.f32 %v20594_v1, %v14217_v19  ;;  %14279 = vadd.xlane.f32.xlu0 %v14278_v17  ;;  %v14232_v37 = vsub.f32 %v20588_v61, %v14214_v38 }
 0xc71   :  { %v20664_v51 = vpop.eup %17638  ;;  %17652 = vpow2.f32 %v14258_v14 }
 0xc72   :  { %v20666_v27 = vpop.eup %17640  ;;  %v14264_v63 = vmul.f32 1.442695, %v14233_v33  ;;  %v14262_v4 = vmul.f32 1.442695, %v14232_v37  ;;  %v14287_v3 = vsel %vm2917_vm3, %v20664_v51, 0.0 }
 0xc73   :  { %14288 = vadd.xlane.f32.xlu1 %v14287_v3  ;;  %v14284_v50 = vsel %vm2917_vm3, %v20666_v27, 0.0  ;;  %v20708_v42 = vpop.permute.xlu0 %15193 }
 0xc74   :  { %17654 = vpow2.f32 %v14264_v63  ;;  %14285 = vadd.xlane.f32.xlu0 %v14284_v50 }
 0xc75   :  { %v20672_v1 = vpop.eup %17642  ;;  %17656 = vpow2.f32 %v14262_v4 }
 0xc76   :  { %v20674_v61 = vpop.eup %17644  ;;  %v14293_v20 = vsel %vm2917_vm3, %v20672_v1, 0.0 }
 0xc77   :  { %14294 = vadd.xlane.f32.xlu1 %v14293_v20  ;;  %v14290_v24 = vsel %vm2917_vm3, %v20674_v61, 0.0  ;;  %v20710_v14 = vpop.permute.xlu0 %15347 }
 0xc78   :  { %14291 = vadd.xlane.f32.xlu0 %v14290_v24 }
 0xc79   :  { %v20680_v18 = vpop.eup %17646 }
 0xc7a   :  { %v20682_v54 = vpop.eup %17648  ;;  %v14299_v39 = vsel %vm2917_vm3, %v20680_v18, 0.0 }
 0xc7b   :  { %14300 = vadd.xlane.f32.xlu1 %v14299_v39  ;;  %v14296_v31 = vsel %vm2917_vm3, %v20682_v54, 0.0 }
 0xc7c   :  { %14297 = vadd.xlane.f32.xlu0 %v14296_v31 }
 0xc7d   :  { %v20688_v57 = vpop.eup %17650 }
 0xc7e   :  { %v20690_v9 = vpop.eup %17652  ;;  %v14305_v46 = vsel %vm2917_vm3, %v20688_v57, 0.0 }
 0xc7f   :  { %14306 = vadd.xlane.f32.xlu1 %v14305_v46  ;;  %v14302_v48 = vsel %vm2917_vm3, %v20690_v9, 0.0 }
 0xc80   :  { %14303 = vadd.xlane.f32.xlu0 %v14302_v48 }
 0xc81   :  { %v20696_v45 = vpop.eup %17654 }
 0xc82   :  { %v20698_v58 = vpop.eup %17656  ;;  %v14311_v43 = vsel %vm2917_vm3, %v20696_v45, 0.0 }
 0xc83   :  { %v14308_v34 = vsel %vm2917_vm3, %v20698_v58, 0.0 }
 0xc84   :  { %14312 = vadd.xlane.f32.xlu0 %v14311_v43  ;;  %14309 = vadd.xlane.f32.xlu1 %v14308_v34 }
 0xc95   :  { %15424 = vrot.lane.b32.xlu1 %v19874_v29, %s17727_s27  ;;  %v20719_v29 = vpop.permute.xlu1 %15270 }
 0xc9a   :  { %15501 = vrot.lane.b32.xlu0 %v19880_v36, %s17727_s27 }
 0xccb   :  { %v14268_v41 = vpop.xlane.xlu0 %14267 }
 0xccc   :  { %17658 = vrcp.f32 %v14268_v41 }
 0xcd9   :  { %v17659_v19 = vpop.eup %17658 }
 0xcda   :  { %v14330_v17 = vmul.f32 %v17659_v19, %v20619_v60 }
 0xcdc   :  { %17341 = vmatmul.mubr.msk.f32.vlgmr.msra.gmra.mxu1 %vm3096_vm4, %v14330_v17 }
 0xcdd   :  { %17349 = vmatpush3.msk.msra.mxu1 %vm3100_vm2, %v20617_v56  ;;  %17350 = vmatprep.mubr.msk.f32.mxu1 %vm17723_vm1, %v21014_v26 }
 0xcde   :  { %17358 = vmatprep.subr.mxu1 %v21014_v26 }
 0xcf0   :  { %v14271_v36 = vpop.xlane.xlu1 %14270 }
 0xcf1   :  { %17660 = vrcp.f32 %v14271_v36 }
 0xcf4   :  { %v14277_v38 = vpop.xlane.xlu1 %14276 }
 0xcf5   :  { %17662 = vrcp.f32 %v14277_v38  ;;  %v14274_v33 = vpop.xlane.xlu0 %14273 }
 0xcf6   :  { %17664 = vrcp.f32 %v14274_v33 }
 0xcf8   :  { %v14283_v37 = vpop.xlane.xlu1 %14282 }
 0xcf9   :  { %17666 = vrcp.f32 %v14283_v37  ;;  %v14280_v60 = vpop.xlane.xlu0 %14279 }
 0xcfa   :  { %17668 = vrcp.f32 %v14280_v60 }
 0xcfc   :  { %v14289_v63 = vpop.xlane.xlu1 %14288 }
 0xcfd   :  { %17670 = vrcp.f32 %v14289_v63  ;;  %v14286_v56 = vpop.xlane.xlu0 %14285 }
 0xcfe   :  { %v17661_v4 = vpop.eup %17660  ;;  %17672 = vrcp.f32 %v14286_v56 }
 0xcff   :  { %v14331_v3 = vmul.f32 %v17661_v4, %v20638_v28 }
 0xd00   :  { %v14295_v50 = vpop.xlane.xlu1 %14294 }
 0xd01   :  { %17674 = vrcp.f32 %v14295_v50  ;;  %v14292_v20 = vpop.xlane.xlu0 %14291  ;;  %17346 = vmatmul.mubr.msk.f32.vlgmr.msra.gmra.mxu0 %vm3096_vm4, %v14331_v3 }
 0xd02   :  { %v17663_v24 = vpop.eup %17662  ;;  %17676 = vrcp.f32 %v14292_v20  ;;  %17354 = vmatpush3.msk.msra.mxu0 %vm3100_vm2, %v20606_v8  ;;  %17355 = vmatprep.mubr.msk.f32.mxu0 %vm17723_vm1, %v21014_v26 }
 0xd03   :  { %v17665_v39 = vpop.eup %17664  ;;  %v14333_v31 = vmul.f32 %v17663_v24, %v20644_v23  ;;  %17363 = vmatprep.subr.mxu0 %v21014_v26 }
 0xd04   :  { %v14332_v28 = vmul.f32 %v17665_v39, %v20646_v5  ;;  %v14301_v46 = vpop.xlane.xlu1 %14300 }
 0xd05   :  { %17678 = vrcp.f32 %v14301_v46  ;;  %v14298_v48 = vpop.xlane.xlu0 %14297  ;;  %17356 = vmatmul.mubr.msk.f32.vlgmr.msra.gmra.mxu0 %vm3096_vm4, %v14333_v31 }
 0xd06   :  { %v17667_v43 = vpop.eup %17666  ;;  %17680 = vrcp.f32 %v14298_v48  ;;  %17351 = vmatmul.mubr.msk.f32.vlgmr.msra.gmra.mxu1 %vm3096_vm4, %v14332_v28  ;;  %17364 = vmatpush3.msk.msra.mxu0 %vm3100_vm2, %v20623_v25 }
 0xd07   :  { %v17669_v8 = vpop.eup %17668  ;;  %v14335_v34 = vmul.f32 %v17667_v43, %v20654_v40  ;;  %17359 = vmatpush3.msk.msra.mxu1 %vm3100_vm2, %v20608_v12  ;;  %17365 = vmatprep.mubr.msk.f32.mxu0 %vm17723_vm1, %v21014_v26 }
 0xd08   :  { %v14334_v23 = vmul.f32 %v17669_v8, %v20656_v13  ;;  %17373 = vmatprep.subr.mxu0 %v21014_v26  ;;  %v14307_v5 = vpop.xlane.xlu1 %14306  ;;  %17360 = vmatprep.mubr.msk.f32.mxu1 %vm17723_vm1, %v21014_v26 }
 0xd09   :  { %17682 = vrcp.f32 %v14307_v5  ;;  %17368 = vmatprep.subr.mxu1 %v21014_v26  ;;  %v14304_v25 = vpop.xlane.xlu0 %14303  ;;  %17366 = vmatmul.mubr.msk.f32.vlgmr.msra.gmra.mxu0 %vm3096_vm4, %v14335_v34 }
 0xd0a   :  { %v17671_v40 = vpop.eup %17670  ;;  %17684 = vrcp.f32 %v14304_v25  ;;  %17361 = vmatmul.mubr.msk.f32.vlgmr.msra.gmra.mxu1 %vm3096_vm4, %v14334_v23  ;;  %17374 = vmatpush3.msk.msra.mxu0 %vm3100_vm2, %v20625_v55 }
 0xd0b   :  { %v17673_v12 = vpop.eup %17672  ;;  %v14337_v13 = vmul.f32 %v17671_v40, %v20664_v51  ;;  %17369 = vmatpush3.msk.msra.mxu1 %vm3100_vm2, %v20610_v30  ;;  %17375 = vmatprep.mubr.msk.f32.mxu0 %vm17723_vm1, %v21014_v26 }
 0xd0c   :  { %v14336_v41 = vmul.f32 %v17673_v12, %v20666_v27  ;;  %17383 = vmatprep.subr.mxu0 %v21014_v26  ;;  %17370 = vmatprep.mubr.msk.f32.mxu1 %vm17723_vm1, %v21014_v26 }
 0xd0d   :  { %v14310_v19 = vpop.xlane.xlu1 %14309  ;;  %17378 = vmatprep.subr.mxu1 %v21014_v26  ;;  %v14313_v55 = vpop.xlane.xlu0 %14312  ;;  %17376 = vmatmul.mubr.msk.f32.vlgmr.msra.gmra.mxu0 %vm3096_vm4, %v14337_v13 }
 0xd0e   :  { %v17675_v51 = vpop.eup %17674  ;;  %17686 = vrcp.f32 %v14310_v19  ;;  %17371 = vmatmul.mubr.msk.f32.vlgmr.msra.gmra.mxu1 %vm3096_vm4, %v14336_v41  ;;  %17384 = vmatpush3.msk.msra.mxu0 %vm3100_vm2, %v20627_v47 }
 0xd0f   :  { %v17677_v30 = vpop.eup %17676  ;;  %v14339_v27 = vmul.f32 %v17675_v51, %v20672_v1  ;;  %17688 = vrcp.f32 %v14313_v55  ;;  %17379 = vmatpush3.msk.msra.mxu1 %vm3100_vm2, %v20612_v35  ;;  %17385 = vmatprep.mubr.msk.f32.mxu0 %vm17723_vm1, %v21014_v26 }
 0xd10   :  { %v14338_v17 = vmul.f32 %v17677_v30, %v20674_v61  ;;  %17393 = vmatprep.subr.mxu0 %v21014_v26  ;;  %17380 = vmatprep.mubr.msk.f32.mxu1 %vm17723_vm1, %v21014_v26 }
 0xd11   :  { %17388 = vmatprep.subr.mxu1 %v21014_v26  ;;  %17386 = vmatmul.mubr.msk.f32.vlgmr.msra.gmra.mxu0 %vm3096_vm4, %v14339_v27  ;;  %v15502_v36 = vpop.permute.xlu0 %15501 }
 0xd12   :  { %v17679_v47 = vpop.eup %17678  ;;  %17381 = vmatmul.mubr.msk.f32.vlgmr.msra.gmra.mxu1 %vm3096_vm4, %v14338_v17  ;;  %17394 = vmatpush3.msk.msra.mxu0 %vm3100_vm2, %v20708_v42 }
 0xd13   :  { %v17681_v35 = vpop.eup %17680  ;;  %v14341_v1 = vmul.f32 %v17679_v47, %v20680_v18  ;;  %17389 = vmatpush3.msk.msra.mxu1 %vm3100_vm2, %v20614_v10  ;;  %17390 = vmatprep.mubr.msk.f32.mxu1 %vm17723_vm1, %v21014_v26 }
 0xd14   :  { %v14340_v61 = vmul.f32 %v17681_v35, %v20682_v54  ;;  %17395 = vmatprep.mubr.msk.f32.mxu0 %vm17723_vm1, %v21014_v26  ;;  %17398 = vmatprep.subr.mxu1 %v21014_v26 }
 0xd15   :  { %17403 = vmatprep.subr.mxu0 %v21014_v26  ;;  %17396 = vmatmul.mubr.msk.f32.vlgmr.msra.gmra.mxu0 %vm3096_vm4, %v14341_v1 }
 0xd16   :  { %v17683_v42 = vpop.eup %17682  ;;  %17391 = vmatmul.mubr.msk.f32.vlgmr.msra.gmra.mxu1 %vm3096_vm4, %v14340_v61  ;;  %17404 = vmatpush3.msk.msra.mxu0 %vm3100_vm2, %v20710_v14  ;;  %v15425_v14 = vpop.permute.xlu1 %15424  ;;  %v17730_v61 = vmov 1983009808  }
 0xd17   :  { %v17685_v10 = vpop.eup %17684  ;;  %v14343_v18 = vmul.f32 %v17683_v42, %v20688_v57  ;;  %17399 = vmatpush3.msk.msra.mxu1 %vm3100_vm2, %v20719_v29  ;;  %17400 = vmatprep.mubr.msk.f32.mxu1 %vm17723_vm1, %v21014_v26  ;;  %v15693_v42 = vunpack.c.l.s4 %v17730_v61 }
 0xd18   :  { %v14342_v54 = vmul.f32 %v17685_v10, %v20690_v9  ;;  %17405 = vmatprep.mubr.msk.f32.mxu0 %vm17723_vm1, %v21014_v26  ;;  %17408 = vmatprep.subr.mxu1 %v21014_v26 }
 0xd19   :  { %17413 = vmatprep.subr.mxu0 %v21014_v26  ;;  %17406 = vmatmul.mubr.msk.f32.vlgmr.msra.gmra.mxu0 %vm3096_vm4, %v14343_v18 }
 0xd1a   :  { %17401 = vmatmul.mubr.msk.f32.vlgmr.msra.gmra.mxu1 %vm3096_vm4, %v14342_v54  ;;  %17414 = vmatpush3.msk.msra.mxu0 %vm3100_vm2, %v15502_v36  ;;  %v21079_v36 = vld [vmem:[#allocation21_spill] sm:$0xff] }
 0xd1b   :  { %v17687_v57 = vpop.eup %17686  ;;  %17409 = vmatpush3.msk.msra.mxu1 %vm3100_vm2, %v15425_v14  ;;  %17410 = vmatprep.mubr.msk.f32.mxu1 %vm17723_vm1, %v21014_v26 }
 0xd1c   :  { %v17689_v9 = vpop.eup %17688  ;;  %v14344_v29 = vmul.f32 %v17687_v57, %v20698_v58  ;;  %17415 = vmatprep.mubr.msk.f32.mxu0 %vm17723_vm1, %v21014_v26  ;;  %v21080_v57 = vld [vmem:[#allocation18_spill] sm:$0xff] }
 0xd1d   :  { %v14345_v38 = vmul.f32 %v17689_v9, %v20696_v45 }
 0xd1e   :  { %17411 = vmatmul.mubr.msk.f32.vlgmr.msra.gmra.mxu1 %vm3096_vm4, %v14344_v29  ;;  %v21081_v29 = vld [vmem:[#allocation19_spill] sm:$0xff] }
 0xd1f   :  { %17416 = vmatmul.mubr.msk.f32.vlgmr.msra.gmra.mxu0 %vm3096_vm4, %v14345_v38 }
 0xd9c   :  { %v14419_v33 = vpop.f32.mrf.mxu1 }
 0xd9d   :  { %15594 = vrot.lane.b32.xlu1 %v14419_v33, %s17729_s1 }
 0xd9e   :  { %v17342_v37 = vpop.f32.mrf.mxu1 }
 0xdc1   :  { %v14496_v60 = vpop.f32.mrf.mxu0 }
 0xdc2   :  { %15596 = vrot.lane.b32.xlu0 %v14496_v60, %s17729_s1 }
 0xdc3   :  { %v17347_v63 = vpop.f32.mrf.mxu0 }
 0xdc5   :  { %v14650_v56 = vpop.f32.mrf.mxu0 }
 0xdc6   :  { %v14573_v4 = vpop.f32.mrf.mxu1  ;;  %15600 = vrot.lane.b32.xlu0 %v14650_v56, %s17729_s1 }
 0xdc7   :  { %15598 = vrot.lane.b32.xlu1 %v14573_v4, %s17729_s1  ;;  %v17357_v26 = vpop.f32.mrf.mxu0 }
 0xdc8   :  { %v17352_v45 = vpop.f32.mrf.mxu1 }
 0xdc9   :  { %v14804_v58 = vpop.f32.mrf.mxu0  ;;  %v17731_v45 = vmov 1934713408  }
 0xdca   :  { %v14727_v3 = vpop.f32.mrf.mxu1  ;;  %15604 = vrot.lane.b32.xlu0 %v14804_v58, %s17729_s1  ;;  %v15757_v58 = vunpack.c.l.s4 %v17731_v45 }
 0xdcb   :  { %15602 = vrot.lane.b32.xlu1 %v14727_v3, %s17729_s1  ;;  %v17367_v50 = vpop.f32.mrf.mxu0  ;;  %v21083_v3 = vld [vmem:[#allocation9_spill] sm:$0xff] }
 0xdcc   :  { %v17362_v20 = vpop.f32.mrf.mxu1 }
 0xdcd   :  { %v14958_v24 = vpop.f32.mrf.mxu0 }
 0xdce   :  { %v14881_v39 = vpop.f32.mrf.mxu1  ;;  %15608 = vrot.lane.b32.xlu0 %v14958_v24, %s17729_s1  ;;  %v21084_v24 = vld [vmem:[#allocation6_spill] sm:$0xff] }
 0xdcf   :  { %15606 = vrot.lane.b32.xlu1 %v14881_v39, %s17729_s1  ;;  %v17377_v31 = vpop.f32.mrf.mxu0 }
 0xdd0   :  { %v17372_v28 = vpop.f32.mrf.mxu1 }
 0xdd1   :  { %v15112_v46 = vpop.f32.mrf.mxu0 }
 0xdd2   :  { %v15035_v48 = vpop.f32.mrf.mxu1  ;;  %15612 = vrot.lane.b32.xlu0 %v15112_v46, %s17729_s1 }
 0xdd3   :  { %15610 = vrot.lane.b32.xlu1 %v15035_v48, %s17729_s1  ;;  %v17387_v43 = vpop.f32.mrf.mxu0 }
 0xdd4   :  { %v17382_v8 = vpop.f32.mrf.mxu1 }
 0xdd5   :  { %v15266_v34 = vpop.f32.mrf.mxu0 }
 0xdd6   :  { %v15189_v23 = vpop.f32.mrf.mxu1  ;;  %15616 = vrot.lane.b32.xlu0 %v15266_v34, %s17729_s1 }
 0xdd7   :  { %15614 = vrot.lane.b32.xlu1 %v15189_v23, %s17729_s1  ;;  %v17397_v5 = vpop.f32.mrf.mxu0  ;;  %v15758_v23 = vunpack.c.0.s8 %v15757_v58 }
 0xdd8   :  { %v17392_v25 = vpop.f32.mrf.mxu1 }
 0xdd9   :  { %v15420_v40 = vpop.f32.mrf.mxu0  ;;  %v21087_v25 = vld [vmem:[#allocation22_spill] sm:$0xff] }
 0xdda   :  { %v15343_v12 = vpop.f32.mrf.mxu1  ;;  %15620 = vrot.lane.b32.xlu0 %v15420_v40, %s17729_s1 }
 0xddb   :  { %15618 = vrot.lane.b32.xlu1 %v15343_v12, %s17729_s1  ;;  %v17407_v13 = vpop.f32.mrf.mxu0 }
 0xddc   :  { %v17402_v41 = vpop.f32.mrf.mxu1 }
 0xdde   :  { %v15497_v19 = vpop.f32.mrf.mxu1 }
 0xddf   :  { %v15574_v55 = vpop.f32.mrf.mxu0  ;;  %15622 = vrot.lane.b32.xlu1 %v15497_v19, %s17729_s1 }
 0xde0   :  { %15624 = vrot.lane.b32.xlu0 %v15574_v55, %s17729_s1  ;;  %v17412_v51 = vpop.f32.mrf.mxu1 }
 0xde1   :  { %v17417_v30 = vpop.f32.mrf.mxu0 }
 0xe0f   :  { %v15595_v17 = vpop.permute.xlu1 %15594 }
 0xe10   :  { %v15642_v47 = vsel %vm39_vm0, %v20504_v2, %v15595_v17  ;;  %v21082_v2 = vld [vmem:[#allocation20_spill] sm:$0xff] }
 0xe11   :  { %v15658_v9 = vadd.f32 %v15642_v47, %v21080_v57 }
 0xe34   :  { %v15597_v27 = vpop.permute.xlu0 %15596 }
 0xe35   :  { %v15643_v35 = vsel %vm39_vm0, %v20506_v32, %v15597_v27  ;;  %v15694_v32 = vunpack.c.0.s8 %v15693_v42 }
 0xe36   :  { %v15659_v38 = vadd.f32 %v15643_v35, %v21081_v29  ;;  %v20864_v35 = vsub.s32 %v15758_v23, %v21084_v24 }
 0xe37   :  { %v20846_v39 = vsub.s32 %v15694_v32, %v21084_v24  ;;  %v21089_v32 = vld [vmem:[#allocation12_spill] sm:$0xff] }
 0xe38   :  { %v15601_v1 = vpop.permute.xlu0 %15600  ;;  %v15675_v26 = vmax.f32 %v15659_v38, 0.0 }
 0xe39   :  { %v15599_v10 = vpop.permute.xlu1 %15598  ;;  %v15645_v18 = vsel %vm39_vm0, %v20510_v62, %v15601_v1  ;;  %v15674_v62 = vmax.f32 %v15658_v9, 0.0 }
 0xe3a   :  { %v15644_v54 = vsel %vm39_vm0, %v20508_v52, %v15599_v10  ;;  %v15661_v14 = vadd.f32 %v15645_v18, %v21079_v36 }
 0xe3b   :  { %v15660_v33 = vadd.f32 %v15644_v54, %v21082_v2 }
 0xe3c   :  { %v15605_v37 = vpop.permute.xlu0 %15604  ;;  %v15677_v63 = vmax.f32 %v15661_v14, 0.0 }
 0xe3d   :  { %v15676_v60 = vmax.f32 %v15660_v33, 0.0  ;;  %v15603_v56 = vpop.permute.xlu1 %15602  ;;  %v15647_v4 = vsel %vm39_vm0, %v20512_v59, %v15605_v37  ;;  %v21085_v59 = vld [vmem:[#allocation7_spill] sm:$0xff]  ;;  %v21088_v33 = vld [vmem:[#allocation8_spill] sm:$0xff] }
 0xe3e   :  { %v15646_v52 = vsel %vm39_vm0, %v20514_v49, %v15603_v56  ;;  %v15663_v50 = vadd.f32 %v15647_v4, %v21083_v3  ;;  %v15706_v28 = vcombine.low %v15675_v26, %v15677_v63  ;;  %v21086_v49 = vld [vmem:[#allocation10_spill] sm:$0xff]  ;;  %v15707_v55 = vcombine.high %v15675_v26, %v15677_v63  ;;  %v21091_v26 = vld [vmem:[#allocation11_spill] sm:$0xff] }
 0xe3f   :  { %v15690_v31 = vcombine.low %v15674_v62, %v15676_v60  ;;  %v15662_v43 = vadd.f32 %v15646_v52, %v21085_v59  ;;  %v15691_v41 = vcombine.high %v15674_v62, %v15676_v60  ;;  %v21090_v63 = vld [vmem:[#allocation14_spill] sm:$0xff] }
 0xe40   :  { %v15609_v20 = vpop.permute.xlu0 %15608  ;;  %v15679_v5 = vmax.f32 %v15663_v50, 0.0  ;;  %v20874_v36 = vrot.slane %v15707_v55, %v20846_v39 }
 0xe41   :  { %v15607_v46 = vpop.permute.xlu1 %15606  ;;  %v15649_v48 = vsel %vm39_vm0, %v20524_v15, %v15609_v20  ;;  %v20856_v19 = vrot.slane %v15690_v31, %v20846_v39  ;;  %v20859_v15 = vrot.slane %v15706_v28, %v20846_v39  ;;  %v15678_v30 = vmax.f32 %v15662_v43, 0.0 }
 0xe42   :  { %v15648_v8 = vsel %vm39_vm0, %v20516_v6, %v15607_v46  ;;  %v15665_v34 = vadd.f32 %v15649_v48, %v21086_v49  ;;  %v20871_v54 = vrot.slane %v15691_v41, %v20846_v39  ;;  %v21092_v49 = vld [vmem:[#allocation15_spill] sm:$0xff] }
 0xe43   :  { %v15664_v40 = vadd.f32 %v15648_v8, %v21087_v25  ;;  %v21093_v25 = vld [vmem:[#allocation13_spill] sm:$0xff] }
 0xe44   :  { %v15681_v12 = vmax.f32 %v15665_v34, 0.0  ;;  %v15613_v13 = vpop.permute.xlu0 %15612  ;;  %v15771_v41 = vcombine.high %v20871_v54, %v20874_v36 }
 0xe45   :  { %v15611_v51 = vpop.permute.xlu1 %15610  ;;  %v15680_v27 = vmax.f32 %v15664_v40, 0.0  ;;  %v15651_v38 = vsel %vm39_vm0, %v20528_v16, %v15613_v13  ;;  %v15770_v16 = vcombine.low %v20871_v54, %v20874_v36 }
 0xe46   :  { %v15738_v6 = vcombine.low %v15679_v5, %v15681_v12  ;;  %v15739_v17 = vcombine.high %v15679_v5, %v15681_v12  ;;  %v15650_v47 = vsel %vm39_vm0, %v20518_v0, %v15611_v51  ;;  %v15754_v0 = vcombine.low %v20856_v19, %v20859_v15  ;;  %v21094_v51 = vld [vmem:[#allocation16_spill] sm:$0xff] }
 0xe47   :  { %v15722_v1 = vcombine.low %v15678_v30, %v15680_v27  ;;  %v15723_v61 = vcombine.high %v15678_v30, %v15680_v27  ;;  %v15666_v37 = vadd.f32 %v15650_v47, %v21088_v33  ;;  %v15667_v52 = vadd.f32 %v15651_v38, %v21091_v26 }
 0xe48   :  { %v15746_v42 = vrot.slane %v15738_v6, %v20846_v39  ;;  %v20868_v10 = vrot.slane %v15739_v17, %v20846_v39  ;;  %v15617_v18 = vpop.permute.xlu0 %15616  ;;  %v20896_v3 = vrot.slane %v15754_v0, %v20864_v35  ;;  %v20916_v13 = vrot.slane %v15770_v16, %v20864_v35 }
 0xe49   :  { %v15615_v14 = vpop.permute.xlu1 %15614  ;;  %v15653_v57 = vsel %vm39_vm0, %v20530_v11, %v15617_v18  ;;  %v15730_v9 = vrot.slane %v15722_v1, %v20846_v39  ;;  %v15737_v29 = vrot.slane %v15723_v61, %v20846_v39  ;;  %v15682_v20 = vmax.f32 %v15666_v37, 0.0  ;;  %v21095_v1 = vld [vmem:[#allocation17_spill] sm:$0xff] }
 0xe4a   :  { %v15652_v2 = vsel %vm39_vm0, %v20520_v21, %v15615_v14  ;;  %v15669_v56 = vadd.f32 %v15653_v57, %v21090_v63  ;;  %v15683_v43 = vmax.f32 %v15667_v52, 0.0  ;;  %v15785_v63 = vrot.slane %v15771_v41, %v20864_v35 }
 0xe4b   :  { %v15668_v60 = vadd.f32 %v15652_v2, %v21089_v32  ;;  %v15786_v4 = vcombine.low %v15730_v9, %v15746_v42  ;;  %v15802_v62 = vcombine.low %v15737_v29, %v20868_v10  ;;  %v15787_v46 = vcombine.high %v15730_v9, %v15746_v42 }
 0xe4c   :  { %v15621_v11 = vpop.permute.xlu0 %15620  ;;  %v15685_v31 = vmax.f32 %v15669_v56, 0.0  ;;  %v16020_v41 = vsub.s32 1, %v21084_v24 }
 0xe4d   :  { %v15684_v45 = vmax.f32 %v15668_v60, 0.0  ;;  %v15619_v58 = vpop.permute.xlu1 %15618  ;;  %v15655_v21 = vsel %vm39_vm0, %v20536_v22, %v15621_v11  ;;  %v20899_v50 = vrot.slane %v15786_v4, %v20864_v35  ;;  %v20906_v59 = vrot.slane %v15802_v62, %v20864_v35 }
 0xe4e   :  { %v15654_v28 = vsel %vm39_vm0, %v20522_v53, %v15619_v58  ;;  %v15755_v22 = vcombine.high %v20856_v19, %v20859_v15  ;;  %v15671_v34 = vadd.f32 %v15655_v21, %v21092_v49  ;;  %v15803_v19 = vcombine.high %v15737_v29, %v20868_v10 }
 0xe4f   :  { %v15819_v48 = vcombine.high %v20896_v3, %v20899_v50  ;;  %v15825_v8 = vcombine.low %v15682_v20, %v15684_v45  ;;  %v15826_v5 = vcombine.high %v15682_v20, %v15684_v45  ;;  %v15670_v40 = vadd.f32 %v15654_v28, %v21093_v25 }
 0xe50   :  { %v15841_v55 = vcombine.low %v15683_v43, %v15685_v31  ;;  %v15842_v15 = vcombine.high %v15683_v43, %v15685_v31  ;;  %v15801_v6 = vrot.slane %v15787_v46, %v20864_v35  ;;  %v15687_v47 = vmax.f32 %v15671_v34, 0.0 }
 0xe51   :  { %v15623_v23 = vpop.permute.xlu1 %15622  ;;  %15962 = vrot.lane.b32.xlu1 %v15819_v48, %s17728_s28  ;;  %v15833_v17 = vrot.slane %v15825_v8, %v20846_v39  ;;  %v15769_v42 = vrot.slane %v15755_v22, %v20864_v35  ;;  %v15840_v10 = vrot.slane %v15826_v5, %v20846_v39  ;;  %v15686_v18 = vmax.f32 %v15670_v40, 0.0 }
 0xe52   :  { %v15656_v53 = vsel %vm39_vm0, %v20526_v44, %v15623_v23  ;;  %v15625_v12 = vpop.permute.xlu0 %15624  ;;  %v15823_v44 = vcombine.high %v20916_v13, %v20906_v59  ;;  %v15849_v36 = vrot.slane %v15841_v55, %v20846_v39  ;;  %v15856_v0 = vrot.slane %v15842_v15, %v20846_v39  ;;  %v16012_v55 = vld [vmem:[%s20989_s3] sm:$0x3]  ;;  %s17733_s3 = smov [#allocation3]  }
 0xe53   :  { %v15672_v30 = vadd.f32 %v15656_v53, %v21094_v51  ;;  %v15657_v27 = vsel %vm39_vm0, %v20538_v7, %v15625_v12  ;;  %v15818_v7 = vcombine.low %v20896_v3, %v20899_v50  ;;  %v15822_v57 = vcombine.low %v20916_v13, %v20906_v59  ;;  %s16107_s13 = sshll.u32 %s17733_s3, 4  ;;  %s16108_s13 = int_to_ptr.vmem [resolvable:$true] %s16107_s13 }
 0xe54   :  { %v15673_v61 = vadd.f32 %v15657_v27, %v21095_v1  ;;  %v15820_v38 = vcombine.low %v15769_v42, %v15801_v6  ;;  %v15817_v2 = vrot.slane %v15803_v19, %v20864_v35  ;;  %v15889_v56 = vcombine.low %v15833_v17, %v15849_v36  ;;  %s17698_s14 = scalar_lea.vmem %s16108_s13, 32  ;;  %p17703_p1 = scmp.lt.s32.totalorder %s16108_s13, %s16108_s13 }
 0xe55   :  { %v15688_v54 = vmax.f32 %v15672_v30, 0.0  ;;  %15986 = vrot.lane.b32.xlu1 %v15823_v44, %s17728_s28  ;;  %v15905_v11 = vcombine.low %v15840_v10, %v15856_v0  ;;  %v15821_v20 = vcombine.high %v15769_v42, %v15801_v6  ;;  %v15890_v59 = vcombine.high %v15833_v17, %v15849_v36  ;;  %p17699_p0 = scmp.ne.s32.totalorder %s16108_s13, %s17698_s14  ;;  %p17704_p2 = scmp.lt.s32.totalorder %s17698_s14, %s17698_s14 }
 0xe56   :  { %v15689_v14 = vmax.f32 %v15673_v61, 0.0  ;;  %v15824_v26 = vcombine.low %v15785_v63, %v15817_v2  ;;  %v15897_v58 = vrot.slane %v15889_v56, %v20864_v35  ;;  %v15906_v49 = vcombine.high %v15840_v10, %v15856_v0 }
 0xe57   :  { %v15857_v9 = vcombine.low %v15686_v18, %v15688_v54  ;;  %v15858_v29 = vcombine.high %v15686_v18, %v15688_v54  ;;  %v15913_v31 = vrot.slane %v15905_v11, %v20864_v35  ;;  %v15904_v34 = vrot.slane %v15890_v59, %v20864_v35  ;;  %p17705_p3 = por %p17704_p2, %p17703_p1 }
 0xe58   :  { %v15873_v33 = vcombine.low %v15687_v47, %v15689_v14  ;;  %v15874_v37 = vcombine.high %v15687_v47, %v15689_v14  ;;  %v15920_v25 = vrot.slane %v15906_v49, %v20864_v35  ;;  %v16016_v15 = vsub.s32 0, %v21084_v24 }
 0xe59   :  { %v15865_v32 = vrot.slane %v15857_v9, %v20846_v39  ;;  %v15872_v60 = vrot.slane %v15858_v29, %v20846_v39  ;;  %15970 = vrot.lane.b32.xlu1 %v15820_v38, %s17724_s25  ;;  %v16021_v51 = vrot.slane %v16012_v55, %v16020_v41  ;;  %p17706_p4 = pnand %p17705_p3, %p17699_p0 }
 0xe5a   :  { %v15881_v4 = vrot.slane %v15873_v33, %v20846_v39  ;;  %v15888_v62 = vrot.slane %v15874_v37, %v20846_v39  ;;  %v16017_v44 = vrot.slane %v16012_v55, %v16016_v15 }
 0xe5c   :  { %v15921_v52 = vcombine.low %v15865_v32, %v15881_v4  ;;  %v15937_v45 = vcombine.low %v15872_v60, %v15888_v62  ;;  %v15922_v28 = vcombine.high %v15865_v32, %v15881_v4  ;;  %v15938_v22 = vcombine.high %v15872_v60, %v15888_v62  ;;  %v16431_v60 = vld [vmem:[#allocation2] ss:$0 sm:$0xff] }
 0xe5d   :  { %15994 = vrot.lane.b32.xlu1 %v15824_v26, %s17724_s25  ;;  %v17732_v32 = vmov 0  }
 0xe5e   :  { %v15929_v16 = vrot.slane %v15921_v52, %v20864_v35  ;;  %v15945_v21 = vrot.slane %v15937_v45, %v20864_v35  ;;  %v15936_v8 = vrot.slane %v15922_v28, %v20864_v35  ;;  %v15952_v5 = vrot.slane %v15938_v22, %v20864_v35  ;;  %17432 = vset.pattern.permute.xlu0 %v17732_v32 }
 0xe5f   :  { %17433 = vset.pattern.permute.xlu1 %v17732_v32 }
 0xe60   :  { %v15954_v46 = vcombine.high %v15897_v58, %v15929_v16  ;;  %v15953_v39 = vcombine.low %v15897_v58, %v15929_v16  ;;  %v15957_v48 = vcombine.low %v15913_v31, %v15945_v21  ;;  %v15958_v43 = vcombine.high %v15913_v31, %v15945_v21 }
 0xe61   :  { %15978 = vrot.lane.b32.xlu1 %v15821_v20, %s17721_s0  ;;  %v15955_v23 = vcombine.low %v15904_v34, %v15936_v8  ;;  %v15959_v40 = vcombine.low %v15920_v25, %v15952_v5  ;;  %v15956_v53 = vcombine.high %v15904_v34, %v15936_v8  ;;  %v21096_v31 = vlaneseq }
 0xe62   :  { %15964 = vrot.lane.b32.xlu0 %v15954_v46, %s17728_s28 }
 0xe63   :  { %v16066_v28 = vand.u32 127, %v21096_v31 }
 0xe65   :  { %v16071_v46 = vadd.s32 4294967288, %v16066_v28  ;;  %v16069_v22 = vsub.s32 %v16066_v28, %v21084_v24 }
 0xe66   :  { %15988 = vrot.lane.b32.xlu0 %v15958_v43, %s17728_s28 }
 0xe6a   :  { %15972 = vrot.lane.b32.xlu0 %v15955_v23, %s17724_s25 }
 0xe6e   :  { %15996 = vrot.lane.b32.xlu0 %v15959_v40, %s17724_s25 }
 0xe72   :  { %15980 = vrot.lane.b32.xlu0 %v15956_v53, %s17721_s0 }
 0xec3   :  { %v15963_v12 = vpop.permute.xlu1 %15962 }
 0xec4   :  { %v16000_v6 = vsel %vm8634_vm5, %v15818_v7, %v15963_v12 }
 0xec7   :  { %v15987_v13 = vpop.permute.xlu1 %15986 }
 0xec8   :  { %v16008_v35 = vsel %vm8634_vm5, %v15822_v57, %v15987_v13 }
 0xecb   :  { %v15971_v19 = vpop.permute.xlu1 %15970 }
 0xecc   :  { %v16003_v47 = vsel %vm16002_vm6, %v16000_v6, %v15971_v19 }
 0xecf   :  { %v15995_v30 = vpop.permute.xlu1 %15994 }
 0xed0   :  { %v16010_v27 = vsel %vm16002_vm6, %v16008_v35, %v15995_v30 }
 0xed1   :  { %v16025_v17 = vmul.f32 %v16021_v51, %v16010_v27 }
 0xed3   :  { %v15979_v1 = vpop.permute.xlu1 %15978  ;;  %v16028_v18 = vsel %vm16005_vm7, %v16025_v17, 0.0 }
 0xed4   :  { %v16006_v61 = vsel %vm16005_vm7, %v16003_v47, %v15979_v1  ;;  %v15965_v42 = vpop.permute.xlu0 %15964 }
 0xed5   :  { %v16024_v10 = vmul.f32 %v16017_v44, %v16006_v61  ;;  %v16001_v50 = vsel %vm8634_vm5, %v15953_v39, %v15965_v42 }
 0xed7   :  { %v16029_v54 = vadd.f32 %v16028_v18, %v16024_v10 }
 0xed8   :  { %v15989_v36 = vpop.permute.xlu0 %15988 }
 0xed9   :  { %16030 = vadd.xlane.f32.xlu1 %v16029_v54  ;;  %v16009_v14 = vsel %vm8634_vm5, %v15957_v48, %v15989_v36  ;;  %v16074_v48 = vsub.s32 %v16071_v46, %v21084_v24 }
 0xedc   :  { %v15973_v0 = vpop.permute.xlu0 %15972 }
 0xedd   :  { %v16004_v9 = vsel %vm16002_vm6, %v16001_v50, %v15973_v0 }
 0xee0   :  { %v15997_v57 = vpop.permute.xlu0 %15996 }
 0xee1   :  { %v16011_v3 = vsel %vm16002_vm6, %v16009_v14, %v15997_v57 }
 0xee2   :  { %v16027_v7 = vmul.f32 %v16021_v51, %v16011_v3 }
 0xee4   :  { %v15981_v29 = vpop.permute.xlu0 %15980  ;;  %v16032_v33 = vsel %vm16005_vm7, %v16027_v7, 0.0 }
 0xee5   :  { %v16007_v38 = vsel %vm16005_vm7, %v16004_v9, %v15981_v29 }
 0xee6   :  { %v16026_v2 = vmul.f32 %v16017_v44, %v16007_v38 }
 0xee8   :  { %v16033_v37 = vadd.f32 %v16032_v33, %v16026_v2 }
 0xeea   :  { %16034 = vadd.xlane.f32.xlu0 %v16033_v37 }
 0xf62   :  { %v16031_v63 = vpop.xlane.xlu1 %16030 }
 0xf63   :  { %v16043_v56 = vadd.f32 %v16431_v60, %v16031_v63 }
 0xf65   :  { %v16432_v4 = vmul.f32 -1.442695, %v16043_v56  ;;  %16060 = vperm.xlu0 %17432, %v16043_v56  }
 0xf67   :  { %17690 = vpow2.f32 %v16432_v4 }
 0xf73   :  { %v16035_v62 = vpop.xlane.xlu0 %16034 }
 0xf74   :  { %v17691_v11 = vpop.eup %17690  ;;  %v16044_v26 = vadd.f32 %v16431_v60, %v16035_v62 }
 0xf75   :  { %v16051_v52 = vadd.f32 1.0, %v17691_v11 }
 0xf76   :  { %v16433_v45 = vmul.f32 -1.442695, %v16044_v26  ;;  %16063 = vperm.xlu1 %17433, %v16044_v26  }
 0xf77   :  { %17692 = vrcp.f32 %v16051_v52 }
 0xf78   :  { %17694 = vpow2.f32 %v16433_v45 }
 0xf84   :  { %v17693_v58 = vpop.eup %17692 }
 0xf85   :  { %v17695_v16 = vpop.eup %17694  ;;  %16082 = vperm.xlu1 %17433, %v17693_v58  }
 0xf86   :  { %v16052_v21 = vadd.f32 1.0, %v17695_v16 }
 0xf88   :  { %17696 = vrcp.f32 %v16052_v21 }
 0xf95   :  { %v17697_v20 = vpop.eup %17696 }
 0xf96   :  { %16085 = vperm.xlu1 %17433, %v17697_v20  }
 0xfe0   :  { %v16061_v43 = vpop.permute.xlu0 %16060 }
 0xfe1   :  { %v16070_v34 = vrot.slane %v16061_v43, %v16069_v22 }
 0xff1   :  { %v16064_v39 = vpop.permute.xlu1 %16063 }
 0xff2   :  { %v16075_v8 = vrot.slane %v16064_v39, %v16074_v48 }
 0xff4   :  { %v16077_v25 = vsel %vm16076_vm8, %v16075_v8, %v16070_v34 }
0x1000   :  { %v16083_v59 = vpop.permute.xlu1 %16082 }
0x1001   :  { %v16090_v23 = vrot.slane %v16083_v59, %v16069_v22 }
0x1011   :  { %v16086_v49 = vpop.permute.xlu1 %16085 }
0x1012   :  { %v16094_v5 = vrot.slane %v16086_v49, %v16074_v48 }
0x1014   :  { %v16095_v40 = vsel %vm16076_vm8, %v16094_v5, %v16090_v23 }
0x1015   :  { %v16098_v53 = vsel %vm16097_vm9, %v16077_v25, %v16095_v40 }
0x1016   :  { %16100 = vst.msk [vmem:[#allocation3] sm:$0x3] %vm16099_vm10, %v16098_v53 }
0x1017   :  { %17709 = shalt.err (!%p17706_p4)
}
0x1018   :  { %16110 = dma.vmem_to_hbm [thread:$0]  %s16108_s13, 32, %s20991_s5, [#allocation4]  }
0x1019   :  { %17718 = dma.done.wait [#allocation4], 32  }
0x101a   :  { %17719 = vsyncadd [#allocation4], 4294967264 }
0x101b   :  { %16114 = vsyncpa [#allocation4], 1 }

</bundles_post_ra>
